<compile_context>
chip_gen: v7x
topology: tpu7x:2x2x1
jax: 0.10.0
libtpu: 0.0.40
codegen_flags: <defaults>
</compile_context>

<pallas_src>
import functools

import jax
import jax.numpy as jnp
from jax import lax
from jax.experimental import pallas as pl
from jax.experimental.pallas import tpu as pltpu

DILATIONS = (1, 2, 3, 4, 3, 2, 1)   # KAIR basicblock.IRCNN dilation pattern
NC_PAD = 16                         # every layer's channel dim padded to this
# Padded-border sizes.  Correctness needs PM_W >= max(DILATIONS) and
# PM_H >= max(DILATIONS) + 1 (keeps the flat tap slices in bounds); 8/8 also
# makes the center-row offset and padded row length 128-lane aligned for W=16,
# so the per-layer center stores are unmasked and lane-aligned.
PM_W = 8
PM_H = 8


def _lircnn_fused_kernel(x_ref, w_ref, b_ref, o_ref,
                         bufa_ref, bufb_ref, col_ref, *, H, W):
    """Fused IRCNN conv stack + LIRCNN gating for one image.

    x_ref : (1, NC_PAD, Hp*Wp)    flat, zero-bordered, channel-padded input
    w_ref : (7, NC_PAD, 9*NC_PAD) packed weights  [co, (ky*3+kx)*NC_PAD + ci]
    b_ref : (7, NC_PAD, 1)        packed biases
    o_ref : (1, out_nc, H*Wp)     gated output on the W-padded row grid
    bufa_ref, bufb_ref : (NC_PAD, Hp*Wp)  VMEM ping-pong activation scratch
    col_ref : (9*NC_PAD, H*Wp)    VMEM im2col scratch
    """
    CP = x_ref.shape[1]
    out_nc = o_ref.shape[1]
    Wp = W + 2 * PM_W
    L = H * Wp
    c0 = PM_H * Wp                      # flat offset of the first center row

    # Scratch borders provide the convs' zero padding -> zero once per grid
    # step (layer stores only ever touch the center rows afterwards).
    bufa_ref[...] = jnp.zeros(bufa_ref.shape, jnp.float32)
    bufb_ref[...] = jnp.zeros(bufb_ref.shape, jnp.float32)

    # Mask that zeroes the W-border columns of the flattened (y, x') grid.
    xprime = lax.broadcasted_iota(jnp.int32, (1, L), 1) % Wp
    col_ok = jnp.logical_and(xprime >= PM_W, xprime < PM_W + W)

    def conv(read_tap, layer, dil, relu):
        # im2col: tap (ky, kx) of the dilated 3x3 conv is the contiguous flat
        # slice of the padded source at offset (PM_H+(ky-1)*d)*Wp + (kx-1)*d.
        for ky in range(3):
            for kx in range(3):
                t = ky * 3 + kx
                s = (PM_H + (ky - 1) * dil) * Wp + (kx - 1) * dil
                col_ref[t * CP:(t + 1) * CP, :] = read_tap(s)
        acc = jnp.dot(w_ref[layer], col_ref[...],
                      preferred_element_type=jnp.float32)   # (CP, L), K = 9*CP
        acc = acc + b_ref[layer]
        if relu:
            acc = jnp.maximum(acc, 0.0)
        return jnp.where(col_ok, acc, 0.0)   # keep W-border columns zero

    # Layer 1: padded input -> bufa.
    bufa_ref[:, c0:c0 + L] = conv(lambda s: x_ref[0, :, s:s + L],
                                  0, DILATIONS[0], relu=True)
    # Layers 2..6: ping-pong bufa <-> bufb (intermediates never leave VMEM).
    ping_pong = (bufa_ref, bufb_ref)
    for i in range(1, 6):
        src, dst = ping_pong[(i + 1) % 2], ping_pong[i % 2]
        dst[:, c0:c0 + L] = conv(lambda s, r=src: r[:, s:s + L],
                                 i, DILATIONS[i], relu=True)
    # Layer 7 (no ReLU) fused with  n = x - conv(h)  and  out = x * n.
    src = ping_pong[1]                     # layer 6 wrote bufb
    conv7 = conv(lambda s: src[:, s:s + L], 6, DILATIONS[6], relu=False)
    conv7 = conv7[:out_nc]                              # (out_nc, L)
    xin = x_ref[0, :out_nc, c0:c0 + L]                  # original x, flat grid
    o_ref[0] = xin * (xin - conv7)


def init_params(key, in_nc=3, out_nc=3, nc=16):
    """Deterministic synthetic weights for IRCNN's 7 Conv2d(3x3) layers (HWIO)."""
    chans = [in_nc] + [nc] * 6 + [out_nc]
    params = []
    for i in range(7):
        cin, cout = chans[i], chans[i + 1]
        key, kw, kb = jax.random.split(key, 3)
        std = (2.0 / (9.0 * cin)) ** 0.5
        w = std * jax.random.normal(kw, (3, 3, cin, cout), jnp.float32)
        b = 0.01 * jax.random.normal(kb, (cout,), jnp.float32)
        params.append((w, b))
    return params


def _pack_params(params):
    """Zero-pad channels to NC_PAD and flatten each layer to (Cout, 9*Cin)."""
    ws, bs = [], []
    for w, b in params:
        cin, cout = w.shape[2], w.shape[3]
        assert cin <= NC_PAD and cout <= NC_PAD
        wp = jnp.zeros((3, 3, NC_PAD, NC_PAD), jnp.float32)
        wp = wp.at[:, :, :cin, :cout].set(w.astype(jnp.float32))
        ws.append(wp.reshape(9 * NC_PAD, NC_PAD).T)        # (NC_PAD, 9*NC_PAD)
        bs.append(jnp.zeros((NC_PAD,), jnp.float32).at[:cout].set(b))
    return jnp.stack(ws), jnp.stack(bs)[:, :, None]        # (7,16,144), (7,16,1)


@jax.jit
def lircnn_forward(x_nchw, params):
    """LIRCNN.forward: n = IRCNN(x) = x - conv_stack(x); return x * n (NCHW)."""
    N, C, H, W = x_nchw.shape
    out_nc = params[-1][0].shape[3]
    assert out_nc == C, "LIRCNN gating x * n requires out_nc == in_nc"
    w_stack, b_stack = _pack_params(params)

    Hp, Wp = H + 2 * PM_H, W + 2 * PM_W
    L = H * Wp
    # Single entry-side pad: spatial zero border (conv padding for the whole
    # stack) + channel pad to NC_PAD, then flatten spatial dims into lanes.
    xpad = jnp.pad(x_nchw.astype(jnp.float32),
                   ((0, 0), (0, NC_PAD - C), (PM_H, PM_H), (PM_W, PM_W)))
    xflat = xpad.reshape(N, NC_PAD, Hp * Wp)

    kernel = functools.partial(_lircnn_fused_kernel, H=H, W=W)
    out_flat = pl.pallas_call(
        kernel,
        out_shape=jax.ShapeDtypeStruct((N, out_nc, L), jnp.float32),
        grid_spec=pltpu.PrefetchScalarGridSpec(
            num_scalar_prefetch=0,
            # TODO(synk): for large images, tile rows across the grid with a
            # 2*sum(DILATIONS)-row halo instead of one whole image per step.
            grid=(N,),
            in_specs=[
                pl.BlockSpec((1, NC_PAD, Hp * Wp), lambda n: (n, 0, 0)),
                pl.BlockSpec((7, NC_PAD, 9 * NC_PAD), lambda n: (0, 0, 0)),
                pl.BlockSpec((7, NC_PAD, 1), lambda n: (0, 0, 0)),
            ],
            out_specs=pl.BlockSpec((1, out_nc, L), lambda n: (n, 0, 0)),
            scratch_shapes=[
                pltpu.VMEM((NC_PAD, Hp * Wp), jnp.float32),   # ping
                pltpu.VMEM((NC_PAD, Hp * Wp), jnp.float32),   # pong
                pltpu.VMEM((9 * NC_PAD, L), jnp.float32),     # im2col
            ],
        ),
        compiler_params=pltpu.CompilerParams(
            dimension_semantics=("parallel",)),
    )(xflat, w_stack, b_stack)

    # Crop the W-border columns (rows are already exact); stays NCHW.
    return out_flat.reshape(N, out_nc, H, Wp)[:, :, :, PM_W:PM_W + W]


def lircnn_reference(x_nchw, params):
    """Pure-JAX reference (lax.conv_general_dilated) for validation."""
    x = jnp.transpose(x_nchw, (0, 2, 3, 1))
    h = x
    for i, d in enumerate(DILATIONS):
        w, b = params[i]
        h = lax.conv_general_dilated(
            h, w, window_strides=(1, 1), padding=((d, d), (d, d)),
            rhs_dilation=(d, d),
            dimension_numbers=("NHWC", "HWIO", "NHWC")) + b
        if i < 6:
            h = jnp.maximum(h, 0.0)
    out = x * (x - h)
    return jnp.transpose(out, (0, 3, 1, 2))


if __name__ == "__main__":
    key = jax.random.PRNGKey(0)
    kx, kp = jax.random.split(key)
    # Small shapes consistent with LIRCNN(in_nc=3, out_nc=3, nc=16): NCHW input.
    x = jax.random.normal(kx, (2, 3, 16, 16), jnp.float32)
    params = init_params(kp, in_nc=3, out_nc=3, nc=16)

    out = jax.block_until_ready(lircnn_forward(x, params))
    ref = lircnn_reference(x, params)
    err = float(jnp.max(jnp.abs(out - ref)))
    assert out.shape == x.shape, (out.shape, x.shape)
    assert err < 5e-3, f"max abs error vs reference too large: {err}"
    print("KERNEL_OK")
</pallas_src>

<mosaic_0001>
module attributes {stable_mosaic.version = 11 : i64} {
  func.func @_lircnn_fused_kernel(%arg0: i32, %arg1: memref<1x16x1024xf32, #tpu.memory_space<vmem>>, %arg2: memref<7x16x144xf32, #tpu.memory_space<vmem>>, %arg3: memref<7x16x1xf32, #tpu.memory_space<vmem>>, %arg4: memref<1x3x512xf32, #tpu.memory_space<vmem>>, %arg5: memref<16x1024xf32, #tpu.memory_space<vmem>>, %arg6: memref<16x1024xf32, #tpu.memory_space<vmem>>, %arg7: memref<144x512xf32, #tpu.memory_space<vmem>>) attributes {dimension_semantics = [#tpu.dimension_semantics<parallel>], iteration_bounds = array<i64: 2>, scalar_prefetch = 0 : i64, scratch_operands = 3 : i64, tpu.core_type = #tpu.core_type<tc>, window_params = [{transform_indices = @transform_0, window_bounds = array<i64: 1, 16, 1024>}, {pipeline_mode = #tpu.pipeline_mode<synchronous>, transform_indices = @transform_1, window_bounds = array<i64: 7, 16, 144>}, {pipeline_mode = #tpu.pipeline_mode<synchronous>, transform_indices = @transform_2, window_bounds = array<i64: 7, 16, 1>}, {transform_indices = @transform_3, window_bounds = array<i64: 1, 3, 512>}]} {
    %cst = arith.constant 0.000000e+00 : f32
    %0 = vector.broadcast %cst : f32 to vector<16x1024xf32>
    %c0 = arith.constant 0 : index
    %c0_0 = arith.constant 0 : index
    %1 = vector.load %arg5[%c0, %c0_0] : memref<16x1024xf32, #tpu.memory_space<vmem>>, vector<16x1024xf32>
    tpu.vector_store %arg5[%c0, %c0_0], %0 {strides = array<i32>} : memref<16x1024xf32, #tpu.memory_space<vmem>>, vector<16x1024xf32>,
    %cst_1 = arith.constant 0.000000e+00 : f32
    %2 = vector.broadcast %cst_1 : f32 to vector<16x1024xf32>
    %c0_2 = arith.constant 0 : index
    %c0_3 = arith.constant 0 : index
    %3 = vector.load %arg6[%c0_2, %c0_3] : memref<16x1024xf32, #tpu.memory_space<vmem>>, vector<16x1024xf32>
    tpu.vector_store %arg6[%c0_2, %c0_3], %2 {strides = array<i32>} : memref<16x1024xf32, #tpu.memory_space<vmem>>, vector<16x1024xf32>,
    %4 = tpu.iota {dimensions = array<i32: 1>} : vector<1x512xi32>
    %c32_i32 = arith.constant 32 : i32
    %c0_i32 = arith.constant 0 : i32
    %5 = arith.cmpi eq, %c32_i32, %c0_i32 : i32
    %c1_i32 = arith.constant 1 : i32
    %6 = arith.select %5, %c1_i32, %c32_i32 : i32
    %7 = vector.broadcast %6 : i32 to vector<1x512xi32>
    %8 = arith.remsi %4, %7 : vector<1x512xi32>
    %c0_i32_4 = arith.constant 0 : i32
    %9 = vector.broadcast %c0_i32_4 : i32 to vector<1x512xi32>
    %10 = arith.cmpi ne, %8, %9 : vector<1x512xi32>
    %c0_i32_5 = arith.constant 0 : i32
    %11 = vector.broadcast %c0_i32_5 : i32 to vector<1x512xi32>
    %12 = arith.cmpi slt, %8, %11 : vector<1x512xi32>
    %c0_i32_6 = arith.constant 0 : i32
    %13 = arith.cmpi slt, %6, %c0_i32_6 : i32
    %14 = vector.broadcast %13 : i1 to vector<1x512xi1>
    %15 = vector.broadcast %14 : vector<1x512xi1> to vector<1x512xi1>
    %16 = arith.xori %12, %15 : vector<1x512xi1>
    %17 = arith.andi %16, %10 : vector<1x512xi1>
    %18 = vector.broadcast %6 : i32 to vector<1x512xi32>
    %19 = arith.addi %8, %18 : vector<1x512xi32>
    %20 = arith.select %17, %19, %8 : vector<1x512xi1>, vector<1x512xi32>
    %c8_i32 = arith.constant 8 : i32
    %21 = vector.broadcast %c8_i32 : i32 to vector<1x512xi32>
    %22 = arith.cmpi sge, %20, %21 : vector<1x512xi32>
    %c24_i32 = arith.constant 24 : i32
    %23 = vector.broadcast %c24_i32 : i32 to vector<1x512xi32>
    %24 = arith.cmpi slt, %20, %23 : vector<1x512xi32>
    %25 = arith.andi %22, %24 : vector<1x512xi1>
    %c0_7 = arith.constant 0 : index
    %c0_8 = arith.constant 0 : index
    %c223 = arith.constant 223 : index
    %26 = vector.load %arg1[%c0_7, %c0_8, %c223] : memref<1x16x1024xf32, #tpu.memory_space<vmem>>, vector<1x16x512xf32>
    %27 = vector.shape_cast %26 : vector<1x16x512xf32> to vector<16x512xf32>
    %c0_9 = arith.constant 0 : index
    %c0_10 = arith.constant 0 : index
    %28 = vector.load %arg7[%c0_9, %c0_10] : memref<144x512xf32, #tpu.memory_space<vmem>>, vector<16x512xf32>
    tpu.vector_store %arg7[%c0_9, %c0_10], %27 {strides = array<i32>} : memref<144x512xf32, #tpu.memory_space<vmem>>, vector<16x512xf32>,
    %c0_11 = arith.constant 0 : index
    %c0_12 = arith.constant 0 : index
    %c224 = arith.constant 224 : index
    %29 = vector.load %arg1[%c0_11, %c0_12, %c224] : memref<1x16x1024xf32, #tpu.memory_space<vmem>>, vector<1x16x512xf32>
    %30 = vector.shape_cast %29 : vector<1x16x512xf32> to vector<16x512xf32>
    %c16 = arith.constant 16 : index
    %c0_13 = arith.constant 0 : index
    %31 = vector.load %arg7[%c16, %c0_13] : memref<144x512xf32, #tpu.memory_space<vmem>>, vector<16x512xf32>
    tpu.vector_store %arg7[%c16, %c0_13], %30 {strides = array<i32>} : memref<144x512xf32, #tpu.memory_space<vmem>>, vector<16x512xf32>,
    %c0_14 = arith.constant 0 : index
    %c0_15 = arith.constant 0 : index
    %c225 = arith.constant 225 : index
    %32 = vector.load %arg1[%c0_14, %c0_15, %c225] : memref<1x16x1024xf32, #tpu.memory_space<vmem>>, vector<1x16x512xf32>
    %33 = vector.shape_cast %32 : vector<1x16x512xf32> to vector<16x512xf32>
    %c32 = arith.constant 32 : index
    %c0_16 = arith.constant 0 : index
    %34 = vector.load %arg7[%c32, %c0_16] : memref<144x512xf32, #tpu.memory_space<vmem>>, vector<16x512xf32>
    tpu.vector_store %arg7[%c32, %c0_16], %33 {strides = array<i32>} : memref<144x512xf32, #tpu.memory_space<vmem>>, vector<16x512xf32>,
    %c0_17 = arith.constant 0 : index
    %c0_18 = arith.constant 0 : index
    %c255 = arith.constant 255 : index
    %35 = vector.load %arg1[%c0_17, %c0_18, %c255] : memref<1x16x1024xf32, #tpu.memory_space<vmem>>, vector<1x16x512xf32>
    %36 = vector.shape_cast %35 : vector<1x16x512xf32> to vector<16x512xf32>
    %c48 = arith.constant 48 : index
    %c0_19 = arith.constant 0 : index
    %37 = vector.load %arg7[%c48, %c0_19] : memref<144x512xf32, #tpu.memory_space<vmem>>, vector<16x512xf32>
    tpu.vector_store %arg7[%c48, %c0_19], %36 {strides = array<i32>} : memref<144x512xf32, #tpu.memory_space<vmem>>, vector<16x512xf32>,
    %c0_20 = arith.constant 0 : index
    %c0_21 = arith.constant 0 : index
    %c256 = arith.constant 256 : index
    %38 = vector.load %arg1[%c0_20, %c0_21, %c256] : memref<1x16x1024xf32, #tpu.memory_space<vmem>>, vector<1x16x512xf32>
    %39 = vector.shape_cast %38 : vector<1x16x512xf32> to vector<16x512xf32>
    %c64 = arith.constant 64 : index
    %c0_22 = arith.constant 0 : index
    %40 = vector.load %arg7[%c64, %c0_22] : memref<144x512xf32, #tpu.memory_space<vmem>>, vector<16x512xf32>
    tpu.vector_store %arg7[%c64, %c0_22], %39 {strides = array<i32>} : memref<144x512xf32, #tpu.memory_space<vmem>>, vector<16x512xf32>,
    %c0_23 = arith.constant 0 : index
    %c0_24 = arith.constant 0 : index
    %c257 = arith.constant 257 : index
    %41 = vector.load %arg1[%c0_23, %c0_24, %c257] : memref<1x16x1024xf32, #tpu.memory_space<vmem>>, vector<1x16x512xf32>
    %42 = vector.shape_cast %41 : vector<1x16x512xf32> to vector<16x512xf32>
    %c80 = arith.constant 80 : index
    %c0_25 = arith.constant 0 : index
    %43 = vector.load %arg7[%c80, %c0_25] : memref<144x512xf32, #tpu.memory_space<vmem>>, vector<16x512xf32>
    tpu.vector_store %arg7[%c80, %c0_25], %42 {strides = array<i32>} : memref<144x512xf32, #tpu.memory_space<vmem>>, vector<16x512xf32>,
    %c0_26 = arith.constant 0 : index
    %c0_27 = arith.constant 0 : index
    %c287 = arith.constant 287 : index
    %44 = vector.load %arg1[%c0_26, %c0_27, %c287] : memref<1x16x1024xf32, #tpu.memory_space<vmem>>, vector<1x16x512xf32>
    %45 = vector.shape_cast %44 : vector<1x16x512xf32> to vector<16x512xf32>
    %c96 = arith.constant 96 : index
    %c0_28 = arith.constant 0 : index
    %46 = vector.load %arg7[%c96, %c0_28] : memref<144x512xf32, #tpu.memory_space<vmem>>, vector<16x512xf32>
    tpu.vector_store %arg7[%c96, %c0_28], %45 {strides = array<i32>} : memref<144x512xf32, #tpu.memory_space<vmem>>, vector<16x512xf32>,
    %c0_29 = arith.constant 0 : index
    %c0_30 = arith.constant 0 : index
    %c288 = arith.constant 288 : index
    %47 = vector.load %arg1[%c0_29, %c0_30, %c288] : memref<1x16x1024xf32, #tpu.memory_space<vmem>>, vector<1x16x512xf32>
    %48 = vector.shape_cast %47 : vector<1x16x512xf32> to vector<16x512xf32>
    %c112 = arith.constant 112 : index
    %c0_31 = arith.constant 0 : index
    %49 = vector.load %arg7[%c112, %c0_31] : memref<144x512xf32, #tpu.memory_space<vmem>>, vector<16x512xf32>
    tpu.vector_store %arg7[%c112, %c0_31], %48 {strides = array<i32>} : memref<144x512xf32, #tpu.memory_space<vmem>>, vector<16x512xf32>,
    %c0_32 = arith.constant 0 : index
    %c0_33 = arith.constant 0 : index
    %c289 = arith.constant 289 : index
    %50 = vector.load %arg1[%c0_32, %c0_33, %c289] : memref<1x16x1024xf32, #tpu.memory_space<vmem>>, vector<1x16x512xf32>
    %51 = vector.shape_cast %50 : vector<1x16x512xf32> to vector<16x512xf32>
    %c128 = arith.constant 128 : index
    %c0_34 = arith.constant 0 : index
    %52 = vector.load %arg7[%c128, %c0_34] : memref<144x512xf32, #tpu.memory_space<vmem>>, vector<16x512xf32>
    tpu.vector_store %arg7[%c128, %c0_34], %51 {strides = array<i32>} : memref<144x512xf32, #tpu.memory_space<vmem>>, vector<16x512xf32>,
    %c0_35 = arith.constant 0 : index
    %c0_36 = arith.constant 0 : index
    %c0_37 = arith.constant 0 : index
    %53 = vector.load %arg2[%c0_35, %c0_36, %c0_37] : memref<7x16x144xf32, #tpu.memory_space<vmem>>, vector<1x16x144xf32>
    %54 = vector.shape_cast %53 : vector<1x16x144xf32> to vector<16x144xf32>
    %c0_38 = arith.constant 0 : index
    %c0_39 = arith.constant 0 : index
    %55 = vector.load %arg7[%c0_38, %c0_39] : memref<144x512xf32, #tpu.memory_space<vmem>>, vector<144x512xf32>
    %cst_40 = arith.constant dense<0.000000e+00> : vector<16x512xf32>
    %56 = tpu.matmul %54, %55, %cst_40 {dimension_numbers = #tpu.dot_dimension_numbers<[1], [0], [0], [1], [0, 0, 1, 1], [], []>} : vector<16x144xf32>, vector<144x512xf32>, vector<16x512xf32> -> vector<16x512xf32>
    %c0_41 = arith.constant 0 : index
    %c0_42 = arith.constant 0 : index
    %c0_43 = arith.constant 0 : index
    %57 = vector.load %arg3[%c0_41, %c0_42, %c0_43] : memref<7x16x1xf32, #tpu.memory_space<vmem>>, vector<1x16x1xf32>
    %58 = vector.shape_cast %57 : vector<1x16x1xf32> to vector<16x1xf32>
    %59 = vector.broadcast %58 : vector<16x1xf32> to vector<16x512xf32>
    %60 = arith.addf %56, %59 : vector<16x512xf32>
    %cst_44 = arith.constant 0.000000e+00 : f32
    %61 = vector.broadcast %cst_44 : f32 to vector<16x512xf32>
    %62 = arith.maximumf %60, %61 : vector<16x512xf32>
    %cst_45 = arith.constant 0.000000e+00 : f32
    %63 = vector.shape_cast %25 : vector<1x512xi1> to vector<1x512xi1>
    %64 = vector.broadcast %63 : vector<1x512xi1> to vector<16x512xi1>
    %65 = vector.broadcast %cst_45 : f32 to vector<16x512xf32>
    %66 = arith.select %64, %62, %65 : vector<16x512xi1>, vector<16x512xf32>
    %c0_46 = arith.constant 0 : index
    %c256_47 = arith.constant 256 : index
    %67 = vector.load %arg5[%c0_46, %c256_47] : memref<16x1024xf32, #tpu.memory_space<vmem>>, vector<16x512xf32>
    tpu.vector_store %arg5[%c0_46, %c256_47], %66 {strides = array<i32>} : memref<16x1024xf32, #tpu.memory_space<vmem>>, vector<16x512xf32>,
    %c0_48 = arith.constant 0 : index
    %c190 = arith.constant 190 : index
    %68 = vector.load %arg5[%c0_48, %c190] : memref<16x1024xf32, #tpu.memory_space<vmem>>, vector<16x512xf32>
    %c0_49 = arith.constant 0 : index
    %c0_50 = arith.constant 0 : index
    %69 = vector.load %arg7[%c0_49, %c0_50] : memref<144x512xf32, #tpu.memory_space<vmem>>, vector<16x512xf32>
    tpu.vector_store %arg7[%c0_49, %c0_50], %68 {strides = array<i32>} : memref<144x512xf32, #tpu.memory_space<vmem>>, vector<16x512xf32>,
    %c0_51 = arith.constant 0 : index
    %c192 = arith.constant 192 : index
    %70 = vector.load %arg5[%c0_51, %c192] : memref<16x1024xf32, #tpu.memory_space<vmem>>, vector<16x512xf32>
    %c16_52 = arith.constant 16 : index
    %c0_53 = arith.constant 0 : index
    %71 = vector.load %arg7[%c16_52, %c0_53] : memref<144x512xf32, #tpu.memory_space<vmem>>, vector<16x512xf32>
    tpu.vector_store %arg7[%c16_52, %c0_53], %70 {strides = array<i32>} : memref<144x512xf32, #tpu.memory_space<vmem>>, vector<16x512xf32>,
    %c0_54 = arith.constant 0 : index
    %c194 = arith.constant 194 : index
    %72 = vector.load %arg5[%c0_54, %c194] : memref<16x1024xf32, #tpu.memory_space<vmem>>, vector<16x512xf32>
    %c32_55 = arith.constant 32 : index
    %c0_56 = arith.constant 0 : index
    %73 = vector.load %arg7[%c32_55, %c0_56] : memref<144x512xf32, #tpu.memory_space<vmem>>, vector<16x512xf32>
    tpu.vector_store %arg7[%c32_55, %c0_56], %72 {strides = array<i32>} : memref<144x512xf32, #tpu.memory_space<vmem>>, vector<16x512xf32>,
    %c0_57 = arith.constant 0 : index
    %c254 = arith.constant 254 : index
    %74 = vector.load %arg5[%c0_57, %c254] : memref<16x1024xf32, #tpu.memory_space<vmem>>, vector<16x512xf32>
    %c48_58 = arith.constant 48 : index
    %c0_59 = arith.constant 0 : index
    %75 = vector.load %arg7[%c48_58, %c0_59] : memref<144x512xf32, #tpu.memory_space<vmem>>, vector<16x512xf32>
    tpu.vector_store %arg7[%c48_58, %c0_59], %74 {strides = array<i32>} : memref<144x512xf32, #tpu.memory_space<vmem>>, vector<16x512xf32>,
    %c0_60 = arith.constant 0 : index
    %c256_61 = arith.constant 256 : index
    %76 = vector.load %arg5[%c0_60, %c256_61] : memref<16x1024xf32, #tpu.memory_space<vmem>>, vector<16x512xf32>
    %c64_62 = arith.constant 64 : index
    %c0_63 = arith.constant 0 : index
    %77 = vector.load %arg7[%c64_62, %c0_63] : memref<144x512xf32, #tpu.memory_space<vmem>>, vector<16x512xf32>
    tpu.vector_store %arg7[%c64_62, %c0_63], %76 {strides = array<i32>} : memref<144x512xf32, #tpu.memory_space<vmem>>, vector<16x512xf32>,
    %c0_64 = arith.constant 0 : index
    %c258 = arith.constant 258 : index
    %78 = vector.load %arg5[%c0_64, %c258] : memref<16x1024xf32, #tpu.memory_space<vmem>>, vector<16x512xf32>
    %c80_65 = arith.constant 80 : index
    %c0_66 = arith.constant 0 : index
    %79 = vector.load %arg7[%c80_65, %c0_66] : memref<144x512xf32, #tpu.memory_space<vmem>>, vector<16x512xf32>
    tpu.vector_store %arg7[%c80_65, %c0_66], %78 {strides = array<i32>} : memref<144x512xf32, #tpu.memory_space<vmem>>, vector<16x512xf32>,
    %c0_67 = arith.constant 0 : index
    %c318 = arith.constant 318 : index
    %80 = vector.load %arg5[%c0_67, %c318] : memref<16x1024xf32, #tpu.memory_space<vmem>>, vector<16x512xf32>
    %c96_68 = arith.constant 96 : index
    %c0_69 = arith.constant 0 : index
    %81 = vector.load %arg7[%c96_68, %c0_69] : memref<144x512xf32, #tpu.memory_space<vmem>>, vector<16x512xf32>
    tpu.vector_store %arg7[%c96_68, %c0_69], %80 {strides = array<i32>} : memref<144x512xf32, #tpu.memory_space<vmem>>, vector<16x512xf32>,
    %c0_70 = arith.constant 0 : index
    %c320 = arith.constant 320 : index
    %82 = vector.load %arg5[%c0_70, %c320] : memref<16x1024xf32, #tpu.memory_space<vmem>>, vector<16x512xf32>
    %c112_71 = arith.constant 112 : index
    %c0_72 = arith.constant 0 : index
    %83 = vector.load %arg7[%c112_71, %c0_72] : memref<144x512xf32, #tpu.memory_space<vmem>>, vector<16x512xf32>
    tpu.vector_store %arg7[%c112_71, %c0_72], %82 {strides = array<i32>} : memref<144x512xf32, #tpu.memory_space<vmem>>, vector<16x512xf32>,
    %c0_73 = arith.constant 0 : index
    %c322 = arith.constant 322 : index
    %84 = vector.load %arg5[%c0_73, %c322] : memref<16x1024xf32, #tpu.memory_space<vmem>>, vector<16x512xf32>
    %c128_74 = arith.constant 128 : index
    %c0_75 = arith.constant 0 : index
    %85 = vector.load %arg7[%c128_74, %c0_75] : memref<144x512xf32, #tpu.memory_space<vmem>>, vector<16x512xf32>
    tpu.vector_store %arg7[%c128_74, %c0_75], %84 {strides = array<i32>} : memref<144x512xf32, #tpu.memory_space<vmem>>, vector<16x512xf32>,
    %c1 = arith.constant 1 : index
    %c0_76 = arith.constant 0 : index
    %c0_77 = arith.constant 0 : index
    %86 = vector.load %arg2[%c1, %c0_76, %c0_77] : memref<7x16x144xf32, #tpu.memory_space<vmem>>, vector<1x16x144xf32>
    %87 = vector.shape_cast %86 : vector<1x16x144xf32> to vector<16x144xf32>
    %c0_78 = arith.constant 0 : index
    %c0_79 = arith.constant 0 : index
    %88 = vector.load %arg7[%c0_78, %c0_79] : memref<144x512xf32, #tpu.memory_space<vmem>>, vector<144x512xf32>
    %cst_80 = arith.constant dense<0.000000e+00> : vector<16x512xf32>
    %89 = tpu.matmul %87, %88, %cst_80 {dimension_numbers = #tpu.dot_dimension_numbers<[1], [0], [0], [1], [0, 0, 1, 1], [], []>} : vector<16x144xf32>, vector<144x512xf32>, vector<16x512xf32> -> vector<16x512xf32>
    %c1_81 = arith.constant 1 : index
    %c0_82 = arith.constant 0 : index
    %c0_83 = arith.constant 0 : index
    %90 = vector.load %arg3[%c1_81, %c0_82, %c0_83] : memref<7x16x1xf32, #tpu.memory_space<vmem>>, vector<1x16x1xf32>
    %91 = vector.shape_cast %90 : vector<1x16x1xf32> to vector<16x1xf32>
    %92 = vector.broadcast %91 : vector<16x1xf32> to vector<16x512xf32>
    %93 = arith.addf %89, %92 : vector<16x512xf32>
    %cst_84 = arith.constant 0.000000e+00 : f32
    %94 = vector.broadcast %cst_84 : f32 to vector<16x512xf32>
    %95 = arith.maximumf %93, %94 : vector<16x512xf32>
    %cst_85 = arith.constant 0.000000e+00 : f32
    %96 = vector.shape_cast %25 : vector<1x512xi1> to vector<1x512xi1>
    %97 = vector.broadcast %96 : vector<1x512xi1> to vector<16x512xi1>
    %98 = vector.broadcast %cst_85 : f32 to vector<16x512xf32>
    %99 = arith.select %97, %95, %98 : vector<16x512xi1>, vector<16x512xf32>
    %c0_86 = arith.constant 0 : index
    %c256_87 = arith.constant 256 : index
    %100 = vector.load %arg6[%c0_86, %c256_87] : memref<16x1024xf32, #tpu.memory_space<vmem>>, vector<16x512xf32>
    tpu.vector_store %arg6[%c0_86, %c256_87], %99 {strides = array<i32>} : memref<16x1024xf32, #tpu.memory_space<vmem>>, vector<16x512xf32>,
    %c0_88 = arith.constant 0 : index
    %c157 = arith.constant 157 : index
    %101 = vector.load %arg6[%c0_88, %c157] : memref<16x1024xf32, #tpu.memory_space<vmem>>, vector<16x512xf32>
    %c0_89 = arith.constant 0 : index
    %c0_90 = arith.constant 0 : index
    %102 = vector.load %arg7[%c0_89, %c0_90] : memref<144x512xf32, #tpu.memory_space<vmem>>, vector<16x512xf32>
    tpu.vector_store %arg7[%c0_89, %c0_90], %101 {strides = array<i32>} : memref<144x512xf32, #tpu.memory_space<vmem>>, vector<16x512xf32>,
    %c0_91 = arith.constant 0 : index
    %c160 = arith.constant 160 : index
    %103 = vector.load %arg6[%c0_91, %c160] : memref<16x1024xf32, #tpu.memory_space<vmem>>, vector<16x512xf32>
    %c16_92 = arith.constant 16 : index
    %c0_93 = arith.constant 0 : index
    %104 = vector.load %arg7[%c16_92, %c0_93] : memref<144x512xf32, #tpu.memory_space<vmem>>, vector<16x512xf32>
    tpu.vector_store %arg7[%c16_92, %c0_93], %103 {strides = array<i32>} : memref<144x512xf32, #tpu.memory_space<vmem>>, vector<16x512xf32>,
    %c0_94 = arith.constant 0 : index
    %c163 = arith.constant 163 : index
    %105 = vector.load %arg6[%c0_94, %c163] : memref<16x1024xf32, #tpu.memory_space<vmem>>, vector<16x512xf32>
    %c32_95 = arith.constant 32 : index
    %c0_96 = arith.constant 0 : index
    %106 = vector.load %arg7[%c32_95, %c0_96] : memref<144x512xf32, #tpu.memory_space<vmem>>, vector<16x512xf32>
    tpu.vector_store %arg7[%c32_95, %c0_96], %105 {strides = array<i32>} : memref<144x512xf32, #tpu.memory_space<vmem>>, vector<16x512xf32>,
    %c0_97 = arith.constant 0 : index
    %c253 = arith.constant 253 : index
    %107 = vector.load %arg6[%c0_97, %c253] : memref<16x1024xf32, #tpu.memory_space<vmem>>, vector<16x512xf32>
    %c48_98 = arith.constant 48 : index
    %c0_99 = arith.constant 0 : index
    %108 = vector.load %arg7[%c48_98, %c0_99] : memref<144x512xf32, #tpu.memory_space<vmem>>, vector<16x512xf32>
    tpu.vector_store %arg7[%c48_98, %c0_99], %107 {strides = array<i32>} : memref<144x512xf32, #tpu.memory_space<vmem>>, vector<16x512xf32>,
    %c0_100 = arith.constant 0 : index
    %c256_101 = arith.constant 256 : index
    %109 = vector.load %arg6[%c0_100, %c256_101] : memref<16x1024xf32, #tpu.memory_space<vmem>>, vector<16x512xf32>
    %c64_102 = arith.constant 64 : index
    %c0_103 = arith.constant 0 : index
    %110 = vector.load %arg7[%c64_102, %c0_103] : memref<144x512xf32, #tpu.memory_space<vmem>>, vector<16x512xf32>
    tpu.vector_store %arg7[%c64_102, %c0_103], %109 {strides = array<i32>} : memref<144x512xf32, #tpu.memory_space<vmem>>, vector<16x512xf32>,
    %c0_104 = arith.constant 0 : index
    %c259 = arith.constant 259 : index
    %111 = vector.load %arg6[%c0_104, %c259] : memref<16x1024xf32, #tpu.memory_space<vmem>>, vector<16x512xf32>
    %c80_105 = arith.constant 80 : index
    %c0_106 = arith.constant 0 : index
    %112 = vector.load %arg7[%c80_105, %c0_106] : memref<144x512xf32, #tpu.memory_space<vmem>>, vector<16x512xf32>
    tpu.vector_store %arg7[%c80_105, %c0_106], %111 {strides = array<i32>} : memref<144x512xf32, #tpu.memory_space<vmem>>, vector<16x512xf32>,
    %c0_107 = arith.constant 0 : index
    %c349 = arith.constant 349 : index
    %113 = vector.load %arg6[%c0_107, %c349] : memref<16x1024xf32, #tpu.memory_space<vmem>>, vector<16x512xf32>
    %c96_108 = arith.constant 96 : index
    %c0_109 = arith.constant 0 : index
    %114 = vector.load %arg7[%c96_108, %c0_109] : memref<144x512xf32, #tpu.memory_space<vmem>>, vector<16x512xf32>
    tpu.vector_store %arg7[%c96_108, %c0_109], %113 {strides = array<i32>} : memref<144x512xf32, #tpu.memory_space<vmem>>, vector<16x512xf32>,
    %c0_110 = arith.constant 0 : index
    %c352 = arith.constant 352 : index
    %115 = vector.load %arg6[%c0_110, %c352] : memref<16x1024xf32, #tpu.memory_space<vmem>>, vector<16x512xf32>
    %c112_111 = arith.constant 112 : index
    %c0_112 = arith.constant 0 : index
    %116 = vector.load %arg7[%c112_111, %c0_112] : memref<144x512xf32, #tpu.memory_space<vmem>>, vector<16x512xf32>
    tpu.vector_store %arg7[%c112_111, %c0_112], %115 {strides = array<i32>} : memref<144x512xf32, #tpu.memory_space<vmem>>, vector<16x512xf32>,
    %c0_113 = arith.constant 0 : index
    %c355 = arith.constant 355 : index
    %117 = vector.load %arg6[%c0_113, %c355] : memref<16x1024xf32, #tpu.memory_space<vmem>>, vector<16x512xf32>
    %c128_114 = arith.constant 128 : index
    %c0_115 = arith.constant 0 : index
    %118 = vector.load %arg7[%c128_114, %c0_115] : memref<144x512xf32, #tpu.memory_space<vmem>>, vector<16x512xf32>
    tpu.vector_store %arg7[%c128_114, %c0_115], %117 {strides = array<i32>} : memref<144x512xf32, #tpu.memory_space<vmem>>, vector<16x512xf32>,
    %c2 = arith.constant 2 : index
    %c0_116 = arith.constant 0 : index
    %c0_117 = arith.constant 0 : index
    %119 = vector.load %arg2[%c2, %c0_116, %c0_117] : memref<7x16x144xf32, #tpu.memory_space<vmem>>, vector<1x16x144xf32>
    %120 = vector.shape_cast %119 : vector<1x16x144xf32> to vector<16x144xf32>
    %c0_118 = arith.constant 0 : index
    %c0_119 = arith.constant 0 : index
    %121 = vector.load %arg7[%c0_118, %c0_119] : memref<144x512xf32, #tpu.memory_space<vmem>>, vector<144x512xf32>
    %cst_120 = arith.constant dense<0.000000e+00> : vector<16x512xf32>
    %122 = tpu.matmul %120, %121, %cst_120 {dimension_numbers = #tpu.dot_dimension_numbers<[1], [0], [0], [1], [0, 0, 1, 1], [], []>} : vector<16x144xf32>, vector<144x512xf32>, vector<16x512xf32> -> vector<16x512xf32>
    %c2_121 = arith.constant 2 : index
    %c0_122 = arith.constant 0 : index
    %c0_123 = arith.constant 0 : index
    %123 = vector.load %arg3[%c2_121, %c0_122, %c0_123] : memref<7x16x1xf32, #tpu.memory_space<vmem>>, vector<1x16x1xf32>
    %124 = vector.shape_cast %123 : vector<1x16x1xf32> to vector<16x1xf32>
    %125 = vector.broadcast %124 : vector<16x1xf32> to vector<16x512xf32>
    %126 = arith.addf %122, %125 : vector<16x512xf32>
    %cst_124 = arith.constant 0.000000e+00 : f32
    %127 = vector.broadcast %cst_124 : f32 to vector<16x512xf32>
    %128 = arith.maximumf %126, %127 : vector<16x512xf32>
    %cst_125 = arith.constant 0.000000e+00 : f32
    %129 = vector.shape_cast %25 : vector<1x512xi1> to vector<1x512xi1>
    %130 = vector.broadcast %129 : vector<1x512xi1> to vector<16x512xi1>
    %131 = vector.broadcast %cst_125 : f32 to vector<16x512xf32>
    %132 = arith.select %130, %128, %131 : vector<16x512xi1>, vector<16x512xf32>
    %c0_126 = arith.constant 0 : index
    %c256_127 = arith.constant 256 : index
    %133 = vector.load %arg5[%c0_126, %c256_127] : memref<16x1024xf32, #tpu.memory_space<vmem>>, vector<16x512xf32>
    tpu.vector_store %arg5[%c0_126, %c256_127], %132 {strides = array<i32>} : memref<16x1024xf32, #tpu.memory_space<vmem>>, vector<16x512xf32>,
    %c0_128 = arith.constant 0 : index
    %c124 = arith.constant 124 : index
    %134 = vector.load %arg5[%c0_128, %c124] : memref<16x1024xf32, #tpu.memory_space<vmem>>, vector<16x512xf32>
    %c0_129 = arith.constant 0 : index
    %c0_130 = arith.constant 0 : index
    %135 = vector.load %arg7[%c0_129, %c0_130] : memref<144x512xf32, #tpu.memory_space<vmem>>, vector<16x512xf32>
    tpu.vector_store %arg7[%c0_129, %c0_130], %134 {strides = array<i32>} : memref<144x512xf32, #tpu.memory_space<vmem>>, vector<16x512xf32>,
    %c0_131 = arith.constant 0 : index
    %c128_132 = arith.constant 128 : index
    %136 = vector.load %arg5[%c0_131, %c128_132] : memref<16x1024xf32, #tpu.memory_space<vmem>>, vector<16x512xf32>
    %c16_133 = arith.constant 16 : index
    %c0_134 = arith.constant 0 : index
    %137 = vector.load %arg7[%c16_133, %c0_134] : memref<144x512xf32, #tpu.memory_space<vmem>>, vector<16x512xf32>
    tpu.vector_store %arg7[%c16_133, %c0_134], %136 {strides = array<i32>} : memref<144x512xf32, #tpu.memory_space<vmem>>, vector<16x512xf32>,
    %c0_135 = arith.constant 0 : index
    %c132 = arith.constant 132 : index
    %138 = vector.load %arg5[%c0_135, %c132] : memref<16x1024xf32, #tpu.memory_space<vmem>>, vector<16x512xf32>
    %c32_136 = arith.constant 32 : index
    %c0_137 = arith.constant 0 : index
    %139 = vector.load %arg7[%c32_136, %c0_137] : memref<144x512xf32, #tpu.memory_space<vmem>>, vector<16x512xf32>
    tpu.vector_store %arg7[%c32_136, %c0_137], %138 {strides = array<i32>} : memref<144x512xf32, #tpu.memory_space<vmem>>, vector<16x512xf32>,
    %c0_138 = arith.constant 0 : index
    %c252 = arith.constant 252 : index
    %140 = vector.load %arg5[%c0_138, %c252] : memref<16x1024xf32, #tpu.memory_space<vmem>>, vector<16x512xf32>
    %c48_139 = arith.constant 48 : index
    %c0_140 = arith.constant 0 : index
    %141 = vector.load %arg7[%c48_139, %c0_140] : memref<144x512xf32, #tpu.memory_space<vmem>>, vector<16x512xf32>
    tpu.vector_store %arg7[%c48_139, %c0_140], %140 {strides = array<i32>} : memref<144x512xf32, #tpu.memory_space<vmem>>, vector<16x512xf32>,
    %c0_141 = arith.constant 0 : index
    %c256_142 = arith.constant 256 : index
    %142 = vector.load %arg5[%c0_141, %c256_142] : memref<16x1024xf32, #tpu.memory_space<vmem>>, vector<16x512xf32>
    %c64_143 = arith.constant 64 : index
    %c0_144 = arith.constant 0 : index
    %143 = vector.load %arg7[%c64_143, %c0_144] : memref<144x512xf32, #tpu.memory_space<vmem>>, vector<16x512xf32>
    tpu.vector_store %arg7[%c64_143, %c0_144], %142 {strides = array<i32>} : memref<144x512xf32, #tpu.memory_space<vmem>>, vector<16x512xf32>,
    %c0_145 = arith.constant 0 : index
    %c260 = arith.constant 260 : index
    %144 = vector.load %arg5[%c0_145, %c260] : memref<16x1024xf32, #tpu.memory_space<vmem>>, vector<16x512xf32>
    %c80_146 = arith.constant 80 : index
    %c0_147 = arith.constant 0 : index
    %145 = vector.load %arg7[%c80_146, %c0_147] : memref<144x512xf32, #tpu.memory_space<vmem>>, vector<16x512xf32>
    tpu.vector_store %arg7[%c80_146, %c0_147], %144 {strides = array<i32>} : memref<144x512xf32, #tpu.memory_space<vmem>>, vector<16x512xf32>,
    %c0_148 = arith.constant 0 : index
    %c380 = arith.constant 380 : index
    %146 = vector.load %arg5[%c0_148, %c380] : memref<16x1024xf32, #tpu.memory_space<vmem>>, vector<16x512xf32>
    %c96_149 = arith.constant 96 : index
    %c0_150 = arith.constant 0 : index
    %147 = vector.load %arg7[%c96_149, %c0_150] : memref<144x512xf32, #tpu.memory_space<vmem>>, vector<16x512xf32>
    tpu.vector_store %arg7[%c96_149, %c0_150], %146 {strides = array<i32>} : memref<144x512xf32, #tpu.memory_space<vmem>>, vector<16x512xf32>,
    %c0_151 = arith.constant 0 : index
    %c384 = arith.constant 384 : index
    %148 = vector.load %arg5[%c0_151, %c384] : memref<16x1024xf32, #tpu.memory_space<vmem>>, vector<16x512xf32>
    %c112_152 = arith.constant 112 : index
    %c0_153 = arith.constant 0 : index
    %149 = vector.load %arg7[%c112_152, %c0_153] : memref<144x512xf32, #tpu.memory_space<vmem>>, vector<16x512xf32>
    tpu.vector_store %arg7[%c112_152, %c0_153], %148 {strides = array<i32>} : memref<144x512xf32, #tpu.memory_space<vmem>>, vector<16x512xf32>,
    %c0_154 = arith.constant 0 : index
    %c388 = arith.constant 388 : index
    %150 = vector.load %arg5[%c0_154, %c388] : memref<16x1024xf32, #tpu.memory_space<vmem>>, vector<16x512xf32>
    %c128_155 = arith.constant 128 : index
    %c0_156 = arith.constant 0 : index
    %151 = vector.load %arg7[%c128_155, %c0_156] : memref<144x512xf32, #tpu.memory_space<vmem>>, vector<16x512xf32>
    tpu.vector_store %arg7[%c128_155, %c0_156], %150 {strides = array<i32>} : memref<144x512xf32, #tpu.memory_space<vmem>>, vector<16x512xf32>,
    %c3 = arith.constant 3 : index
    %c0_157 = arith.constant 0 : index
    %c0_158 = arith.constant 0 : index
    %152 = vector.load %arg2[%c3, %c0_157, %c0_158] : memref<7x16x144xf32, #tpu.memory_space<vmem>>, vector<1x16x144xf32>
    %153 = vector.shape_cast %152 : vector<1x16x144xf32> to vector<16x144xf32>
    %c0_159 = arith.constant 0 : index
    %c0_160 = arith.constant 0 : index
    %154 = vector.load %arg7[%c0_159, %c0_160] : memref<144x512xf32, #tpu.memory_space<vmem>>, vector<144x512xf32>
    %cst_161 = arith.constant dense<0.000000e+00> : vector<16x512xf32>
    %155 = tpu.matmul %153, %154, %cst_161 {dimension_numbers = #tpu.dot_dimension_numbers<[1], [0], [0], [1], [0, 0, 1, 1], [], []>} : vector<16x144xf32>, vector<144x512xf32>, vector<16x512xf32> -> vector<16x512xf32>
    %c3_162 = arith.constant 3 : index
    %c0_163 = arith.constant 0 : index
    %c0_164 = arith.constant 0 : index
    %156 = vector.load %arg3[%c3_162, %c0_163, %c0_164] : memref<7x16x1xf32, #tpu.memory_space<vmem>>, vector<1x16x1xf32>
    %157 = vector.shape_cast %156 : vector<1x16x1xf32> to vector<16x1xf32>
    %158 = vector.broadcast %157 : vector<16x1xf32> to vector<16x512xf32>
    %159 = arith.addf %155, %158 : vector<16x512xf32>
    %cst_165 = arith.constant 0.000000e+00 : f32
    %160 = vector.broadcast %cst_165 : f32 to vector<16x512xf32>
    %161 = arith.maximumf %159, %160 : vector<16x512xf32>
    %cst_166 = arith.constant 0.000000e+00 : f32
    %162 = vector.shape_cast %25 : vector<1x512xi1> to vector<1x512xi1>
    %163 = vector.broadcast %162 : vector<1x512xi1> to vector<16x512xi1>
    %164 = vector.broadcast %cst_166 : f32 to vector<16x512xf32>
    %165 = arith.select %163, %161, %164 : vector<16x512xi1>, vector<16x512xf32>
    %c0_167 = arith.constant 0 : index
    %c256_168 = arith.constant 256 : index
    %166 = vector.load %arg6[%c0_167, %c256_168] : memref<16x1024xf32, #tpu.memory_space<vmem>>, vector<16x512xf32>
    tpu.vector_store %arg6[%c0_167, %c256_168], %165 {strides = array<i32>} : memref<16x1024xf32, #tpu.memory_space<vmem>>, vector<16x512xf32>,
    %c0_169 = arith.constant 0 : index
    %c157_170 = arith.constant 157 : index
    %167 = vector.load %arg6[%c0_169, %c157_170] : memref<16x1024xf32, #tpu.memory_space<vmem>>, vector<16x512xf32>
    %c0_171 = arith.constant 0 : index
    %c0_172 = arith.constant 0 : index
    %168 = vector.load %arg7[%c0_171, %c0_172] : memref<144x512xf32, #tpu.memory_space<vmem>>, vector<16x512xf32>
    tpu.vector_store %arg7[%c0_171, %c0_172], %167 {strides = array<i32>} : memref<144x512xf32, #tpu.memory_space<vmem>>, vector<16x512xf32>,
    %c0_173 = arith.constant 0 : index
    %c160_174 = arith.constant 160 : index
    %169 = vector.load %arg6[%c0_173, %c160_174] : memref<16x1024xf32, #tpu.memory_space<vmem>>, vector<16x512xf32>
    %c16_175 = arith.constant 16 : index
    %c0_176 = arith.constant 0 : index
    %170 = vector.load %arg7[%c16_175, %c0_176] : memref<144x512xf32, #tpu.memory_space<vmem>>, vector<16x512xf32>
    tpu.vector_store %arg7[%c16_175, %c0_176], %169 {strides = array<i32>} : memref<144x512xf32, #tpu.memory_space<vmem>>, vector<16x512xf32>,
    %c0_177 = arith.constant 0 : index
    %c163_178 = arith.constant 163 : index
    %171 = vector.load %arg6[%c0_177, %c163_178] : memref<16x1024xf32, #tpu.memory_space<vmem>>, vector<16x512xf32>
    %c32_179 = arith.constant 32 : index
    %c0_180 = arith.constant 0 : index
    %172 = vector.load %arg7[%c32_179, %c0_180] : memref<144x512xf32, #tpu.memory_space<vmem>>, vector<16x512xf32>
    tpu.vector_store %arg7[%c32_179, %c0_180], %171 {strides = array<i32>} : memref<144x512xf32, #tpu.memory_space<vmem>>, vector<16x512xf32>,
    %c0_181 = arith.constant 0 : index
    %c253_182 = arith.constant 253 : index
    %173 = vector.load %arg6[%c0_181, %c253_182] : memref<16x1024xf32, #tpu.memory_space<vmem>>, vector<16x512xf32>
    %c48_183 = arith.constant 48 : index
    %c0_184 = arith.constant 0 : index
    %174 = vector.load %arg7[%c48_183, %c0_184] : memref<144x512xf32, #tpu.memory_space<vmem>>, vector<16x512xf32>
    tpu.vector_store %arg7[%c48_183, %c0_184], %173 {strides = array<i32>} : memref<144x512xf32, #tpu.memory_space<vmem>>, vector<16x512xf32>,
    %c0_185 = arith.constant 0 : index
    %c256_186 = arith.constant 256 : index
    %175 = vector.load %arg6[%c0_185, %c256_186] : memref<16x1024xf32, #tpu.memory_space<vmem>>, vector<16x512xf32>
    %c64_187 = arith.constant 64 : index
    %c0_188 = arith.constant 0 : index
    %176 = vector.load %arg7[%c64_187, %c0_188] : memref<144x512xf32, #tpu.memory_space<vmem>>, vector<16x512xf32>
    tpu.vector_store %arg7[%c64_187, %c0_188], %175 {strides = array<i32>} : memref<144x512xf32, #tpu.memory_space<vmem>>, vector<16x512xf32>,
    %c0_189 = arith.constant 0 : index
    %c259_190 = arith.constant 259 : index
    %177 = vector.load %arg6[%c0_189, %c259_190] : memref<16x1024xf32, #tpu.memory_space<vmem>>, vector<16x512xf32>
    %c80_191 = arith.constant 80 : index
    %c0_192 = arith.constant 0 : index
    %178 = vector.load %arg7[%c80_191, %c0_192] : memref<144x512xf32, #tpu.memory_space<vmem>>, vector<16x512xf32>
    tpu.vector_store %arg7[%c80_191, %c0_192], %177 {strides = array<i32>} : memref<144x512xf32, #tpu.memory_space<vmem>>, vector<16x512xf32>,
    %c0_193 = arith.constant 0 : index
    %c349_194 = arith.constant 349 : index
    %179 = vector.load %arg6[%c0_193, %c349_194] : memref<16x1024xf32, #tpu.memory_space<vmem>>, vector<16x512xf32>
    %c96_195 = arith.constant 96 : index
    %c0_196 = arith.constant 0 : index
    %180 = vector.load %arg7[%c96_195, %c0_196] : memref<144x512xf32, #tpu.memory_space<vmem>>, vector<16x512xf32>
    tpu.vector_store %arg7[%c96_195, %c0_196], %179 {strides = array<i32>} : memref<144x512xf32, #tpu.memory_space<vmem>>, vector<16x512xf32>,
    %c0_197 = arith.constant 0 : index
    %c352_198 = arith.constant 352 : index
    %181 = vector.load %arg6[%c0_197, %c352_198] : memref<16x1024xf32, #tpu.memory_space<vmem>>, vector<16x512xf32>
    %c112_199 = arith.constant 112 : index
    %c0_200 = arith.constant 0 : index
    %182 = vector.load %arg7[%c112_199, %c0_200] : memref<144x512xf32, #tpu.memory_space<vmem>>, vector<16x512xf32>
    tpu.vector_store %arg7[%c112_199, %c0_200], %181 {strides = array<i32>} : memref<144x512xf32, #tpu.memory_space<vmem>>, vector<16x512xf32>,
    %c0_201 = arith.constant 0 : index
    %c355_202 = arith.constant 355 : index
    %183 = vector.load %arg6[%c0_201, %c355_202] : memref<16x1024xf32, #tpu.memory_space<vmem>>, vector<16x512xf32>
    %c128_203 = arith.constant 128 : index
    %c0_204 = arith.constant 0 : index
    %184 = vector.load %arg7[%c128_203, %c0_204] : memref<144x512xf32, #tpu.memory_space<vmem>>, vector<16x512xf32>
    tpu.vector_store %arg7[%c128_203, %c0_204], %183 {strides = array<i32>} : memref<144x512xf32, #tpu.memory_space<vmem>>, vector<16x512xf32>,
    %c4 = arith.constant 4 : index
    %c0_205 = arith.constant 0 : index
    %c0_206 = arith.constant 0 : index
    %185 = vector.load %arg2[%c4, %c0_205, %c0_206] : memref<7x16x144xf32, #tpu.memory_space<vmem>>, vector<1x16x144xf32>
    %186 = vector.shape_cast %185 : vector<1x16x144xf32> to vector<16x144xf32>
    %c0_207 = arith.constant 0 : index
    %c0_208 = arith.constant 0 : index
    %187 = vector.load %arg7[%c0_207, %c0_208] : memref<144x512xf32, #tpu.memory_space<vmem>>, vector<144x512xf32>
    %cst_209 = arith.constant dense<0.000000e+00> : vector<16x512xf32>
    %188 = tpu.matmul %186, %187, %cst_209 {dimension_numbers = #tpu.dot_dimension_numbers<[1], [0], [0], [1], [0, 0, 1, 1], [], []>} : vector<16x144xf32>, vector<144x512xf32>, vector<16x512xf32> -> vector<16x512xf32>
    %c4_210 = arith.constant 4 : index
    %c0_211 = arith.constant 0 : index
    %c0_212 = arith.constant 0 : index
    %189 = vector.load %arg3[%c4_210, %c0_211, %c0_212] : memref<7x16x1xf32, #tpu.memory_space<vmem>>, vector<1x16x1xf32>
    %190 = vector.shape_cast %189 : vector<1x16x1xf32> to vector<16x1xf32>
    %191 = vector.broadcast %190 : vector<16x1xf32> to vector<16x512xf32>
    %192 = arith.addf %188, %191 : vector<16x512xf32>
    %cst_213 = arith.constant 0.000000e+00 : f32
    %193 = vector.broadcast %cst_213 : f32 to vector<16x512xf32>
    %194 = arith.maximumf %192, %193 : vector<16x512xf32>
    %cst_214 = arith.constant 0.000000e+00 : f32
    %195 = vector.shape_cast %25 : vector<1x512xi1> to vector<1x512xi1>
    %196 = vector.broadcast %195 : vector<1x512xi1> to vector<16x512xi1>
    %197 = vector.broadcast %cst_214 : f32 to vector<16x512xf32>
    %198 = arith.select %196, %194, %197 : vector<16x512xi1>, vector<16x512xf32>
    %c0_215 = arith.constant 0 : index
    %c256_216 = arith.constant 256 : index
    %199 = vector.load %arg5[%c0_215, %c256_216] : memref<16x1024xf32, #tpu.memory_space<vmem>>, vector<16x512xf32>
    tpu.vector_store %arg5[%c0_215, %c256_216], %198 {strides = array<i32>} : memref<16x1024xf32, #tpu.memory_space<vmem>>, vector<16x512xf32>,
    %c0_217 = arith.constant 0 : index
    %c190_218 = arith.constant 190 : index
    %200 = vector.load %arg5[%c0_217, %c190_218] : memref<16x1024xf32, #tpu.memory_space<vmem>>, vector<16x512xf32>
    %c0_219 = arith.constant 0 : index
    %c0_220 = arith.constant 0 : index
    %201 = vector.load %arg7[%c0_219, %c0_220] : memref<144x512xf32, #tpu.memory_space<vmem>>, vector<16x512xf32>
    tpu.vector_store %arg7[%c0_219, %c0_220], %200 {strides = array<i32>} : memref<144x512xf32, #tpu.memory_space<vmem>>, vector<16x512xf32>,
    %c0_221 = arith.constant 0 : index
    %c192_222 = arith.constant 192 : index
    %202 = vector.load %arg5[%c0_221, %c192_222] : memref<16x1024xf32, #tpu.memory_space<vmem>>, vector<16x512xf32>
    %c16_223 = arith.constant 16 : index
    %c0_224 = arith.constant 0 : index
    %203 = vector.load %arg7[%c16_223, %c0_224] : memref<144x512xf32, #tpu.memory_space<vmem>>, vector<16x512xf32>
    tpu.vector_store %arg7[%c16_223, %c0_224], %202 {strides = array<i32>} : memref<144x512xf32, #tpu.memory_space<vmem>>, vector<16x512xf32>,
    %c0_225 = arith.constant 0 : index
    %c194_226 = arith.constant 194 : index
    %204 = vector.load %arg5[%c0_225, %c194_226] : memref<16x1024xf32, #tpu.memory_space<vmem>>, vector<16x512xf32>
    %c32_227 = arith.constant 32 : index
    %c0_228 = arith.constant 0 : index
    %205 = vector.load %arg7[%c32_227, %c0_228] : memref<144x512xf32, #tpu.memory_space<vmem>>, vector<16x512xf32>
    tpu.vector_store %arg7[%c32_227, %c0_228], %204 {strides = array<i32>} : memref<144x512xf32, #tpu.memory_space<vmem>>, vector<16x512xf32>,
    %c0_229 = arith.constant 0 : index
    %c254_230 = arith.constant 254 : index
    %206 = vector.load %arg5[%c0_229, %c254_230] : memref<16x1024xf32, #tpu.memory_space<vmem>>, vector<16x512xf32>
    %c48_231 = arith.constant 48 : index
    %c0_232 = arith.constant 0 : index
    %207 = vector.load %arg7[%c48_231, %c0_232] : memref<144x512xf32, #tpu.memory_space<vmem>>, vector<16x512xf32>
    tpu.vector_store %arg7[%c48_231, %c0_232], %206 {strides = array<i32>} : memref<144x512xf32, #tpu.memory_space<vmem>>, vector<16x512xf32>,
    %c0_233 = arith.constant 0 : index
    %c256_234 = arith.constant 256 : index
    %208 = vector.load %arg5[%c0_233, %c256_234] : memref<16x1024xf32, #tpu.memory_space<vmem>>, vector<16x512xf32>
    %c64_235 = arith.constant 64 : index
    %c0_236 = arith.constant 0 : index
    %209 = vector.load %arg7[%c64_235, %c0_236] : memref<144x512xf32, #tpu.memory_space<vmem>>, vector<16x512xf32>
    tpu.vector_store %arg7[%c64_235, %c0_236], %208 {strides = array<i32>} : memref<144x512xf32, #tpu.memory_space<vmem>>, vector<16x512xf32>,
    %c0_237 = arith.constant 0 : index
    %c258_238 = arith.constant 258 : index
    %210 = vector.load %arg5[%c0_237, %c258_238] : memref<16x1024xf32, #tpu.memory_space<vmem>>, vector<16x512xf32>
    %c80_239 = arith.constant 80 : index
    %c0_240 = arith.constant 0 : index
    %211 = vector.load %arg7[%c80_239, %c0_240] : memref<144x512xf32, #tpu.memory_space<vmem>>, vector<16x512xf32>
    tpu.vector_store %arg7[%c80_239, %c0_240], %210 {strides = array<i32>} : memref<144x512xf32, #tpu.memory_space<vmem>>, vector<16x512xf32>,
    %c0_241 = arith.constant 0 : index
    %c318_242 = arith.constant 318 : index
    %212 = vector.load %arg5[%c0_241, %c318_242] : memref<16x1024xf32, #tpu.memory_space<vmem>>, vector<16x512xf32>
    %c96_243 = arith.constant 96 : index
    %c0_244 = arith.constant 0 : index
    %213 = vector.load %arg7[%c96_243, %c0_244] : memref<144x512xf32, #tpu.memory_space<vmem>>, vector<16x512xf32>
    tpu.vector_store %arg7[%c96_243, %c0_244], %212 {strides = array<i32>} : memref<144x512xf32, #tpu.memory_space<vmem>>, vector<16x512xf32>,
    %c0_245 = arith.constant 0 : index
    %c320_246 = arith.constant 320 : index
    %214 = vector.load %arg5[%c0_245, %c320_246] : memref<16x1024xf32, #tpu.memory_space<vmem>>, vector<16x512xf32>
    %c112_247 = arith.constant 112 : index
    %c0_248 = arith.constant 0 : index
    %215 = vector.load %arg7[%c112_247, %c0_248] : memref<144x512xf32, #tpu.memory_space<vmem>>, vector<16x512xf32>
    tpu.vector_store %arg7[%c112_247, %c0_248], %214 {strides = array<i32>} : memref<144x512xf32, #tpu.memory_space<vmem>>, vector<16x512xf32>,
    %c0_249 = arith.constant 0 : index
    %c322_250 = arith.constant 322 : index
    %216 = vector.load %arg5[%c0_249, %c322_250] : memref<16x1024xf32, #tpu.memory_space<vmem>>, vector<16x512xf32>
    %c128_251 = arith.constant 128 : index
    %c0_252 = arith.constant 0 : index
    %217 = vector.load %arg7[%c128_251, %c0_252] : memref<144x512xf32, #tpu.memory_space<vmem>>, vector<16x512xf32>
    tpu.vector_store %arg7[%c128_251, %c0_252], %216 {strides = array<i32>} : memref<144x512xf32, #tpu.memory_space<vmem>>, vector<16x512xf32>,
    %c5 = arith.constant 5 : index
    %c0_253 = arith.constant 0 : index
    %c0_254 = arith.constant 0 : index
    %218 = vector.load %arg2[%c5, %c0_253, %c0_254] : memref<7x16x144xf32, #tpu.memory_space<vmem>>, vector<1x16x144xf32>
    %219 = vector.shape_cast %218 : vector<1x16x144xf32> to vector<16x144xf32>
    %c0_255 = arith.constant 0 : index
    %c0_256 = arith.constant 0 : index
    %220 = vector.load %arg7[%c0_255, %c0_256] : memref<144x512xf32, #tpu.memory_space<vmem>>, vector<144x512xf32>
    %cst_257 = arith.constant dense<0.000000e+00> : vector<16x512xf32>
    %221 = tpu.matmul %219, %220, %cst_257 {dimension_numbers = #tpu.dot_dimension_numbers<[1], [0], [0], [1], [0, 0, 1, 1], [], []>} : vector<16x144xf32>, vector<144x512xf32>, vector<16x512xf32> -> vector<16x512xf32>
    %c5_258 = arith.constant 5 : index
    %c0_259 = arith.constant 0 : index
    %c0_260 = arith.constant 0 : index
    %222 = vector.load %arg3[%c5_258, %c0_259, %c0_260] : memref<7x16x1xf32, #tpu.memory_space<vmem>>, vector<1x16x1xf32>
    %223 = vector.shape_cast %222 : vector<1x16x1xf32> to vector<16x1xf32>
    %224 = vector.broadcast %223 : vector<16x1xf32> to vector<16x512xf32>
    %225 = arith.addf %221, %224 : vector<16x512xf32>
    %cst_261 = arith.constant 0.000000e+00 : f32
    %226 = vector.broadcast %cst_261 : f32 to vector<16x512xf32>
    %227 = arith.maximumf %225, %226 : vector<16x512xf32>
    %cst_262 = arith.constant 0.000000e+00 : f32
    %228 = vector.shape_cast %25 : vector<1x512xi1> to vector<1x512xi1>
    %229 = vector.broadcast %228 : vector<1x512xi1> to vector<16x512xi1>
    %230 = vector.broadcast %cst_262 : f32 to vector<16x512xf32>
    %231 = arith.select %229, %227, %230 : vector<16x512xi1>, vector<16x512xf32>
    %c0_263 = arith.constant 0 : index
    %c256_264 = arith.constant 256 : index
    %232 = vector.load %arg6[%c0_263, %c256_264] : memref<16x1024xf32, #tpu.memory_space<vmem>>, vector<16x512xf32>
    tpu.vector_store %arg6[%c0_263, %c256_264], %231 {strides = array<i32>} : memref<16x1024xf32, #tpu.memory_space<vmem>>, vector<16x512xf32>,
    %c0_265 = arith.constant 0 : index
    %c223_266 = arith.constant 223 : index
    %233 = vector.load %arg6[%c0_265, %c223_266] : memref<16x1024xf32, #tpu.memory_space<vmem>>, vector<16x512xf32>
    %c0_267 = arith.constant 0 : index
    %c0_268 = arith.constant 0 : index
    %234 = vector.load %arg7[%c0_267, %c0_268] : memref<144x512xf32, #tpu.memory_space<vmem>>, vector<16x512xf32>
    tpu.vector_store %arg7[%c0_267, %c0_268], %233 {strides = array<i32>} : memref<144x512xf32, #tpu.memory_space<vmem>>, vector<16x512xf32>,
    %c0_269 = arith.constant 0 : index
    %c224_270 = arith.constant 224 : index
    %235 = vector.load %arg6[%c0_269, %c224_270] : memref<16x1024xf32, #tpu.memory_space<vmem>>, vector<16x512xf32>
    %c16_271 = arith.constant 16 : index
    %c0_272 = arith.constant 0 : index
    %236 = vector.load %arg7[%c16_271, %c0_272] : memref<144x512xf32, #tpu.memory_space<vmem>>, vector<16x512xf32>
    tpu.vector_store %arg7[%c16_271, %c0_272], %235 {strides = array<i32>} : memref<144x512xf32, #tpu.memory_space<vmem>>, vector<16x512xf32>,
    %c0_273 = arith.constant 0 : index
    %c225_274 = arith.constant 225 : index
    %237 = vector.load %arg6[%c0_273, %c225_274] : memref<16x1024xf32, #tpu.memory_space<vmem>>, vector<16x512xf32>
    %c32_275 = arith.constant 32 : index
    %c0_276 = arith.constant 0 : index
    %238 = vector.load %arg7[%c32_275, %c0_276] : memref<144x512xf32, #tpu.memory_space<vmem>>, vector<16x512xf32>
    tpu.vector_store %arg7[%c32_275, %c0_276], %237 {strides = array<i32>} : memref<144x512xf32, #tpu.memory_space<vmem>>, vector<16x512xf32>,
    %c0_277 = arith.constant 0 : index
    %c255_278 = arith.constant 255 : index
    %239 = vector.load %arg6[%c0_277, %c255_278] : memref<16x1024xf32, #tpu.memory_space<vmem>>, vector<16x512xf32>
    %c48_279 = arith.constant 48 : index
    %c0_280 = arith.constant 0 : index
    %240 = vector.load %arg7[%c48_279, %c0_280] : memref<144x512xf32, #tpu.memory_space<vmem>>, vector<16x512xf32>
    tpu.vector_store %arg7[%c48_279, %c0_280], %239 {strides = array<i32>} : memref<144x512xf32, #tpu.memory_space<vmem>>, vector<16x512xf32>,
    %c0_281 = arith.constant 0 : index
    %c256_282 = arith.constant 256 : index
    %241 = vector.load %arg6[%c0_281, %c256_282] : memref<16x1024xf32, #tpu.memory_space<vmem>>, vector<16x512xf32>
    %c64_283 = arith.constant 64 : index
    %c0_284 = arith.constant 0 : index
    %242 = vector.load %arg7[%c64_283, %c0_284] : memref<144x512xf32, #tpu.memory_space<vmem>>, vector<16x512xf32>
    tpu.vector_store %arg7[%c64_283, %c0_284], %241 {strides = array<i32>} : memref<144x512xf32, #tpu.memory_space<vmem>>, vector<16x512xf32>,
    %c0_285 = arith.constant 0 : index
    %c257_286 = arith.constant 257 : index
    %243 = vector.load %arg6[%c0_285, %c257_286] : memref<16x1024xf32, #tpu.memory_space<vmem>>, vector<16x512xf32>
    %c80_287 = arith.constant 80 : index
    %c0_288 = arith.constant 0 : index
    %244 = vector.load %arg7[%c80_287, %c0_288] : memref<144x512xf32, #tpu.memory_space<vmem>>, vector<16x512xf32>
    tpu.vector_store %arg7[%c80_287, %c0_288], %243 {strides = array<i32>} : memref<144x512xf32, #tpu.memory_space<vmem>>, vector<16x512xf32>,
    %c0_289 = arith.constant 0 : index
    %c287_290 = arith.constant 287 : index
    %245 = vector.load %arg6[%c0_289, %c287_290] : memref<16x1024xf32, #tpu.memory_space<vmem>>, vector<16x512xf32>
    %c96_291 = arith.constant 96 : index
    %c0_292 = arith.constant 0 : index
    %246 = vector.load %arg7[%c96_291, %c0_292] : memref<144x512xf32, #tpu.memory_space<vmem>>, vector<16x512xf32>
    tpu.vector_store %arg7[%c96_291, %c0_292], %245 {strides = array<i32>} : memref<144x512xf32, #tpu.memory_space<vmem>>, vector<16x512xf32>,
    %c0_293 = arith.constant 0 : index
    %c288_294 = arith.constant 288 : index
    %247 = vector.load %arg6[%c0_293, %c288_294] : memref<16x1024xf32, #tpu.memory_space<vmem>>, vector<16x512xf32>
    %c112_295 = arith.constant 112 : index
    %c0_296 = arith.constant 0 : index
    %248 = vector.load %arg7[%c112_295, %c0_296] : memref<144x512xf32, #tpu.memory_space<vmem>>, vector<16x512xf32>
    tpu.vector_store %arg7[%c112_295, %c0_296], %247 {strides = array<i32>} : memref<144x512xf32, #tpu.memory_space<vmem>>, vector<16x512xf32>,
    %c0_297 = arith.constant 0 : index
    %c289_298 = arith.constant 289 : index
    %249 = vector.load %arg6[%c0_297, %c289_298] : memref<16x1024xf32, #tpu.memory_space<vmem>>, vector<16x512xf32>
    %c128_299 = arith.constant 128 : index
    %c0_300 = arith.constant 0 : index
    %250 = vector.load %arg7[%c128_299, %c0_300] : memref<144x512xf32, #tpu.memory_space<vmem>>, vector<16x512xf32>
    tpu.vector_store %arg7[%c128_299, %c0_300], %249 {strides = array<i32>} : memref<144x512xf32, #tpu.memory_space<vmem>>, vector<16x512xf32>,
    %c6 = arith.constant 6 : index
    %c0_301 = arith.constant 0 : index
    %c0_302 = arith.constant 0 : index
    %251 = vector.load %arg2[%c6, %c0_301, %c0_302] : memref<7x16x144xf32, #tpu.memory_space<vmem>>, vector<1x16x144xf32>
    %252 = vector.shape_cast %251 : vector<1x16x144xf32> to vector<16x144xf32>
    %c0_303 = arith.constant 0 : index
    %c0_304 = arith.constant 0 : index
    %253 = vector.load %arg7[%c0_303, %c0_304] : memref<144x512xf32, #tpu.memory_space<vmem>>, vector<144x512xf32>
    %cst_305 = arith.constant dense<0.000000e+00> : vector<16x512xf32>
    %254 = tpu.matmul %252, %253, %cst_305 {dimension_numbers = #tpu.dot_dimension_numbers<[1], [0], [0], [1], [0, 0, 1, 1], [], []>} : vector<16x144xf32>, vector<144x512xf32>, vector<16x512xf32> -> vector<16x512xf32>
    %c6_306 = arith.constant 6 : index
    %c0_307 = arith.constant 0 : index
    %c0_308 = arith.constant 0 : index
    %255 = vector.load %arg3[%c6_306, %c0_307, %c0_308] : memref<7x16x1xf32, #tpu.memory_space<vmem>>, vector<1x16x1xf32>
    %256 = vector.shape_cast %255 : vector<1x16x1xf32> to vector<16x1xf32>
    %257 = vector.broadcast %256 : vector<16x1xf32> to vector<16x512xf32>
    %258 = arith.addf %254, %257 : vector<16x512xf32>
    %cst_309 = arith.constant 0.000000e+00 : f32
    %259 = vector.shape_cast %25 : vector<1x512xi1> to vector<1x512xi1>
    %260 = vector.broadcast %259 : vector<1x512xi1> to vector<16x512xi1>
    %261 = vector.broadcast %cst_309 : f32 to vector<16x512xf32>
    %262 = arith.select %260, %258, %261 : vector<16x512xi1>, vector<16x512xf32>
    %263 = vector.extract_strided_slice %262 {offsets = [0, 0], sizes = [3, 512], strides = [1, 1]} : vector<16x512xf32> to vector<3x512xf32>
    %c0_310 = arith.constant 0 : index
    %c0_311 = arith.constant 0 : index
    %c256_312 = arith.constant 256 : index
    %264 = vector.load %arg1[%c0_310, %c0_311, %c256_312] : memref<1x16x1024xf32, #tpu.memory_space<vmem>>, vector<1x3x512xf32>
    %265 = vector.shape_cast %264 : vector<1x3x512xf32> to vector<3x512xf32>
    %266 = arith.subf %265, %263 : vector<3x512xf32>
    %267 = arith.mulf %265, %266 : vector<3x512xf32>
    %c0_313 = arith.constant 0 : index
    %c0_314 = arith.constant 0 : index
    %c0_315 = arith.constant 0 : index
    %268 = vector.load %arg4[%c0_313, %c0_314, %c0_315] : memref<1x3x512xf32, #tpu.memory_space<vmem>>, vector<1x3x512xf32>
    %269 = vector.shape_cast %268 : vector<1x3x512xf32> to vector<3x512xf32>
    %270 = vector.shape_cast %267 : vector<3x512xf32> to vector<1x3x512xf32>
    tpu.vector_store %arg4[%c0_313, %c0_314, %c0_315], %270 {strides = array<i32>} : memref<1x3x512xf32, #tpu.memory_space<vmem>>, vector<1x3x512xf32>,
    return
  }
  func.func @transform_0(%arg0: i32) -> (i32, i32, i32) {
    %c0_i32 = arith.constant 0 : i32
    %c0_i32_0 = arith.constant 0 : i32
    %c0_i32_1 = arith.constant 0 : i32
    return %arg0, %c0_i32, %c0_i32_0 : i32, i32, i32
  }
  func.func @transform_1(%arg0: i32) -> (i32, i32, i32) {
    %c0_i32 = arith.constant 0 : i32
    %c0_i32_0 = arith.constant 0 : i32
    %c0_i32_1 = arith.constant 0 : i32
    %c0_i32_2 = arith.constant 0 : i32
    return %c0_i32, %c0_i32_0, %c0_i32_1 : i32, i32, i32
  }
  func.func @transform_2(%arg0: i32) -> (i32, i32, i32) {
    %c0_i32 = arith.constant 0 : i32
    %c0_i32_0 = arith.constant 0 : i32
    %c0_i32_1 = arith.constant 0 : i32
    %c0_i32_2 = arith.constant 0 : i32
    return %c0_i32, %c0_i32_0, %c0_i32_1 : i32, i32, i32
  }
  func.func @transform_3(%arg0: i32) -> (i32, i32, i32) {
    %c0_i32 = arith.constant 0 : i32
    %c0_i32_0 = arith.constant 0 : i32
    %c0_i32_1 = arith.constant 0 : i32
    return %arg0, %c0_i32, %c0_i32_0 : i32, i32, i32
  }
}

</mosaic_0001>

<bundles_post_ra>
// kernel: lircnn_forward.1
= control target key start
LH: loop header
LB: loop body
LE: loop exit
PB: predicated region body
PF: predicated region fallthrough
CT: control target
= control target key end

     0   :  { %s7971_s12 = smov 0   ;;  %s9942_s0 = inlined_call_operand.vmem [shape: f32[2,16,1024], index: 0, kind: input, shape index: {}]   ;;  %s9943_s1 = inlined_call_operand.vmem [shape: f32[7,16,144], index: 1, kind: input, shape index: {}]   ;;  %s9944_s2 = inlined_call_operand.vmem [shape: f32[7,16,1], index: 2, kind: input, shape index: {}]   ;;  %s9945_s3 = inlined_call_operand.vmem [shape: f32[2,3,512], index: 3, kind: output, shape index: {}]  }
   0x1 LB: > { %s5866_s13 = sadd.s32 4294967295, %s7925_s12   ;;  %p5870_p0 = scmp.ge.s32.totalorder %s7925_s12, 1  ;;  %s7925_s12 = sphi %s7971_s12, %s13_s12  }
   0x2   : > { %p137_p1 = scmp.lt.s32.totalorder %s7925_s12, 3 }
   0x4   : > { %p138_p2 = pnand %p5870_p0, %p137_p1 }
   0x5   : > { %p161_p3 = scmp.lt.s32.totalorder (!%p138_p2), %s5866_s13, 1  ;;  %s7927_s18 = smov (!%p138_p2), 33   ;;  %v805_v26 = vld [vmem:[%s9943_s1 + $0x8] sm:$0xff] (!%p138_p2)  ;;  %vm892_vm0 = vcmask (!%p138_p2), 130048   ;;  %v880_v27 = vld [vmem:[%s9944_s2] sm:$0xff] (!%p138_p2)  ;;  %v7935_v28 = vmov (!%p138_p2), 0  }
   0x6   : > { %141 = sbr.rel (%p138_p2) target bundleno = 2913 (0xb61), region = 32  ;;  %s7928_s19 = smov (!%p138_p2), 32   ;;  %5875 = vmatprep.mubr.msk.f32.mxu0 (!%p138_p2), %vm892_vm0, %v805_v26  ;;  %5877 = vmatprep.mubr.msk.f32.mxu1 (!%p138_p2), %vm892_vm0, %v805_v26  ;;  %v881_v29 = vld [vmem:[%s9944_s2 + $0x8] sm:$0xff] (!%p138_p2)  ;;  %vm9951_vm1 = vcmask (!%p138_p2), 269312   ;;  %vm9963_vm2 = vcmask (!%p138_p2), 261120   ;;  %vm9950_vm3 = vcmask (!%p138_p2), 252928  }
   0x7   : > { %s7929_s20 = smov (!%p138_p2), 31   ;;  %s7930_s21 = smov (!%p138_p2), 1   ;;  %6767 = vset.pattern.permute.xlu0 (!%p138_p2), %v7935_v28  ;;  %6768 = vset.pattern.permute.xlu1 (!%p138_p2), %v7935_v28  ;;  %vm9949_vm4 = vcmask (!%p138_p2), 7168   ;;  %vm9948_vm5 = vcmask (!%p138_p2), 1039360   ;;  %vm9947_vm6 = vcmask (!%p138_p2), 793600   ;;  %vm714_vm7 = vcmask (!%p138_p2), 785408  }
   0x8   : > { %s9960_s22 = smov (!%p138_p2), 127   ;;  %s7932_s23 = smov (!%p138_p2), 97   ;;  %vm9946_vm8 = vcmask (!%p138_p2), 777216  }
   0x9   : > { %s7933_s24 = smov (!%p138_p2), 96   ;;  %s9952_s25 = smov (!%p138_p2), 95  }
   0xa   : > { %s7937_s11 = smov (!%p138_p2), 64   ;;  %s7939_s15 = smov (!%p138_p2), 2  }
   0xb   : > { %s7940_s16 = smov (!%p138_p2), 62   ;;  %s7941_s26 = smov (!%p138_p2), 126  }
   0xc   : > { %s7942_s28 = smov (!%p138_p2), 99   ;;  %s7943_s29 = smov (!%p138_p2), 3  }
   0xd   : > { %s10142_s13 = smov (!%p161_p3, %s5866_s13), 1  ;;  %s7944_s30 = smov 93  }
   0xe   : > { %s5941_s14 = sshll.u32 %s10142_s13, 7  ;;  %s7945_s4 = smov 35  }
   0xf   : > { %s7985_s17 = scalar_lea.vmem %s9942_s0, %s5941_s14  ;;  %s7938_s14 = smov 66  }
  0x10   : > { %v7988_v0 = vld [vmem:[%s7985_s17 + $0x10] sm:$0xff]  ;;  %v7991_v1 = vld [vmem:[%s7985_s17 + $0x18] sm:$0xff]  ;;  %v268_v2 = vld [vmem:[%s7985_s17 + $0x8] sm:$0xff]  ;;  %s7946_s5 = smov 125   ;;  %s7947_s6 = smov 29  }
  0x11   : > { %v6567_v3 = vpack.i.bf16 %v7991_v1, %v7988_v0  ;;  %v7997_v4 = vld [vmem:[%s7985_s17 + $0x20] sm:$0xff]  ;;  %v8000_v5 = vld [vmem:[%s7985_s17 + $0x50] sm:$0xff]  ;;  %v8003_v6 = vld [vmem:[%s7985_s17 + $0x58] sm:$0xff]  ;;  %s7948_s7 = smov 4   ;;  %s5942_s10 = sshll.u32 %s10142_s13, 4 }
  0x12   : > { %v6577_v7 = vpack.i.bf16 %v7997_v4, %v268_v2  ;;  %v8007_v8 = vld [vmem:[%s7985_s17 + $0x28] sm:$0xff]  ;;  %v6572_v10 = vpack.i.bf16 %v8003_v6, %v8000_v5  ;;  %v8016_v12 = vld [vmem:[%s7985_s17 + $0x60] sm:$0xff]  ;;  %v6019_v15 = vpack.c.bf16 %v8003_v6, %v7991_v1  ;;  %v6021_v16 = vpack.c.bf16 %v8000_v5, %v7988_v0  ;;  %v548_v21 = vld [vmem:[%s7985_s17 + $0x30] sm:$0xff] }
  0x13   : > { %v273_v9 = vld [vmem:[%s7985_s17 + $0x48] sm:$0xff]  ;;  %6568 = vrot.lane.b32.xlu0 %v6567_v3, %s7927_s18  ;;  %v6667_v18 = vpack.i.bf16 %v7997_v4, %v7991_v1  ;;  %v6057_v19 = vpack.c.bf16 %v8016_v12, %v7997_v4  ;;  %v6672_v20 = vpack.i.bf16 %v8016_v12, %v8003_v6  ;;  %v6677_v22 = vpack.i.bf16 %v8007_v8, %v7988_v0  ;;  %v553_v24 = vld [vmem:[%s7985_s17 + $0x70] sm:$0xff] }
  0x14   : > { %6578 = vrot.lane.b32.xlu1 %v6577_v7, %s7927_s18  ;;  %v6582_v11 = vpack.i.bf16 %v273_v9, %v8007_v8  ;;  %v8019_v13 = vld [vmem:[%s7985_s17 + $0x68] sm:$0xff]  ;;  %v6682_v23 = vpack.i.bf16 %v8000_v5, %v548_v21 }
  0x15   : > { %v6587_v14 = vpack.i.bf16 %v8019_v13, %v8016_v12  ;;  %v6055_v17 = vpack.c.bf16 %v8019_v13, %v8007_v8  ;;  %v6687_v25 = vpack.i.bf16 %v553_v24, %v8019_v13 }
  0x17   : > { %6573 = vrot.lane.b32.xlu0 %v6572_v10, %s7927_s18 }
  0x18   : > { %6583 = vrot.lane.b32.xlu1 %v6582_v11, %s7927_s18 }
  0x1b   : > { %6588 = vrot.lane.b32.xlu0 %v6587_v14, %s7927_s18 }
  0x1c   : > { %6593 = vrot.lane.b32.xlu1 %v6567_v3, %s7928_s19 }
  0x1f   : > { %6598 = vrot.lane.b32.xlu0 %v6572_v10, %s7928_s19 }
  0x20   : > { %6603 = vrot.lane.b32.xlu1 %v6577_v7, %s7928_s19 }
  0x23   : > { %6608 = vrot.lane.b32.xlu0 %v6582_v11, %s7928_s19 }
  0x24   : > { %6613 = vrot.lane.b32.xlu1 %v6587_v14, %s7928_s19 }
  0x27   : > { %6618 = vrot.lane.b32.xlu0 %v6567_v3, %s7929_s20 }
  0x28   : > { %6623 = vrot.lane.b32.xlu1 %v6572_v10, %s7929_s20 }
  0x2b   : > { %6628 = vrot.lane.b32.xlu0 %v6577_v7, %s7929_s20 }
  0x2c   : > { %6633 = vrot.lane.b32.xlu1 %v6582_v11, %s7929_s20 }
  0x2f   : > { %6638 = vrot.lane.b32.xlu0 %v6587_v14, %s7929_s20 }
  0x30   : > { %6643 = vrot.lane.b32.xlu1 %v6567_v3, %s7930_s21 }
  0x33   : > { %6648 = vrot.lane.b32.xlu0 %v6572_v10, %s7930_s21 }
  0x34   : > { %6653 = vrot.lane.b32.xlu1 %v6577_v7, %s7930_s21 }
  0x37   : > { %6658 = vrot.lane.b32.xlu0 %v6582_v11, %s7930_s21 }
  0x38   : > { %6663 = vrot.lane.b32.xlu1 %v6587_v14, %s7930_s21 }
  0x3b   : > { %6668 = vrot.lane.b32.xlu0 %v6667_v18, %s9960_s22 }
  0x3c   : > { %6673 = vrot.lane.b32.xlu1 %v6672_v20, %s9960_s22 }
  0x3f   : > { %6678 = vrot.lane.b32.xlu0 %v6677_v22, %s9960_s22 }
  0x40   : > { %6683 = vrot.lane.b32.xlu1 %v6682_v23, %s9960_s22 }
  0x43   : > { %6688 = vrot.lane.b32.xlu0 %v6687_v25, %s9960_s22 }
  0x44   : > { %6693 = vrot.lane.b32.xlu1 %v6667_v18, %s7932_s23 }
  0x47   : > { %6698 = vrot.lane.b32.xlu0 %v6672_v20, %s7932_s23 }
  0x48   : > { %6703 = vrot.lane.b32.xlu1 %v6677_v22, %s7932_s23 }
  0x4b   : > { %6708 = vrot.lane.b32.xlu0 %v6682_v23, %s7932_s23 }
  0x4c   : > { %6713 = vrot.lane.b32.xlu1 %v6687_v25, %s7932_s23 }
  0x4f   : > { %6718 = vrot.lane.b32.xlu0 %v6667_v18, %s7933_s24 }
  0x50   : > { %6723 = vrot.lane.b32.xlu1 %v6672_v20, %s7933_s24 }
  0x53   : > { %6728 = vrot.lane.b32.xlu0 %v6677_v22, %s7933_s24 }
  0x54   : > { %6733 = vrot.lane.b32.xlu1 %v6682_v23, %s7933_s24 }
  0x57   : > { %6738 = vrot.lane.b32.xlu0 %v6687_v25, %s7933_s24 }
  0x58   : > { %6743 = vrot.lane.b32.xlu1 %v6667_v18, %s9952_s25 }
  0x5b   : > { %6748 = vrot.lane.b32.xlu0 %v6672_v20, %s9952_s25 }
  0x5c   : > { %6753 = vrot.lane.b32.xlu1 %v6677_v22, %s9952_s25 }
  0x5f   : > { %6758 = vrot.lane.b32.xlu0 %v6682_v23, %s9952_s25 }
  0x60   : > { %6763 = vrot.lane.b32.xlu1 %v6687_v25, %s9952_s25  ;;  %s7949_s25 = smov 124  }
  0x63   : > { %884 = vperm.xlu0 %6767, %v880_v27  }
  0x64   : > { %889 = vperm.xlu1 %6768, %v881_v29  }
  0x85   : > { %v6569_v30 = vpop.permute.xlu0 %6568 }
  0x86   : > { %v6579_v31 = vpop.permute.xlu1 %6578  ;;  %v6571_v32 = vunpack.i.h.bf16 %v6569_v30  ;;  %v6570_v33 = vunpack.i.l.bf16 %v6569_v30 }
  0x87   : > { %v6580_v34 = vunpack.i.l.bf16 %v6579_v31  ;;  %v6581_v39 = vunpack.i.h.bf16 %v6579_v31 }
  0x88   : > { %v310_v42 = vsel %vm9951_vm1, %v6570_v33, %v6571_v32 }
  0x89   : > { %v6574_v35 = vpop.permute.xlu0 %6573  ;;  %v309_v46 = vsel %vm9951_vm1, %v6580_v34, %v6570_v33  ;;  %v311_v53 = vsel %vm9951_vm1, %v6571_v32, %v6581_v39 }
  0x8a   : > { %v6576_v36 = vunpack.i.h.bf16 %v6574_v35  ;;  %v6575_v37 = vunpack.i.l.bf16 %v6574_v35  ;;  %v6584_v38 = vpop.permute.xlu1 %6583 }
  0x8b   : > { %v6586_v40 = vunpack.i.h.bf16 %v6584_v38  ;;  %v6585_v41 = vunpack.i.l.bf16 %v6584_v38 }
  0x8c   : > { %v314_v43 = vsel %vm9951_vm1, %v6575_v37, %v6576_v36 }
  0x8d   : > { %v6589_v44 = vpop.permute.xlu0 %6588  ;;  %v6003_v45 = vpack.c.bf16 %v314_v43, %v310_v42  ;;  %v313_v47 = vsel %vm9951_vm1, %v6586_v40, %v6575_v37  ;;  %v312_v52 = vsel %vm9951_vm1, %v6581_v39, %v6585_v41 }
  0x8e   : > { %v6591_v48 = vunpack.i.h.bf16 %v6589_v44  ;;  %v6590_v49 = vunpack.i.l.bf16 %v6589_v44  ;;  %v6594_v50 = vpop.permute.xlu1 %6593  ;;  %v6005_v51 = vpack.c.bf16 %v313_v47, %v309_v46 }
  0x8f   : > { %6004 = vmatprep.subr.bf16.mxu0 %v6003_v45  ;;  %v6596_v54 = vunpack.i.h.bf16 %v6594_v50  ;;  %v6595_v55 = vunpack.i.l.bf16 %v6594_v50 }
  0x90   : > { %6006 = vmatpush1.bf16.msra.mxu0 %v6005_v51  ;;  %v316_v56 = vsel %vm9951_vm1, %v6590_v49, %v6591_v48  ;;  %v315_v57 = vsel %vm9951_vm1, %v6576_v36, %v6590_v49 }
  0x91   : > { %v6599_v58 = vpop.permute.xlu0 %6598  ;;  %v6039_v59 = vpack.c.bf16 %v316_v56, %v312_v52  ;;  %v6041_v60 = vpack.c.bf16 %v315_v57, %v311_v53  ;;  %v375_v3 = vsel %vm9963_vm2, %v6595_v55, %v6596_v54 }
  0x92   : > { %v6601_v61 = vunpack.i.h.bf16 %v6599_v58  ;;  %v6600_v62 = vunpack.i.l.bf16 %v6599_v58  ;;  %v6604_v63 = vpop.permute.xlu1 %6603 }
  0x93   : > { %6040 = vmatprep.subr.bf16.mxu1 %v6039_v59  ;;  %v6605_v2 = vunpack.i.l.bf16 %v6604_v63  ;;  %v6606_v9 = vunpack.i.h.bf16 %v6604_v63 }
  0x94   : > { %6042 = vmatpush1.bf16.msra.mxu1 %v6041_v60  ;;  %v379_v7 = vsel %vm9963_vm2, %v6600_v62, %v6601_v61 }
  0x95   : > { %v6609_v10 = vpop.permute.xlu0 %6608  ;;  %v6007_v11 = vpack.c.bf16 %v379_v7, %v375_v3  ;;  %v374_v23 = vsel %vm9963_vm2, %v6605_v2, %v6595_v55  ;;  %v376_v29 = vsel %vm9963_vm2, %v6596_v54, %v6606_v9 }
  0x96   : > { %v6611_v14 = vunpack.i.h.bf16 %v6609_v10  ;;  %v6610_v18 = vunpack.i.l.bf16 %v6609_v10  ;;  %v6614_v20 = vpop.permute.xlu1 %6613 }
  0x97   : > { %v6616_v21 = vunpack.i.h.bf16 %v6614_v20  ;;  %v6615_v22 = vunpack.i.l.bf16 %v6614_v20  ;;  %6008 = vmatprep.subr.bf16.mxu0 %v6007_v11 }
  0x98   : > { %v378_v24 = vsel %vm9963_vm2, %v6611_v14, %v6600_v62  ;;  %v377_v25 = vsel %vm9963_vm2, %v6606_v9, %v6610_v18 }
  0x99   : > { %v6619_v26 = vpop.permute.xlu0 %6618  ;;  %v6009_v27 = vpack.c.bf16 %v378_v24, %v374_v23  ;;  %v381_v28 = vsel %vm9963_vm2, %v6615_v22, %v6616_v21  ;;  %v380_v30 = vsel %vm9963_vm2, %v6601_v61, %v6615_v22 }
  0x9a   : > { %v6621_v31 = vunpack.i.h.bf16 %v6619_v26  ;;  %v6620_v32 = vunpack.i.l.bf16 %v6619_v26  ;;  %v6624_v33 = vpop.permute.xlu1 %6623  ;;  %v6043_v34 = vpack.c.bf16 %v381_v28, %v377_v25  ;;  %v6045_v35 = vpack.c.bf16 %v380_v30, %v376_v29 }
  0x9b   : > { %v6626_v36 = vunpack.i.h.bf16 %v6624_v33  ;;  %v6625_v37 = vunpack.i.l.bf16 %v6624_v33  ;;  %6010 = vmatpush1.bf16.msra.mxu0 %v6009_v27 }
  0x9c   : > { %6044 = vmatprep.subr.bf16.mxu1 %v6043_v34  ;;  %v440_v38 = vsel %vm9950_vm3, %v6620_v32, %v6621_v31 }
  0x9d   : > { %6046 = vmatpush1.bf16.msra.mxu1 %v6045_v35  ;;  %v6629_v39 = vpop.permute.xlu0 %6628  ;;  %v444_v40 = vsel %vm9950_vm3, %v6625_v37, %v6626_v36 }
  0x9e   : > { %v6630_v41 = vunpack.i.l.bf16 %v6629_v39  ;;  %v6634_v42 = vpop.permute.xlu1 %6633  ;;  %v6011_v43 = vpack.c.bf16 %v444_v40, %v440_v38  ;;  %v6631_v44 = vunpack.i.h.bf16 %v6629_v39 }
  0x9f   : > { %v6636_v45 = vunpack.i.h.bf16 %v6634_v42  ;;  %v6635_v46 = vunpack.i.l.bf16 %v6634_v42 }
  0xa0   : > { %6012 = vmatprep.subr.bf16.mxu0 %v6011_v43  ;;  %v439_v47 = vsel %vm9950_vm3, %v6630_v41, %v6620_v32  ;;  %v441_v55 = vsel %vm9950_vm3, %v6621_v31, %v6631_v44 }
  0xa1   : > { %v6639_v48 = vpop.permute.xlu0 %6638  ;;  %v443_v49 = vsel %vm9950_vm3, %v6636_v45, %v6625_v37  ;;  %v442_v54 = vsel %vm9950_vm3, %v6631_v44, %v6635_v46 }
  0xa2   : > { %v6641_v50 = vunpack.i.h.bf16 %v6639_v48  ;;  %v6640_v51 = vunpack.i.l.bf16 %v6639_v48  ;;  %v6644_v52 = vpop.permute.xlu1 %6643  ;;  %v6013_v53 = vpack.c.bf16 %v443_v49, %v439_v47 }
  0xa3   : > { %v6646_v56 = vunpack.i.h.bf16 %v6644_v52  ;;  %v6645_v57 = vunpack.i.l.bf16 %v6644_v52 }
  0xa4   : > { %6014 = vmatpush1.bf16.msra.mxu0 %v6013_v53  ;;  %v446_v58 = vsel %vm9950_vm3, %v6640_v51, %v6641_v50  ;;  %v445_v59 = vsel %vm9950_vm3, %v6626_v36, %v6640_v51 }
  0xa5   : > { %v6649_v60 = vpop.permute.xlu0 %6648  ;;  %v6047_v61 = vpack.c.bf16 %v446_v58, %v442_v54  ;;  %v6049_v62 = vpack.c.bf16 %v445_v59, %v441_v55  ;;  %v505_v9 = vsel %vm9949_vm4, %v6645_v57, %v6646_v56 }
  0xa6   : > { %v6651_v63 = vunpack.i.h.bf16 %v6649_v60  ;;  %v6650_v2 = vunpack.i.l.bf16 %v6649_v60  ;;  %v6654_v3 = vpop.permute.xlu1 %6653 }
  0xa7   : > { %6048 = vmatprep.subr.bf16.mxu1 %v6047_v61  ;;  %v6655_v7 = vunpack.i.l.bf16 %v6654_v3  ;;  %v6656_v11 = vunpack.i.h.bf16 %v6654_v3 }
  0xa8   : > { %6050 = vmatpush1.bf16.msra.mxu1 %v6049_v62  ;;  %v509_v10 = vsel %vm9949_vm4, %v6650_v2, %v6651_v63 }
  0xa9   : > { %v6659_v14 = vpop.permute.xlu0 %6658  ;;  %v6015_v18 = vpack.c.bf16 %v509_v10, %v505_v9  ;;  %v504_v25 = vsel %vm9949_vm4, %v6655_v7, %v6645_v57  ;;  %v506_v31 = vsel %vm9949_vm4, %v6646_v56, %v6656_v11 }
  0xaa   : > { %v6661_v20 = vunpack.i.h.bf16 %v6659_v14  ;;  %v6660_v21 = vunpack.i.l.bf16 %v6659_v14  ;;  %v6664_v22 = vpop.permute.xlu1 %6663 }
  0xab   : > { %v6666_v23 = vunpack.i.h.bf16 %v6664_v22  ;;  %v6665_v24 = vunpack.i.l.bf16 %v6664_v22  ;;  %6016 = vmatprep.subr.bf16.mxu0 %v6015_v18 }
  0xac   : > { %v508_v26 = vsel %vm9949_vm4, %v6661_v20, %v6650_v2  ;;  %v507_v27 = vsel %vm9949_vm4, %v6656_v11, %v6660_v21 }
  0xad   : > { %v6669_v28 = vpop.permute.xlu0 %6668  ;;  %v6017_v29 = vpack.c.bf16 %v508_v26, %v504_v25  ;;  %v511_v30 = vsel %vm9949_vm4, %v6665_v24, %v6666_v23  ;;  %v510_v32 = vsel %vm9949_vm4, %v6651_v63, %v6665_v24 }
  0xae   : > { %v6671_v33 = vunpack.i.h.bf16 %v6669_v28  ;;  %v6670_v34 = vunpack.i.l.bf16 %v6669_v28  ;;  %v6674_v35 = vpop.permute.xlu1 %6673  ;;  %v6051_v36 = vpack.c.bf16 %v511_v30, %v507_v27  ;;  %v6053_v37 = vpack.c.bf16 %v510_v32, %v506_v31 }
  0xaf   : > { %v6676_v38 = vunpack.i.h.bf16 %v6674_v35  ;;  %v6675_v39 = vunpack.i.l.bf16 %v6674_v35  ;;  %6018 = vmatpush1.bf16.msra.mxu0 %v6017_v29 }
  0xb0   : > { %6052 = vmatprep.subr.bf16.mxu1 %v6051_v36  ;;  %6020 = vmatprep.subr.bf16.mxu0 %v6019_v15  ;;  %v586_v40 = vsel %vm9948_vm5, %v6670_v34, %v6671_v33 }
  0xb1   : > { %6054 = vmatpush1.bf16.msra.mxu1 %v6053_v37  ;;  %v6679_v41 = vpop.permute.xlu0 %6678  ;;  %v590_v42 = vsel %vm9948_vm5, %v6675_v39, %v6676_v38 }
  0xb2   : > { %v6680_v43 = vunpack.i.l.bf16 %v6679_v41  ;;  %v6684_v44 = vpop.permute.xlu1 %6683  ;;  %v6023_v45 = vpack.c.bf16 %v590_v42, %v586_v40  ;;  %6056 = vmatprep.subr.bf16.mxu1 %v6055_v17  ;;  %v6681_v46 = vunpack.i.h.bf16 %v6679_v41 }
  0xb3   : > { %v6686_v47 = vunpack.i.h.bf16 %v6684_v44  ;;  %v6685_v48 = vunpack.i.l.bf16 %v6684_v44  ;;  %6022 = vmatpush1.bf16.msra.mxu0 %v6021_v16 }
  0xb4   : > { %6024 = vmatprep.subr.bf16.mxu0 %v6023_v45  ;;  %v585_v1 = vsel %vm9948_vm5, %v6680_v43, %v6670_v34  ;;  %v587_v51 = vsel %vm9948_vm5, %v6671_v33, %v6681_v46 }
  0xb5   : > { %v6689_v6 = vpop.permute.xlu0 %6688  ;;  %v589_v15 = vsel %vm9948_vm5, %v6686_v47, %v6675_v39  ;;  %6058 = vmatpush1.bf16.msra.mxu1 %v6057_v19  ;;  %v588_v50 = vsel %vm9948_vm5, %v6681_v46, %v6685_v48 }
  0xb6   : > { %v6691_v49 = vunpack.i.h.bf16 %v6689_v6  ;;  %v6690_v8 = vunpack.i.l.bf16 %v6689_v6  ;;  %v6694_v13 = vpop.permute.xlu1 %6693  ;;  %v6025_v17 = vpack.c.bf16 %v589_v15, %v585_v1 }
  0xb7   : > { %v6696_v0 = vunpack.i.h.bf16 %v6694_v13  ;;  %v6695_v5 = vunpack.i.l.bf16 %v6694_v13 }
  0xb8   : > { %6026 = vmatpush1.bf16.msra.mxu0 %v6025_v17  ;;  %v592_v16 = vsel %vm9948_vm5, %v6690_v8, %v6691_v49  ;;  %v591_v52 = vsel %vm9948_vm5, %v6676_v38, %v6690_v8 }
  0xb9   : > { %v6699_v53 = vpop.permute.xlu0 %6698  ;;  %v6059_v54 = vpack.c.bf16 %v592_v16, %v588_v50  ;;  %v6061_v55 = vpack.c.bf16 %v591_v52, %v587_v51  ;;  %v651_v57 = vsel %vm9947_vm6, %v6695_v5, %v6696_v0 }
  0xba   : > { %v6701_v4 = vunpack.i.h.bf16 %v6699_v53  ;;  %v6700_v12 = vunpack.i.l.bf16 %v6699_v53  ;;  %v6704_v19 = vpop.permute.xlu1 %6703 }
  0xbb   : > { %6060 = vmatprep.subr.bf16.mxu1 %v6059_v54  ;;  %v6705_v56 = vunpack.i.l.bf16 %v6704_v19  ;;  %v6706_v59 = vunpack.i.h.bf16 %v6704_v19 }
  0xbc   : > { %6062 = vmatpush1.bf16.msra.mxu1 %v6061_v55  ;;  %v655_v58 = vsel %vm9947_vm6, %v6700_v12, %v6701_v4 }
  0xbd   : > { %v6709_v60 = vpop.permute.xlu0 %6708  ;;  %v6027_v61 = vpack.c.bf16 %v655_v58, %v651_v57  ;;  %v650_v9 = vsel %vm9947_vm6, %v6705_v56, %v6695_v5  ;;  %v652_v21 = vsel %vm9947_vm6, %v6696_v0, %v6706_v59 }
  0xbe   : > { %v6711_v62 = vunpack.i.h.bf16 %v6709_v60  ;;  %v6710_v63 = vunpack.i.l.bf16 %v6709_v60  ;;  %v6714_v2 = vpop.permute.xlu1 %6713 }
  0xbf   : > { %v6716_v3 = vunpack.i.h.bf16 %v6714_v2  ;;  %v6715_v7 = vunpack.i.l.bf16 %v6714_v2  ;;  %6028 = vmatprep.subr.bf16.mxu0 %v6027_v61 }
  0xc0   : > { %v654_v10 = vsel %vm9947_vm6, %v6711_v62, %v6700_v12  ;;  %v653_v11 = vsel %vm9947_vm6, %v6706_v59, %v6710_v63 }
  0xc1   : > { %v6719_v14 = vpop.permute.xlu0 %6718  ;;  %v6029_v18 = vpack.c.bf16 %v654_v10, %v650_v9  ;;  %v657_v20 = vsel %vm9947_vm6, %v6715_v7, %v6716_v3  ;;  %v656_v22 = vsel %vm9947_vm6, %v6701_v4, %v6715_v7  ;;  %v804_v7 = vld [vmem:[%s9943_s1] sm:$0xff]  ;;  %v807_v9 = vld [vmem:[%s9943_s1 + $0x18] sm:$0xff]  ;;  %v806_v10 = vld [vmem:[%s9943_s1 + $0x10] sm:$0xff] }
  0xc2   : > { %v6721_v23 = vunpack.i.h.bf16 %v6719_v14  ;;  %v6720_v24 = vunpack.i.l.bf16 %v6719_v14  ;;  %v6724_v25 = vpop.permute.xlu1 %6723  ;;  %v6063_v26 = vpack.c.bf16 %v657_v20, %v653_v11  ;;  %v6065_v27 = vpack.c.bf16 %v656_v22, %v652_v21 }
  0xc3   : > { %v6726_v28 = vunpack.i.h.bf16 %v6724_v25  ;;  %v6725_v29 = vunpack.i.l.bf16 %v6724_v25  ;;  %6030 = vmatpush1.bf16.msra.mxu0 %v6029_v18  ;;  %v203_v11 = vlaneseq }
  0xc4   : > { %6064 = vmatprep.subr.bf16.mxu1 %v6063_v26  ;;  %v716_v30 = vsel %vm714_vm7, %v6720_v24, %v6721_v23 }
  0xc5   : > { %6066 = vmatpush1.bf16.msra.mxu1 %v6065_v27  ;;  %v6729_v31 = vpop.permute.xlu0 %6728  ;;  %v720_v32 = vsel %vm714_vm7, %v6725_v29, %v6726_v28  ;;  %v204_v14 = vand.u32 127, %v203_v11  ;;  %v5880_v11 = vld [vmem:[%s9943_s1 + $0x28] sm:$0xff] }
  0xc6   : > { %v6730_v33 = vunpack.i.l.bf16 %v6729_v31  ;;  %v6734_v34 = vpop.permute.xlu1 %6733  ;;  %v6031_v35 = vpack.c.bf16 %v720_v32, %v716_v30  ;;  %v6731_v36 = vunpack.i.h.bf16 %v6729_v31 }
  0xc7   : > { %v6736_v37 = vunpack.i.h.bf16 %v6734_v34  ;;  %v6735_v38 = vunpack.i.l.bf16 %v6734_v34  ;;  %v205_v18 = vadd.s32 128, %v204_v14  ;;  %v206_v20 = vadd.s32 256, %v204_v14 }
  0xc8   : > { %6032 = vmatprep.subr.bf16.mxu0 %v6031_v35  ;;  %v715_v39 = vsel %vm714_vm7, %v6730_v33, %v6720_v24  ;;  %v717_v47 = vsel %vm714_vm7, %v6721_v23, %v6731_v36  ;;  %v212_v21 = vand.u32 31, %v204_v14  ;;  %v207_v23 = vadd.s32 384, %v204_v14  ;;  %v5884_v14 = vld [vmem:[%s9944_s2 + $0x18] sm:$0xff] }
  0xc9   : > { %v6739_v40 = vpop.permute.xlu0 %6738  ;;  %v719_v41 = vsel %vm714_vm7, %v6736_v37, %v6725_v29  ;;  %v718_v46 = vsel %vm714_vm7, %v6731_v36, %v6735_v38  ;;  %v219_v22 = vand.u32 31, %v205_v18  ;;  %v226_v24 = vand.u32 31, %v206_v20  ;;  %v5883_v18 = vld [vmem:[%s9944_s2 + $0x10] sm:$0xff] }
  0xca   : > { %v6741_v42 = vunpack.i.h.bf16 %v6739_v40  ;;  %v6740_v43 = vunpack.i.l.bf16 %v6739_v40  ;;  %v6744_v44 = vpop.permute.xlu1 %6743  ;;  %v6033_v45 = vpack.c.bf16 %v719_v41, %v715_v39  ;;  %vm256_vm9 = vcmp.ge.s32.totalorder %v212_v21, 8 }
  0xcb   : > { %v6746_v48 = vunpack.i.h.bf16 %v6744_v44  ;;  %v6745_v1 = vunpack.i.l.bf16 %v6744_v44  ;;  %vm260_vm10 = vcmp.lt.s32.totalorder %v212_v21, 24  ;;  %vm257_vm11 = vcmp.ge.s32.totalorder %v219_v22, 8 }
  0xcc   : > { %6034 = vmatpush1.bf16.msra.mxu0 %v6033_v45  ;;  %v722_v6 = vsel %vm714_vm7, %v6740_v43, %v6741_v42  ;;  %v721_v15 = vsel %vm714_vm7, %v6726_v28, %v6740_v43  ;;  %vm261_vm12 = vcmp.lt.s32.totalorder %v219_v22, 24  ;;  %v233_v27 = vand.u32 31, %v207_v23  ;;  %vm8177_vm15 = vmand %vm256_vm9, %vm260_vm10 }
  0xcd   : > { %v6749_v49 = vpop.permute.xlu0 %6748  ;;  %v6067_v8 = vpack.c.bf16 %v722_v6, %v718_v46  ;;  %v6069_v13 = vpack.c.bf16 %v721_v15, %v717_v47  ;;  %v781_v5 = vsel %vm9946_vm8, %v6745_v1, %v6746_v48  ;;  %vm258_vm13 = vcmp.ge.s32.totalorder %v226_v24, 8  ;;  %vm8406_vm4 = vmpackc.low %vm8177_vm15, %vm8177_vm15 }
  0xce   : > { %v6751_v17 = vunpack.i.h.bf16 %v6749_v49  ;;  %v6750_v50 = vunpack.i.l.bf16 %v6749_v49  ;;  %v6754_v51 = vpop.permute.xlu1 %6753  ;;  %vm262_vm14 = vcmp.lt.s32.totalorder %v226_v24, 24  ;;  %vm8189_vm5 = vcmp.ge.s32.totalorder %v233_v27, 8 }
  0xcf   : > { %6068 = vmatprep.subr.bf16.mxu1 %v6067_v8  ;;  %v6755_v0 = vunpack.i.l.bf16 %v6754_v51  ;;  %v6756_v52 = vunpack.i.h.bf16 %v6754_v51  ;;  %vm8185_vm6 = vmand %vm258_vm13, %vm262_vm14  ;;  %vm8193_vm9 = vcmp.lt.s32.totalorder %v233_v27, 24  ;;  %vm9955_vm13 = vcmask 15360  }
  0xd0   : > { %6070 = vmatpush1.bf16.msra.mxu1 %v6069_v13  ;;  %v785_v16 = vsel %vm9946_vm8, %v6750_v50, %v6751_v17  ;;  %vm8207_vm10 = vmand %vm8189_vm5, %vm8193_vm9  ;;  %vm9958_vm5 = vcmask 539648   ;;  %vm9954_vm14 = vcmask 1031168  }
  0xd1   : > { %v6759_v53 = vpop.permute.xlu0 %6758  ;;  %v6035_v54 = vpack.c.bf16 %v785_v16, %v781_v5  ;;  %v780_v57 = vsel %vm9946_vm8, %v6755_v0, %v6745_v1  ;;  %v782_v62 = vsel %vm9946_vm8, %v6746_v48, %v6756_v52  ;;  %v9964_v16 = vmov 0.0   ;;  %vm8422_vm3 = vmpackc.low %vm8207_vm10, %vm8207_vm10 }
  0xd2   : > { %v6761_v55 = vunpack.i.h.bf16 %v6759_v53  ;;  %v6760_v4 = vunpack.i.l.bf16 %v6759_v53  ;;  %v6764_v12 = vpop.permute.xlu1 %6763  ;;  %vm8441_vm1 = vmpackc.low %vm8185_vm6, %vm8185_vm6 }
  0xd3   : > { %v6766_v19 = vunpack.i.h.bf16 %v6764_v12  ;;  %v6765_v56 = vunpack.i.l.bf16 %v6764_v12  ;;  %6036 = vmatprep.subr.bf16.mxu0 %v6035_v54 }
  0xd4   : > { %v784_v58 = vsel %vm9946_vm8, %v6761_v55, %v6750_v50  ;;  %v783_v59 = vsel %vm9946_vm8, %v6756_v52, %v6760_v4 }
  0xd5   : > { %v6037_v60 = vpack.c.bf16 %v784_v58, %v780_v57  ;;  %v787_v61 = vsel %vm9946_vm8, %v6765_v56, %v6766_v19  ;;  %v786_v63 = vsel %vm9946_vm8, %v6751_v17, %v6765_v56  ;;  %vm8181_vm8 = vmand %vm257_vm11, %vm261_vm12  ;;  %vm9957_vm11 = vcmask 523264  }
  0xd6   : > { %v6071_v2 = vpack.c.bf16 %v787_v61, %v783_v59  ;;  %v6073_v3 = vpack.c.bf16 %v786_v63, %v782_v62  ;;  %vm9956_vm12 = vcmask 506880   ;;  %vm8387_vm9 = vmpackc.low %vm8181_vm8, %vm8181_vm8 }
  0xd7   : > { %6038 = vmatpush1.bf16.msra.mxu0 %v6037_v60 }
  0xd8   : > { %6072 = vmatprep.subr.bf16.mxu1 %v6071_v2 }
  0xd9   : > { %6074 = vmatpush1.bf16.msra.mxu1 %v6073_v3 }
  0xda   : > { %964 = vmatmul.mubr.f32.vlgmr.msra.gmra.mrb[0].mxu0 %v804_v7 }
  0xdb   : > { %5876 = vmatprep.mubr.msk.f32.mxu0 %vm892_vm0, %v807_v9 }
  0xdc   : > { %1041 = vmatmul.mubr.f32.vlgmr.msra.gmra.mrb[0].mxu1 %v804_v7 }
  0xdd   : > { %5878 = vmatprep.mubr.msk.f32.mxu1 %vm892_vm0, %v807_v9 }
  0xde   : > { %970 = vmatmul.mubr.f32.gmra.mrb[2].mxu0 %v806_v10 }
  0xdf   : > { %5885 = vmatprep.mubr.msk.f32.mxu0 %vm892_vm0, %v5880_v11 }
  0xe0   : > { %1047 = vmatmul.mubr.f32.gmra.mrb[2].mxu1 %v806_v10 }
  0xe1   : > { %5887 = vmatprep.mubr.msk.f32.mxu1 %vm892_vm0, %v5880_v11 }
  0xe2   : > { %v885_v25 = vpop.permute.xlu0 %884 }
  0xe3   : > { %v890_v32 = vpop.permute.xlu1 %889 }
 0x1ad   : > { %v965_v26 = vpop.f32.mrb[0].mxu0 }
 0x1ae   : > { %v967_v28 = vpop.f32.mrb[1].mxu0  ;;  %v966_v29 = vadd.f32 %v965_v26, %v885_v25 }
 0x1af   : > { %v968_v30 = vadd.f32 %v967_v28, %v885_v25  ;;  %v1042_v31 = vpop.f32.mrb[0].mxu1 }
 0x1b0   : > { %v1043_v35 = vadd.f32 %v1042_v31, %v885_v25  ;;  %v1044_v36 = vpop.f32.mrb[1].mxu1  ;;  %v1053_v37 = vmax.f32 %v966_v29, 0.0 }
 0x1b1   : > { %v1054_v38 = vmax.f32 %v968_v30, 0.0  ;;  %v1045_v42 = vadd.f32 %v1044_v36, %v885_v25  ;;  %v971_v43 = vpop.f32.mrb[2].mxu0 }
 0x1b2   : > { %v1055_v44 = vmax.f32 %v1043_v35, 0.0  ;;  %v972_v45 = vadd.f32 %v971_v43, %v890_v32  ;;  %v1069_v46 = vsel %vm8177_vm15, %v1053_v37, 0.0  ;;  %v973_v47 = vpop.f32.mrb[3].mxu0 }
 0x1b3   : > { %v1070_v48 = vsel %vm8181_vm8, %v1054_v38, 0.0  ;;  %v1056_v1 = vmax.f32 %v1045_v42, 0.0  ;;  %v974_v6 = vadd.f32 %v973_v47, %v890_v32  ;;  %v1048_v15 = vpop.f32.mrb[2].mxu1 }
 0x1b4   : > { %v1071_v49 = vsel %vm8185_vm6, %v1055_v44, 0.0  ;;  %v1057_v8 = vmax.f32 %v972_v45, 0.0  ;;  %v1049_v13 = vadd.f32 %v1048_v15, %v890_v32  ;;  %v1050_v17 = vpop.f32.mrb[3].mxu1  ;;  %v6789_v50 = vpack.i.bf16 %v1070_v48, %v1069_v46 }
 0x1b5   : > { %v1058_v0 = vmax.f32 %v974_v6, 0.0  ;;  %v1051_v5 = vadd.f32 %v1050_v17, %v890_v32  ;;  %v6774_v52 = vpack.i.bf16 %v1071_v49, %v9964_v16  ;;  %v1072_v12 = vsel %vm8207_vm10, %v1056_v1, 0.0 }
 0x1b6   : > { %v8212_v53 = vpack.c.bf16 %v1057_v8, %v1053_v37  ;;  %v1059_v54 = vmax.f32 %v1049_v13, 0.0  ;;  %v1073_v19 = vsel %vm8177_vm15, %v1057_v8, 0.0  ;;  %v6839_v61 = vpack.i.bf16 %v1071_v49, %v1070_v48 }
 0x1b7   : > { %v8214_v55 = vpack.c.bf16 %v1058_v0, %v1054_v38  ;;  %v1060_v4 = vmax.f32 %v1051_v5, 0.0  ;;  %6775 = vrot.lane.b32.xlu0 %v6774_v52, %s7937_s11  ;;  %v1074_v56 = vsel %vm8181_vm8, %v1058_v0, 0.0  ;;  %6770 = vrot.lane.b32.xlu1 %v6774_v52, %s7938_s14  ;;  %v6844_v62 = vpack.i.bf16 %v1072_v12, %v1069_v46 }
 0x1b8   : > { %v8223_v57 = vpack.c.bf16 %v1059_v54, %v1055_v44  ;;  %v1075_v58 = vsel %vm8185_vm6, %v1059_v54, 0.0  ;;  %v6794_v63 = vpack.i.bf16 %v9964_v16, %v1072_v12  ;;  %v6864_v2 = vpack.i.bf16 %v1074_v56, %v1073_v19 }
 0x1b9   : > { %v8228_v59 = vpack.c.bf16 %v1060_v4, %v1056_v1  ;;  %v1076_v60 = vsel %vm8207_vm10, %v1060_v4, 0.0  ;;  %v6919_v7 = vpack.i.bf16 %v1075_v58, %v1074_v56  ;;  %v6854_v9 = vpack.i.bf16 %v1073_v19, %v9964_v16 }
 0x1ba   : > { %v6879_v3 = vpack.i.bf16 %v1076_v60, %v1075_v58  ;;  %v6924_v10 = vpack.i.bf16 %v9964_v16, %v1076_v60 }
 0x1bb   : > { %6785 = vrot.lane.b32.xlu0 %v6774_v52, %s7939_s15  ;;  %6780 = vrot.lane.b32.xlu1 %v6774_v52, %s7940_s16 }
 0x1bf   : > { %6795 = vrot.lane.b32.xlu0 %v6794_v63, %s7938_s14  ;;  %6790 = vrot.lane.b32.xlu1 %v6789_v50, %s7938_s14 }
 0x1c3   : > { %6800 = vrot.lane.b32.xlu0 %v6789_v50, %s7937_s11  ;;  %6805 = vrot.lane.b32.xlu1 %v6794_v63, %s7937_s11 }
 0x1c7   : > { %6815 = vrot.lane.b32.xlu0 %v6794_v63, %s7940_s16  ;;  %6810 = vrot.lane.b32.xlu1 %v6789_v50, %s7940_s16 }
 0x1cb   : > { %6820 = vrot.lane.b32.xlu0 %v6789_v50, %s7939_s15  ;;  %6825 = vrot.lane.b32.xlu1 %v6794_v63, %s7939_s15 }
 0x1cf   : > { %6840 = vrot.lane.b32.xlu0 %v6839_v61, %s7938_s14  ;;  %6830 = vrot.lane.b32.xlu1 %v6839_v61, %s7941_s26 }
 0x1d3   : > { %6845 = vrot.lane.b32.xlu0 %v6844_v62, %s7938_s14  ;;  %6835 = vrot.lane.b32.xlu1 %v6844_v62, %s7941_s26 }
 0x1d7   : > { %6855 = vrot.lane.b32.xlu0 %v6854_v9, %s7941_s26  ;;  %6850 = vrot.lane.b32.xlu1 %v6839_v61, %s7937_s11 }
 0x1db   : > { %6865 = vrot.lane.b32.xlu0 %v6864_v2, %s7938_s14  ;;  %6860 = vrot.lane.b32.xlu1 %v6854_v9, %s7938_s14 }
 0x1df   : > { %6880 = vrot.lane.b32.xlu0 %v6879_v3, %s7937_s11  ;;  %6870 = vrot.lane.b32.xlu1 %v6879_v3, %s7938_s14 }
 0x1e3   : > { %6885 = vrot.lane.b32.xlu0 %v6864_v2, %s7940_s16  ;;  %6875 = vrot.lane.b32.xlu1 %v6864_v2, %s7937_s11 }
 0x1e7   : > { %6905 = vrot.lane.b32.xlu0 %v6854_v9, %s7937_s11  ;;  %6890 = vrot.lane.b32.xlu1 %v6879_v3, %s7940_s16 }
 0x1eb   : > { %6910 = vrot.lane.b32.xlu0 %v6839_v61, %s7940_s16  ;;  %6895 = vrot.lane.b32.xlu1 %v6864_v2, %s7939_s15 }
 0x1ef   : > { %6915 = vrot.lane.b32.xlu0 %v6879_v3, %s7939_s15  ;;  %6900 = vrot.lane.b32.xlu1 %v6844_v62, %s7937_s11 }
 0x1f3   : > { %6920 = vrot.lane.b32.xlu0 %v6919_v7, %s7941_s26  ;;  %6925 = vrot.lane.b32.xlu1 %v6924_v10, %s7941_s26 }
 0x1f7   : > { %6935 = vrot.lane.b32.xlu0 %v6924_v10, %s7938_s14  ;;  %6930 = vrot.lane.b32.xlu1 %v6919_v7, %s7938_s14 }
 0x1fb   : > { %6940 = vrot.lane.b32.xlu0 %v6919_v7, %s7937_s11  ;;  %6950 = vrot.lane.b32.xlu1 %v6924_v10, %s7937_s11 }
 0x1ff   : > { %6945 = vrot.lane.b32.xlu0 %v6844_v62, %s7940_s16  ;;  %6955 = vrot.lane.b32.xlu1 %v6919_v7, %s7940_s16 }
 0x203   : > { %6965 = vrot.lane.b32.xlu0 %v6924_v10, %s7940_s16  ;;  %6960 = vrot.lane.b32.xlu1 %v6854_v9, %s7940_s16 }
 0x207   : > { %1705 = vperm.xlu0 %6767, %v5884_v14   ;;  %1700 = vperm.xlu1 %6768, %v5883_v18  }
 0x229   : > { %v8284_v20 = vpop.permute.xlu0 %6775  ;;  %v6771_v21 = vpop.permute.xlu1 %6770 }
 0x22a   : > { %v6778_v43 = vunpack.i.h.bf16 %v8284_v20  ;;  %v6777_v44 = vunpack.i.l.bf16 %v8284_v20  ;;  %v6773_v45 = vunpack.i.h.bf16 %v6771_v21  ;;  %v6772_v46 = vunpack.i.l.bf16 %v6771_v21 }
 0x22d   : > { %v8286_v22 = vpop.permute.xlu0 %6785  ;;  %v8288_v23 = vpop.permute.xlu1 %6780 }
 0x22e   : > { %v6788_v8 = vunpack.i.h.bf16 %v8286_v22  ;;  %v6787_v13 = vunpack.i.l.bf16 %v8286_v22  ;;  %v6783_v4 = vunpack.i.h.bf16 %v8288_v23  ;;  %v6782_v12 = vunpack.i.l.bf16 %v8288_v23 }
 0x231   : > { %v6796_v24 = vpop.permute.xlu0 %6795  ;;  %v6791_v25 = vpop.permute.xlu1 %6790 }
 0x232   : > { %v6793_v41 = vunpack.i.h.bf16 %v6791_v25  ;;  %v6792_v42 = vunpack.i.l.bf16 %v6791_v25  ;;  %v6798_v48 = vunpack.i.h.bf16 %v6796_v24  ;;  %v6797_v1 = vunpack.i.l.bf16 %v6796_v24 }
 0x234   : > { %v1126_v17 = vsel %vm9958_vm5, %v6772_v46, %v6792_v42  ;;  %v1127_v50 = vsel %vm9958_vm5, %v6792_v42, %v6793_v41  ;;  %v1128_v60 = vsel %vm9958_vm5, %v6793_v41, %v6773_v45  ;;  %v1129_v2 = vsel %vm9958_vm5, %v6773_v45, %v6797_v1 }
 0x235   : > { %v8290_v26 = vpop.permute.xlu0 %6800  ;;  %v8292_v27 = vpop.permute.xlu1 %6805 }
 0x236   : > { %v6803_v0 = vunpack.i.h.bf16 %v8290_v26  ;;  %v6802_v5 = vunpack.i.l.bf16 %v8290_v26  ;;  %v6808_v3 = vunpack.i.h.bf16 %v8292_v27  ;;  %v6807_v7 = vunpack.i.l.bf16 %v8292_v27 }
 0x238   : > { %v1193_v11 = vsel %vm9957_vm11, %v6803_v0, %v6778_v43  ;;  %v1191_v14 = vsel %vm9957_vm11, %v6777_v44, %v6802_v5  ;;  %v1192_v1 = vsel %vm9957_vm11, %v6802_v5, %v6803_v0 }
 0x239   : > { %v8294_v28 = vpop.permute.xlu0 %6815  ;;  %v8296_v29 = vpop.permute.xlu1 %6810 }
 0x23a   : > { %v6817_v18 = vunpack.i.l.bf16 %v8294_v28  ;;  %v6813_v20 = vunpack.i.h.bf16 %v8296_v29  ;;  %v6812_v21 = vunpack.i.l.bf16 %v8296_v29  ;;  %v6818_v29 = vunpack.i.h.bf16 %v8294_v28 }
 0x23c   : > { %v1256_v28 = vsel %vm9956_vm12, %v6782_v12, %v6812_v21 }
 0x23d   : > { %v8298_v30 = vpop.permute.xlu0 %6820  ;;  %v8300_v31 = vpop.permute.xlu1 %6825 }
 0x23e   : > { %v6827_v12 = vunpack.i.l.bf16 %v8300_v31 }
 0x241   : > { %v8302_v32 = vpop.permute.xlu0 %6840  ;;  %v8304_v35 = vpop.permute.xlu1 %6830 }
 0x245   : > { %v8306_v36 = vpop.permute.xlu0 %6845  ;;  %v8308_v37 = vpop.permute.xlu1 %6835 }
 0x249   : > { %v8310_v38 = vpop.permute.xlu0 %6855  ;;  %v8312_v40 = vpop.permute.xlu1 %6850 }
 0x24d   : > { %v6866_v47 = vpop.permute.xlu0 %6865  ;;  %v8316_v49 = vpop.permute.xlu1 %6860 }
 0x24e   : > { %v6868_v6 = vunpack.i.h.bf16 %v6866_v47  ;;  %v6867_v15 = vunpack.i.l.bf16 %v6866_v47 }
 0x250   : > { %v1130_v52 = vsel %vm9958_vm5, %v6798_v48, %v6867_v15  ;;  %v1131_v54 = vsel %vm9958_vm5, %v6867_v15, %v6868_v6  ;;  %v1194_v48 = vsel %vm9957_vm11, %v6778_v43, %v6807_v7 }
 0x251   : > { %v6881_v19 = vpop.permute.xlu0 %6880  ;;  %v6075_v56 = vpack.c.bf16 %v1131_v54, %v1127_v50  ;;  %v6077_v58 = vpack.c.bf16 %v1130_v52, %v1126_v17  ;;  %v6871_v63 = vpop.permute.xlu1 %6870  ;;  %v1259_v17 = vsel %vm9956_vm12, %v6783_v4, %v6817_v18  ;;  %v6833_v18 = vunpack.i.h.bf16 %v8304_v35 }
 0x252   : > { %v6883_v61 = vunpack.i.h.bf16 %v6881_v19  ;;  %v6882_v62 = vunpack.i.l.bf16 %v6881_v19  ;;  %v6873_v9 = vunpack.i.h.bf16 %v6871_v63  ;;  %v6872_v10 = vunpack.i.l.bf16 %v6871_v63 }
 0x253   : > { %6076 = vmatprep.subr.bf16.mxu0 %v6075_v56  ;;  %v6822_v63 = vunpack.i.l.bf16 %v8298_v30 }
 0x254   : > { %6078 = vmatpush1.bf16.msra.mxu0 %v6077_v58  ;;  %v1132_v23 = vsel %vm9958_vm5, %v6868_v6, %v6872_v10  ;;  %v1133_v25 = vsel %vm9958_vm5, %v6872_v10, %v6873_v9  ;;  %v1198_v26 = vsel %vm9957_vm11, %v6882_v62, %v6883_v61  ;;  %v1258_v6 = vsel %vm9956_vm12, %v6813_v20, %v6783_v4 }
 0x255   : > { %v6886_v24 = vpop.permute.xlu0 %6885  ;;  %v6876_v42 = vpop.permute.xlu1 %6875  ;;  %v6113_v45 = vpack.c.bf16 %v1133_v25, %v1129_v2  ;;  %v6115_v44 = vpack.c.bf16 %v1132_v23, %v1128_v60  ;;  %v6117_v15 = vpack.c.bf16 %v1198_v26, %v1194_v48  ;;  %v1257_v58 = vsel %vm9956_vm12, %v6812_v21, %v6813_v20 }
 0x256   : > { %v6888_v27 = vunpack.i.h.bf16 %v6886_v24  ;;  %v6887_v41 = vunpack.i.l.bf16 %v6886_v24  ;;  %v6878_v46 = vunpack.i.h.bf16 %v6876_v42  ;;  %v6877_v47 = vunpack.i.l.bf16 %v6876_v42 }
 0x257   : > { %6114 = vmatprep.subr.bf16.mxu1 %v6113_v45  ;;  %v6823_v4 = vunpack.i.h.bf16 %v8298_v30  ;;  %v6828_v2 = vunpack.i.h.bf16 %v8300_v31  ;;  %v6843_v9 = vunpack.i.h.bf16 %v8302_v32  ;;  %v6842_v30 = vunpack.i.l.bf16 %v8302_v32 }
 0x258   : > { %v1197_v50 = vsel %vm9957_vm11, %v6878_v46, %v6882_v62  ;;  %v1195_v52 = vsel %vm9957_vm11, %v6808_v3, %v6877_v47  ;;  %6116 = vmatpush1.bf16.msra.mxu1 %v6115_v44  ;;  %v1196_v43 = vsel %vm9957_vm11, %v6877_v47, %v6878_v46  ;;  %v1261_v0 = vsel %vm9956_vm12, %v6887_v41, %v6888_v27 }
 0x259   : > { %v8347_v54 = vpop.permute.xlu0 %6905  ;;  %v6891_v5 = vpop.permute.xlu1 %6890  ;;  %6118 = vmatprep.subr.bf16.mxu1 %v6117_v15  ;;  %v6079_v19 = vpack.c.bf16 %v1196_v43, %v1192_v1  ;;  %v6081_v56 = vpack.c.bf16 %v1195_v52, %v1191_v14  ;;  %v6119_v62 = vpack.c.bf16 %v1197_v50, %v1193_v11  ;;  %v1260_v3 = vsel %vm9956_vm12, %v6818_v29, %v6887_v41 }
 0x25a   : > { %v6893_v60 = vunpack.i.h.bf16 %v6891_v5  ;;  %v6892_v61 = vunpack.i.l.bf16 %v6891_v5  ;;  %v6083_v7 = vpack.c.bf16 %v1261_v0, %v1257_v58  ;;  %v6832_v31 = vunpack.i.l.bf16 %v8304_v35 }
 0x25b   : > { %6080 = vmatprep.subr.bf16.mxu0 %v6079_v19  ;;  %v6085_v26 = vpack.c.bf16 %v1260_v3, %v1256_v28  ;;  %v1321_v41 = vsel %vm9955_vm13, %v6787_v13, %v6822_v63  ;;  %v6847_v32 = vunpack.i.l.bf16 %v8306_v36  ;;  %v1322_v42 = vsel %vm9955_vm13, %v6822_v63, %v6823_v4 }
 0x25c   : > { %v1262_v10 = vsel %vm9956_vm12, %v6888_v27, %v6892_v61  ;;  %6082 = vmatpush1.bf16.msra.mxu0 %v6081_v56  ;;  %6120 = vmatpush1.bf16.msra.mxu1 %v6119_v62  ;;  %v1263_v11 = vsel %vm9956_vm12, %v6892_v61, %v6893_v60  ;;  %v1323_v27 = vsel %vm9955_vm13, %v6823_v4, %v6788_v8  ;;  %v6848_v45 = vunpack.i.h.bf16 %v8306_v36 }
 0x25d   : > { %v8360_v14 = vpop.permute.xlu0 %6910  ;;  %v6896_v20 = vpop.permute.xlu1 %6895  ;;  %6084 = vmatprep.subr.bf16.mxu0 %v6083_v7  ;;  %v6121_v21 = vpack.c.bf16 %v1263_v11, %v1259_v17  ;;  %v6123_v23 = vpack.c.bf16 %v1262_v10, %v1258_v6  ;;  %v1324_v47 = vsel %vm9955_vm13, %v6788_v8, %v6827_v12  ;;  %v6838_v15 = vunpack.i.h.bf16 %v8308_v37 }
 0x25e   : > { %v6898_v24 = vunpack.i.h.bf16 %v6896_v20  ;;  %v6897_v25 = vunpack.i.l.bf16 %v6896_v20  ;;  %v6837_v17 = vunpack.i.l.bf16 %v8308_v37  ;;  %v1403_v22 = vsel %vm9954_vm14, %v6832_v31, %v6833_v18 }
 0x25f   : > { %6122 = vmatprep.subr.bf16.mxu1 %v6121_v21  ;;  %v8393_v8 = vsel %vm9958_vm5, %v6842_v30, %v6843_v9  ;;  %v8396_v52 = vsel %vm9958_vm5, %v6847_v32, %v6842_v30  ;;  %v6857_v43 = vunpack.i.l.bf16 %v8310_v38  ;;  %v6853_v28 = vunpack.i.h.bf16 %v8312_v40 }
 0x260   : > { %v1325_v35 = vsel %vm9955_vm13, %v6828_v2, %v6897_v25  ;;  %6086 = vmatpush1.bf16.msra.mxu0 %v6085_v26  ;;  %6124 = vmatpush1.bf16.msra.mxu1 %v6123_v23  ;;  %v1326_v46 = vsel %vm9955_vm13, %v6897_v25, %v6898_v24  ;;  %v6852_v5 = vunpack.i.l.bf16 %v8312_v40  ;;  %v8413_v60 = vsel %vm9958_vm5, %v6843_v9, %v6848_v45 }
 0x261   : > { %v6916_v44 = vpop.permute.xlu0 %6915  ;;  %v8380_v1 = vpop.permute.xlu1 %6900  ;;  %v6087_v29 = vpack.c.bf16 %v1326_v46, %v1322_v42  ;;  %v6089_v6 = vpack.c.bf16 %v1325_v35, %v1321_v41  ;;  %v6858_v61 = vunpack.i.h.bf16 %v8310_v38  ;;  %v1402_v7 = vsel %vm9954_vm14, %v6837_v17, %v6832_v31 }
 0x262   : > { %v6918_v48 = vunpack.i.h.bf16 %v6916_v44  ;;  %v6917_v13 = vunpack.i.l.bf16 %v6916_v44  ;;  %v1404_v12 = vsel %vm9954_vm14, %v6833_v18, %v6838_v15  ;;  %v6862_v10 = vunpack.i.l.bf16 %v8316_v49 }
 0x263   : > { %6088 = vmatprep.subr.bf16.mxu0 %v6087_v29  ;;  %v1405_v30 = vsel %vm9954_vm14, %v6838_v15, %v6857_v43  ;;  %v6908_v35 = vunpack.i.h.bf16 %v8347_v54  ;;  %v6902_v44 = vunpack.i.l.bf16 %v8380_v1 }
 0x264   : > { %v1327_v0 = vsel %vm9955_vm13, %v6898_v24, %v6917_v13  ;;  %v1328_v37 = vsel %vm9955_vm13, %v6917_v13, %v6918_v48  ;;  %6090 = vmatpush1.bf16.msra.mxu0 %v6089_v6  ;;  %v1469_v46 = vsel %vm9958_vm5, %v6848_v45, %v6862_v10  ;;  %vm2061_vm13 = vcmask 760832  }
 0x265   : > { %v6921_v19 = vpop.permute.xlu0 %6920  ;;  %v6125_v56 = vpack.c.bf16 %v1328_v37, %v1324_v47  ;;  %v6127_v4 = vpack.c.bf16 %v1327_v0, %v1323_v27  ;;  %v6926_v2 = vpop.permute.xlu1 %6925  ;;  %6093 = vmatprep.subr.msk.bf16.mxu0 %vm8387_vm9, %v8214_v55  ;;  %v6863_v27 = vunpack.i.h.bf16 %v8316_v49  ;;  %v6903_v49 = vunpack.i.h.bf16 %v8380_v1 }
 0x266   : > { %v6923_v62 = vunpack.i.h.bf16 %v6921_v19  ;;  %v6922_v63 = vunpack.i.l.bf16 %v6921_v19  ;;  %v6928_v9 = vunpack.i.h.bf16 %v6926_v2  ;;  %v6927_v38 = vunpack.i.l.bf16 %v6926_v2 }
 0x267   : > { %6126 = vmatprep.subr.bf16.mxu1 %v6125_v56  ;;  %v6907_v37 = vunpack.i.l.bf16 %v8347_v54  ;;  %v1530_v19 = vsel %vm9957_vm11, %v6902_v44, %v6852_v5 }
 0x268   : > { %v1406_v11 = vsel %vm9954_vm14, %v6858_v61, %v6922_v63  ;;  %6128 = vmatpush1.bf16.msra.mxu1 %v6127_v4  ;;  %v1407_v55 = vsel %vm9954_vm14, %v6922_v63, %v6923_v62  ;;  %6096 = vmatpush1.bf16.msk.msra.mxu0 %vm8406_vm4, %v8212_v53  ;;  %v1531_v53 = vsel %vm9957_vm11, %v6852_v5, %v6853_v28 }
 0x269   : > { %v6936_v20 = vpop.permute.xlu0 %6935  ;;  %6131 = vmatprep.subr.msk.bf16.mxu1 %vm8422_vm3, %v8228_v59  ;;  %v6097_v18 = vpack.c.bf16 %v1407_v55, %v1403_v22  ;;  %v6099_v21 = vpack.c.bf16 %v1406_v11, %v1402_v7  ;;  %v1408_v31 = vsel %vm9954_vm14, %v6923_v62, %v6927_v38  ;;  %v6931_v59 = vpop.permute.xlu1 %6930  ;;  %v1409_v26 = vsel %vm9954_vm14, %v6927_v38, %v6928_v9 }
 0x26a   : > { %v6938_v24 = vunpack.i.h.bf16 %v6936_v20  ;;  %v6937_v25 = vunpack.i.l.bf16 %v6936_v20  ;;  %v6933_v41 = vunpack.i.h.bf16 %v6931_v59  ;;  %v6932_v32 = vunpack.i.l.bf16 %v6931_v59 }
 0x26b   : > { %6098 = vmatprep.subr.bf16.mxu0 %v6097_v18  ;;  %v6135_v42 = vpack.c.bf16 %v1409_v26, %v1405_v30  ;;  %v6137_v6 = vpack.c.bf16 %v1408_v31, %v1404_v12  ;;  %v1533_v5 = vsel %vm9957_vm11, %v6903_v49, %v6907_v37  ;;  %vm1932_vm14 = vcmask 809984  }
 0x26c   : > { %6134 = vmatpush1.bf16.msk.msra.mxu1 %vm8441_vm1, %v8223_v57  ;;  %v1473_v47 = vsel %vm9958_vm5, %v6937_v25, %v6938_v24  ;;  %v1470_v48 = vsel %vm9958_vm5, %v6863_v27, %v6932_v32  ;;  %6100 = vmatpush1.bf16.msra.mxu0 %v6099_v21  ;;  %v1471_v29 = vsel %vm9958_vm5, %v6932_v32, %v6933_v41 }
 0x26d   : > { %v6941_v13 = vpop.permute.xlu0 %6940  ;;  %6136 = vmatprep.subr.bf16.mxu1 %v6135_v42  ;;  %v6951_v22 = vpop.permute.xlu1 %6950  ;;  %v6101_v57 = vpack.c.bf16 %v1471_v29, %v8393_v8  ;;  %v6103_v36 = vpack.c.bf16 %v1470_v48, %v8396_v52  ;;  %v1472_v45 = vsel %vm9958_vm5, %v6933_v41, %v6937_v25  ;;  %v6139_v1 = vpack.c.bf16 %v1473_v47, %v1469_v46  ;;  %v5879_v46 = vld [vmem:[%s9943_s1 + $0x20] sm:$0xff]  ;;  %v5882_v47 = vld [vmem:[%s9943_s1 + $0x38] sm:$0xff] }
 0x26e   : > { %v6943_v15 = vunpack.i.h.bf16 %v6941_v13  ;;  %v6942_v17 = vunpack.i.l.bf16 %v6941_v13  ;;  %v6953_v43 = vunpack.i.h.bf16 %v6951_v22  ;;  %v6952_v0 = vunpack.i.l.bf16 %v6951_v22 }
 0x26f   : > { %6102 = vmatprep.subr.bf16.mxu0 %v6101_v57  ;;  %v6913_v8 = vunpack.i.h.bf16 %v8360_v14  ;;  %v6912_v52 = vunpack.i.l.bf16 %v8360_v14  ;;  %v6141_v2 = vpack.c.bf16 %v1472_v45, %v8413_v60  ;;  %v1532_v14 = vsel %vm9957_vm11, %v6853_v28, %v6903_v49  ;;  %v5881_v49 = vld [vmem:[%s9943_s1 + $0x30] sm:$0xff] }
 0x270   : > { %v1534_v56 = vsel %vm9957_vm11, %v6908_v35, %v6942_v17  ;;  %6138 = vmatpush1.bf16.msra.mxu1 %v6137_v6  ;;  %v1535_v4 = vsel %vm9957_vm11, %v6942_v17, %v6943_v15  ;;  %6104 = vmatpush1.bf16.msra.mxu0 %v6103_v36  ;;  %v1537_v7 = vsel %vm9957_vm11, %v6952_v0, %v6953_v43  ;;  %vm2207_vm5 = vcmask 1022976  }
 0x271   : > { %v6946_v61 = vpop.permute.xlu0 %6945  ;;  %6140 = vmatprep.subr.bf16.mxu1 %v6139_v1  ;;  %v6105_v62 = vpack.c.bf16 %v1535_v4, %v1531_v53  ;;  %v6107_v63 = vpack.c.bf16 %v1534_v56, %v1530_v19  ;;  %v6956_v54 = vpop.permute.xlu1 %6955  ;;  %v1536_v12 = vsel %vm9957_vm11, %v6943_v15, %v6952_v0  ;;  %v6143_v10 = vpack.c.bf16 %v1537_v7, %v1533_v5 }
 0x272   : > { %v6958_v9 = vunpack.i.h.bf16 %v6956_v54  ;;  %v6957_v38 = vunpack.i.l.bf16 %v6956_v54  ;;  %v6948_v11 = vunpack.i.h.bf16 %v6946_v61  ;;  %v6947_v55 = vunpack.i.l.bf16 %v6946_v61 }
 0x273   : > { %6106 = vmatprep.subr.bf16.mxu0 %v6105_v62  ;;  %v1595_v60 = vsel %vm9956_vm12, %v6912_v52, %v6913_v8  ;;  %v6145_v24 = vpack.c.bf16 %v1536_v12, %v1532_v14  ;;  %vm9959_vm11 = vcmask 285696  }
 0x274   : > { %6142 = vmatpush1.bf16.msra.mxu1 %v6141_v2  ;;  %6108 = vmatpush1.bf16.msra.mxu0 %v6107_v63  ;;  %v1599_v20 = vsel %vm9956_vm12, %v6957_v38, %v6958_v9  ;;  %v1596_v26 = vsel %vm9956_vm12, %v6913_v8, %v6948_v11  ;;  %v1594_v27 = vsel %vm9956_vm12, %v6947_v55, %v6912_v52 }
 0x275   : > { %v6966_v30 = vpop.permute.xlu0 %6965  ;;  %6144 = vmatprep.subr.bf16.mxu1 %v6143_v10  ;;  %v6961_v53 = vpop.permute.xlu1 %6960  ;;  %v6109_v31 = vpack.c.bf16 %v1599_v20, %v1595_v60 }
 0x276   : > { %v6968_v18 = vunpack.i.h.bf16 %v6966_v30  ;;  %v6967_v21 = vunpack.i.l.bf16 %v6966_v30  ;;  %v6963_v25 = vunpack.i.h.bf16 %v6961_v53  ;;  %v6962_v59 = vunpack.i.l.bf16 %v6961_v53 }
 0x277   : > { %6110 = vmatprep.subr.bf16.mxu0 %v6109_v31 }
 0x278   : > { %v1600_v40 = vsel %vm9956_vm12, %v6958_v9, %v6967_v21  ;;  %6146 = vmatpush1.bf16.msra.mxu1 %v6145_v24  ;;  %v1601_v28 = vsel %vm9956_vm12, %v6967_v21, %v6968_v18  ;;  %v1598_v41 = vsel %vm9956_vm12, %v6963_v25, %v6957_v38  ;;  %v1597_v32 = vsel %vm9956_vm12, %v6948_v11, %v6962_v59 }
 0x279   : > { %v6149_v42 = vpack.c.bf16 %v1600_v40, %v1596_v26  ;;  %v6111_v35 = vpack.c.bf16 %v1598_v41, %v1594_v27  ;;  %v6147_v44 = vpack.c.bf16 %v1601_v28, %v1597_v32  ;;  %v5890_v32 = vld [vmem:[%s9943_s1 + $0x48] sm:$0xff]  ;;  %vm2126_vm12 = vcmask 23552  }
 0x27b   : > { %6112 = vmatpush1.bf16.msra.mxu0 %v6111_v35  ;;  %6148 = vmatprep.subr.bf16.mxu1 %v6147_v44  ;;  %v5893_v35 = vld [vmem:[%s9944_s2 + $0x20] sm:$0xff] }
 0x27c   : > { %6150 = vmatpush1.bf16.msra.mxu1 %v6149_v42  ;;  %v5894_v42 = vld [vmem:[%s9944_s2 + $0x28] sm:$0xff] }
 0x27e   : > { %1779 = vmatmul.mubr.f32.vlgmr.msra.gmra.mrb[4].mxu0 %v5879_v46 }
 0x27f   : > { %1856 = vmatmul.mubr.f32.vlgmr.msra.gmra.mrb[4].mxu1 %v5879_v46  ;;  %5886 = vmatprep.mubr.msk.f32.mxu0 %vm892_vm0, %v5882_v47 }
 0x280   : > { %5888 = vmatprep.mubr.msk.f32.mxu1 %vm892_vm0, %v5882_v47 }
 0x282   : > { %1785 = vmatmul.mubr.f32.gmra.mrb[6].mxu0 %v5881_v49 }
 0x283   : > { %1862 = vmatmul.mubr.f32.gmra.mrb[6].mxu1 %v5881_v49  ;;  %5895 = vmatprep.mubr.msk.f32.mxu0 %vm892_vm0, %v5890_v32 }
 0x284   : > { %5897 = vmatprep.mubr.msk.f32.mxu1 %vm892_vm0, %v5890_v32 }
 0x286   : > { %v1701_v48 = vpop.permute.xlu1 %1700  ;;  %v1706_v43 = vpop.permute.xlu0 %1705 }
 0x351   : > { %v1780_v13 = vpop.f32.mrb[4].mxu0 }
 0x352   : > { %v1781_v29 = vadd.f32 %v1780_v13, %v1701_v48  ;;  %v1782_v6 = vpop.f32.mrb[5].mxu0  ;;  %v1857_v15 = vpop.f32.mrb[4].mxu1 }
 0x353   : > { %v1783_v17 = vadd.f32 %v1782_v6, %v1701_v48  ;;  %v1858_v22 = vadd.f32 %v1857_v15, %v1701_v48  ;;  %v1859_v57 = vpop.f32.mrb[5].mxu1 }
 0x354   : > { %v1868_v36 = vmax.f32 %v1781_v29, 0.0  ;;  %v1860_v45 = vadd.f32 %v1859_v57, %v1701_v48 }
 0x355   : > { %v1869_v0 = vmax.f32 %v1783_v17, 0.0  ;;  %v1870_v1 = vmax.f32 %v1858_v22, 0.0  ;;  %v1786_v37 = vpop.f32.mrb[6].mxu0 }
 0x356   : > { %v1871_v19 = vmax.f32 %v1860_v45, 0.0  ;;  %v1787_v56 = vadd.f32 %v1786_v37, %v1706_v43  ;;  %v1788_v4 = vpop.f32.mrb[7].mxu0  ;;  %v1863_v8 = vpop.f32.mrb[6].mxu1  ;;  %v1876_v54 = vsel %vm8177_vm15, %v1868_v36, 0.0 }
 0x357   : > { %v1878_v52 = vsel %vm8185_vm6, %v1870_v1, 0.0  ;;  %v1789_v61 = vadd.f32 %v1788_v4, %v1706_v43  ;;  %v1864_v62 = vadd.f32 %v1863_v8, %v1706_v43  ;;  %v1865_v63 = vpop.f32.mrb[7].mxu1  ;;  %v1877_v12 = vsel %vm8181_vm8, %v1869_v0, 0.0 }
 0x358   : > { %v1872_v2 = vmax.f32 %v1787_v56, 0.0  ;;  %v1866_v5 = vadd.f32 %v1865_v63, %v1706_v43  ;;  %v6974_v7 = vpack.i.bf16 %v1878_v52, %v9964_v16  ;;  %v1879_v10 = vsel %vm8207_vm10, %v1871_v19, 0.0 }
 0x359   : > { %v1873_v9 = vmax.f32 %v1789_v61, 0.0  ;;  %v1874_v38 = vmax.f32 %v1864_v62, 0.0  ;;  %v6989_v21 = vpack.i.bf16 %v1877_v12, %v1876_v54  ;;  %v7039_v24 = vpack.i.bf16 %v1878_v52, %v1877_v12 }
 0x35a   : > { %v8511_v11 = vpack.c.bf16 %v1872_v2, %v1868_v36  ;;  %v1875_v14 = vmax.f32 %v1866_v5, 0.0  ;;  %6975 = vrot.lane.b32.xlu0 %v6974_v7, %s7933_s24  ;;  %v1880_v55 = vsel %vm8177_vm15, %v1872_v2, 0.0  ;;  %6970 = vrot.lane.b32.xlu1 %v6974_v7, %s7942_s28  ;;  %v7044_v25 = vpack.i.bf16 %v1879_v10, %v1876_v54 }
 0x35b   : > { %v8516_v30 = vpack.c.bf16 %v1873_v9, %v1869_v0  ;;  %v8518_v60 = vpack.c.bf16 %v1874_v38, %v1870_v1  ;;  %v1881_v20 = vsel %vm8181_vm8, %v1873_v9, 0.0  ;;  %v1882_v53 = vsel %vm8185_vm6, %v1874_v38, 0.0 }
 0x35c   : > { %v8523_v18 = vpack.c.bf16 %v1875_v14, %v1871_v19  ;;  %v1883_v31 = vsel %vm8207_vm10, %v1875_v14, 0.0  ;;  %v6994_v59 = vpack.i.bf16 %v9964_v16, %v1879_v10  ;;  %v7064_v26 = vpack.i.bf16 %v1881_v20, %v1880_v55 }
 0x35d   : > { %v7079_v40 = vpack.i.bf16 %v1883_v31, %v1882_v53  ;;  %v7119_v28 = vpack.i.bf16 %v1882_v53, %v1881_v20  ;;  %v7054_v27 = vpack.i.bf16 %v1880_v55, %v9964_v16  ;;  %v7124_v41 = vpack.i.bf16 %v9964_v16, %v1883_v31 }
 0x35e   : > { %6985 = vrot.lane.b32.xlu0 %v6974_v7, %s7943_s29  ;;  %6980 = vrot.lane.b32.xlu1 %v6974_v7, %s7944_s30 }
 0x362   : > { %6995 = vrot.lane.b32.xlu0 %v6994_v59, %s7942_s28  ;;  %6990 = vrot.lane.b32.xlu1 %v6989_v21, %s7942_s28 }
 0x366   : > { %7000 = vrot.lane.b32.xlu0 %v6989_v21, %s7933_s24  ;;  %7005 = vrot.lane.b32.xlu1 %v6994_v59, %s7933_s24 }
 0x36a   : > { %7015 = vrot.lane.b32.xlu0 %v6994_v59, %s7944_s30  ;;  %7010 = vrot.lane.b32.xlu1 %v6989_v21, %s7944_s30 }
 0x36e   : > { %7020 = vrot.lane.b32.xlu0 %v6989_v21, %s7943_s29  ;;  %7025 = vrot.lane.b32.xlu1 %v6994_v59, %s7943_s29 }
 0x372   : > { %7040 = vrot.lane.b32.xlu0 %v7039_v24, %s7945_s4  ;;  %7030 = vrot.lane.b32.xlu1 %v7039_v24, %s7946_s5 }
 0x376   : > { %7045 = vrot.lane.b32.xlu0 %v7044_v25, %s7945_s4  ;;  %7035 = vrot.lane.b32.xlu1 %v7044_v25, %s7946_s5 }
 0x37a   : > { %7055 = vrot.lane.b32.xlu0 %v7054_v27, %s7946_s5  ;;  %7050 = vrot.lane.b32.xlu1 %v7039_v24, %s7928_s19 }
 0x37e   : > { %7065 = vrot.lane.b32.xlu0 %v7064_v26, %s7942_s28  ;;  %7060 = vrot.lane.b32.xlu1 %v7054_v27, %s7945_s4 }
 0x382   : > { %7080 = vrot.lane.b32.xlu0 %v7079_v40, %s7933_s24  ;;  %7070 = vrot.lane.b32.xlu1 %v7079_v40, %s7942_s28 }
 0x386   : > { %7085 = vrot.lane.b32.xlu0 %v7064_v26, %s7944_s30  ;;  %7075 = vrot.lane.b32.xlu1 %v7064_v26, %s7933_s24 }
 0x38a   : > { %7105 = vrot.lane.b32.xlu0 %v7054_v27, %s7928_s19  ;;  %7090 = vrot.lane.b32.xlu1 %v7079_v40, %s7944_s30 }
 0x38e   : > { %7110 = vrot.lane.b32.xlu0 %v7039_v24, %s7947_s6  ;;  %7095 = vrot.lane.b32.xlu1 %v7064_v26, %s7943_s29 }
 0x392   : > { %7115 = vrot.lane.b32.xlu0 %v7079_v40, %s7943_s29  ;;  %7100 = vrot.lane.b32.xlu1 %v7044_v25, %s7928_s19 }
 0x396   : > { %7120 = vrot.lane.b32.xlu0 %v7119_v28, %s7946_s5  ;;  %7125 = vrot.lane.b32.xlu1 %v7124_v41, %s7946_s5 }
 0x39a   : > { %7135 = vrot.lane.b32.xlu0 %v7124_v41, %s7945_s4  ;;  %7130 = vrot.lane.b32.xlu1 %v7119_v28, %s7945_s4 }
 0x39e   : > { %7140 = vrot.lane.b32.xlu0 %v7119_v28, %s7928_s19  ;;  %7150 = vrot.lane.b32.xlu1 %v7124_v41, %s7928_s19 }
 0x3a2   : > { %7145 = vrot.lane.b32.xlu0 %v7044_v25, %s7947_s6  ;;  %7155 = vrot.lane.b32.xlu1 %v7119_v28, %s7947_s6 }
 0x3a6   : > { %7165 = vrot.lane.b32.xlu0 %v7124_v41, %s7947_s6  ;;  %7160 = vrot.lane.b32.xlu1 %v7054_v27, %s7947_s6 }
 0x3aa   : > { %2513 = vperm.xlu0 %6767, %v5894_v42   ;;  %2508 = vperm.xlu1 %6768, %v5893_v35  }
 0x3ae   : > { %7170 = vrot.lane.b32.xlu1 %v9964_v16, %s7948_s7  ;;  %7175 = vrot.lane.b32.xlu0 %v9964_v16, %s7949_s25 }
 0x3b2   : > { %7180 = vrot.lane.b32.xlu1 %v9964_v16, %s7948_s7 }
 0x3cc   : > { %v8583_v44 = vpop.permute.xlu0 %6975  ;;  %v6971_v46 = vpop.permute.xlu1 %6970 }
 0x3cd   : > { %v6978_v4 = vunpack.i.h.bf16 %v8583_v44  ;;  %v6977_v8 = vunpack.i.l.bf16 %v8583_v44  ;;  %v6973_v52 = vunpack.i.h.bf16 %v6971_v46  ;;  %v6972_v61 = vunpack.i.l.bf16 %v6971_v46 }
 0x3d0   : > { %v8585_v47 = vpop.permute.xlu0 %6985  ;;  %v8587_v49 = vpop.permute.xlu1 %6980 }
 0x3d1   : > { %v6988_v12 = vunpack.i.h.bf16 %v8585_v47  ;;  %v6987_v9 = vunpack.i.l.bf16 %v8585_v47  ;;  %v6983_v53 = vunpack.i.h.bf16 %v8587_v49  ;;  %v6982_v31 = vunpack.i.l.bf16 %v8587_v49 }
 0x3d4   : > { %v6996_v48 = vpop.permute.xlu0 %6995  ;;  %v6991_v13 = vpop.permute.xlu1 %6990 }
 0x3d5   : > { %v6993_v19 = vunpack.i.h.bf16 %v6991_v13  ;;  %v6992_v56 = vunpack.i.l.bf16 %v6991_v13  ;;  %v6998_v63 = vunpack.i.h.bf16 %v6996_v48  ;;  %v6997_v54 = vunpack.i.l.bf16 %v6996_v48 }
 0x3d7   : > { %v1933_v38 = vsel %vm1932_vm14, %v6972_v61, %v6992_v56  ;;  %v1934_v10 = vsel %vm1932_vm14, %v6992_v56, %v6993_v19  ;;  %v1935_v26 = vsel %vm1932_vm14, %v6993_v19, %v6973_v52  ;;  %v1936_v41 = vsel %vm1932_vm14, %v6973_v52, %v6997_v54 }
 0x3d8   : > { %v8589_v29 = vpop.permute.xlu0 %7000  ;;  %v8591_v6 = vpop.permute.xlu1 %7005 }
 0x3d9   : > { %v7003_v14 = vunpack.i.h.bf16 %v8589_v29  ;;  %v7002_v55 = vunpack.i.l.bf16 %v8589_v29  ;;  %v7008_v32 = vunpack.i.h.bf16 %v8591_v6  ;;  %v7007_v42 = vunpack.i.l.bf16 %v8591_v6 }
 0x3db   : > { %v1999_v46 = vsel %vm714_vm7, %v7003_v14, %v6978_v4  ;;  %v1997_v49 = vsel %vm714_vm7, %v6977_v8, %v7002_v55 }
 0x3dc   : > { %v8593_v15 = vpop.permute.xlu0 %7015  ;;  %v8595_v17 = vpop.permute.xlu1 %7010 }
 0x3dd   : > { %v7017_v48 = vunpack.i.l.bf16 %v8593_v15  ;;  %v7013_v13 = vunpack.i.h.bf16 %v8595_v17  ;;  %v7012_v29 = vunpack.i.l.bf16 %v8595_v17  ;;  %v7018_v17 = vunpack.i.h.bf16 %v8593_v15 }
 0x3df   : > { %v2062_v15 = vsel %vm2061_vm13, %v6982_v31, %v7012_v29 }
 0x3e0   : > { %v8597_v22 = vpop.permute.xlu0 %7020  ;;  %v8599_v57 = vpop.permute.xlu1 %7025 }
 0x3e1   : > { %v7027_v31 = vunpack.i.l.bf16 %v8599_v57 }
 0x3e4   : > { %v8601_v36 = vpop.permute.xlu0 %7040  ;;  %v8603_v45 = vpop.permute.xlu1 %7030 }
 0x3e8   : > { %v8605_v43 = vpop.permute.xlu0 %7045  ;;  %v8607_v0 = vpop.permute.xlu1 %7035 }
 0x3ec   : > { %v8609_v1 = vpop.permute.xlu0 %7055  ;;  %v8611_v37 = vpop.permute.xlu1 %7050 }
 0x3ed   : > { %v7057_v47 = vunpack.i.l.bf16 %v8609_v1 }
 0x3f0   : > { %v7066_v62 = vpop.permute.xlu0 %7065  ;;  %v8615_v7 = vpop.permute.xlu1 %7060 }
 0x3f1   : > { %v7068_v2 = vunpack.i.h.bf16 %v7066_v62  ;;  %v7067_v5 = vunpack.i.l.bf16 %v7066_v62 }
 0x3f3   : > { %v1937_v20 = vsel %vm1932_vm14, %v6998_v63, %v7067_v5  ;;  %v1938_v21 = vsel %vm1932_vm14, %v7067_v5, %v7068_v2 }
 0x3f4   : > { %v7081_v24 = vpop.permute.xlu0 %7080  ;;  %v6151_v25 = vpack.c.bf16 %v1938_v21, %v1934_v10  ;;  %v6153_v59 = vpack.c.bf16 %v1937_v20, %v1933_v38  ;;  %v7071_v27 = vpop.permute.xlu1 %7070  ;;  %v2000_v10 = vsel %vm714_vm7, %v6978_v4, %v7007_v42  ;;  %v1998_v20 = vsel %vm714_vm7, %v7002_v55, %v7003_v14 }
 0x3f5   : > { %v7083_v40 = vunpack.i.h.bf16 %v7081_v24  ;;  %v7082_v28 = vunpack.i.l.bf16 %v7081_v24  ;;  %v7073_v35 = vunpack.i.h.bf16 %v7071_v27  ;;  %v7072_v44 = vunpack.i.l.bf16 %v7071_v27 }
 0x3f6   : > { %6152 = vmatprep.subr.bf16.mxu0 %v6151_v25  ;;  %v2065_v24 = vsel %vm2061_vm13, %v6983_v53, %v7017_v48 }
 0x3f7   : > { %6154 = vmatpush1.bf16.msra.mxu0 %v6153_v59  ;;  %v1939_v19 = vsel %vm1932_vm14, %v7068_v2, %v7072_v44  ;;  %v1940_v6 = vsel %vm1932_vm14, %v7072_v44, %v7073_v35  ;;  %v2004_v52 = vsel %vm714_vm7, %v7082_v28, %v7083_v40  ;;  %v2064_v2 = vsel %vm2061_vm13, %v7013_v13, %v6983_v53 }
 0x3f8   : > { %v7086_v56 = vpop.permute.xlu0 %7085  ;;  %v7076_v63 = vpop.permute.xlu1 %7075  ;;  %v6189_v54 = vpack.c.bf16 %v1940_v6, %v1936_v41  ;;  %v6191_v8 = vpack.c.bf16 %v1939_v19, %v1935_v26  ;;  %v6193_v21 = vpack.c.bf16 %v2004_v52, %v2000_v10  ;;  %v2063_v41 = vsel %vm2061_vm13, %v7012_v29, %v7013_v13 }
 0x3f9   : > { %v7088_v61 = vunpack.i.h.bf16 %v7086_v56  ;;  %v7087_v62 = vunpack.i.l.bf16 %v7086_v56  ;;  %v7078_v5 = vunpack.i.h.bf16 %v7076_v63  ;;  %v7077_v38 = vunpack.i.l.bf16 %v7076_v63 }
 0x3fa   : > { %6190 = vmatprep.subr.bf16.mxu1 %v6189_v54  ;;  %v7023_v53 = vunpack.i.h.bf16 %v8597_v22  ;;  %v7022_v35 = vunpack.i.l.bf16 %v8597_v22  ;;  %v7028_v44 = vunpack.i.h.bf16 %v8599_v57  ;;  %v7043_v56 = vunpack.i.h.bf16 %v8601_v36 }
 0x3fb   : > { %v2003_v25 = vsel %vm714_vm7, %v7078_v5, %v7082_v28  ;;  %v2001_v59 = vsel %vm714_vm7, %v7008_v32, %v7077_v38  ;;  %6192 = vmatpush1.bf16.msra.mxu1 %v6191_v8  ;;  %v2002_v4 = vsel %vm714_vm7, %v7077_v38, %v7078_v5  ;;  %v2067_v14 = vsel %vm2061_vm13, %v7087_v62, %v7088_v61 }
 0x3fc   : > { %v8646_v26 = vpop.permute.xlu0 %7105  ;;  %v7091_v55 = vpop.permute.xlu1 %7090  ;;  %6194 = vmatprep.subr.bf16.mxu1 %v6193_v21  ;;  %v6155_v40 = vpack.c.bf16 %v2002_v4, %v1998_v20  ;;  %v6157_v27 = vpack.c.bf16 %v2001_v59, %v1997_v49  ;;  %v6195_v32 = vpack.c.bf16 %v2003_v25, %v1999_v46  ;;  %v2066_v48 = vsel %vm2061_vm13, %v7018_v17, %v7087_v62 }
 0x3fd   : > { %v7093_v28 = vunpack.i.h.bf16 %v7091_v55  ;;  %v7092_v42 = vunpack.i.l.bf16 %v7091_v55  ;;  %v6159_v19 = vpack.c.bf16 %v2067_v14, %v2063_v41  ;;  %v7042_v22 = vunpack.i.l.bf16 %v8601_v36 }
 0x3fe   : > { %6156 = vmatprep.subr.bf16.mxu0 %v6155_v40  ;;  %v7033_v29 = vunpack.i.h.bf16 %v8603_v45  ;;  %v7032_v57 = vunpack.i.l.bf16 %v8603_v45  ;;  %v6161_v8 = vpack.c.bf16 %v2066_v48, %v2062_v15  ;;  %v2127_v5 = vsel %vm2126_vm12, %v6987_v9, %v7022_v35 }
 0x3ff   : > { %v2068_v49 = vsel %vm2061_vm13, %v7088_v61, %v7092_v42  ;;  %6158 = vmatpush1.bf16.msra.mxu0 %v6157_v27  ;;  %6196 = vmatpush1.bf16.msra.mxu1 %v6195_v32  ;;  %v2069_v46 = vsel %vm2061_vm13, %v7092_v42, %v7093_v28  ;;  %v2129_v61 = vsel %vm2126_vm12, %v7023_v53, %v6988_v12  ;;  %v7047_v36 = vunpack.i.l.bf16 %v8605_v43 }
 0x400   : > { %v8659_v13 = vpop.permute.xlu0 %7110  ;;  %v7096_v6 = vpop.permute.xlu1 %7095  ;;  %6160 = vmatprep.subr.bf16.mxu0 %v6159_v19  ;;  %v6197_v52 = vpack.c.bf16 %v2069_v46, %v2065_v24  ;;  %v6199_v62 = vpack.c.bf16 %v2068_v49, %v2064_v2  ;;  %v2128_v38 = vsel %vm2126_vm12, %v7022_v35, %v7023_v53  ;;  %v7048_v10 = vunpack.i.h.bf16 %v8605_v43 }
 0x401   : > { %v7098_v63 = vunpack.i.h.bf16 %v7096_v6  ;;  %v7097_v54 = vunpack.i.l.bf16 %v7096_v6  ;;  %v2130_v2 = vsel %vm2126_vm12, %v6988_v12, %v7027_v31  ;;  %v7038_v4 = vunpack.i.h.bf16 %v8607_v0 }
 0x402   : > { %6198 = vmatprep.subr.bf16.mxu1 %v6197_v52  ;;  %v7037_v14 = vunpack.i.l.bf16 %v8607_v0  ;;  %v2209_v15 = vsel %vm2207_vm5, %v7032_v57, %v7033_v29  ;;  %v8685_v55 = vsel %vm9959_vm11, %v7042_v22, %v7043_v56  ;;  %v8688_v40 = vsel %vm9959_vm11, %v7047_v36, %v7042_v22 }
 0x403   : > { %v2131_v45 = vsel %vm2126_vm12, %v7028_v44, %v7097_v54  ;;  %6162 = vmatpush1.bf16.msra.mxu0 %v6161_v8  ;;  %6200 = vmatpush1.bf16.msra.mxu1 %v6199_v62  ;;  %v2132_v17 = vsel %vm2126_vm12, %v7097_v54, %v7098_v63  ;;  %v7053_v41 = vunpack.i.h.bf16 %v8611_v37  ;;  %v7052_v53 = vunpack.i.l.bf16 %v8611_v37 }
 0x404   : > { %v7116_v20 = vpop.permute.xlu0 %7115  ;;  %v8679_v24 = vpop.permute.xlu1 %7100  ;;  %v6163_v25 = vpack.c.bf16 %v2132_v17, %v2128_v38  ;;  %v6165_v59 = vpack.c.bf16 %v2131_v45, %v2127_v5  ;;  %v8698_v32 = vsel %vm9959_vm11, %v7043_v56, %v7048_v10  ;;  %v7058_v35 = vunpack.i.h.bf16 %v8609_v1 }
 0x405   : > { %v7118_v21 = vunpack.i.h.bf16 %v7116_v20  ;;  %v7117_v9 = vunpack.i.l.bf16 %v7116_v20  ;;  %v2208_v31 = vsel %vm2207_vm5, %v7037_v14, %v7032_v57  ;;  %v2210_v49 = vsel %vm2207_vm5, %v7033_v29, %v7038_v4 }
 0x406   : > { %6164 = vmatprep.subr.bf16.mxu0 %v6163_v25  ;;  %v7062_v6 = vunpack.i.l.bf16 %v8615_v7  ;;  %v2211_v52 = vsel %vm2207_vm5, %v7038_v4, %v7057_v47  ;;  %v2338_v57 = vsel %vm9963_vm2, %v7052_v53, %v7053_v41  ;;  %v7102_v20 = vunpack.i.l.bf16 %v8679_v24 }
 0x407   : > { %v2133_v12 = vsel %vm2126_vm12, %v7098_v63, %v7117_v9  ;;  %v2134_v27 = vsel %vm2126_vm12, %v7117_v9, %v7118_v21  ;;  %6166 = vmatpush1.bf16.msra.mxu0 %v6165_v59 }
 0x408   : > { %v7121_v0 = vpop.permute.xlu0 %7120  ;;  %v6201_v28 = vpack.c.bf16 %v2134_v27, %v2130_v2  ;;  %v6203_v42 = vpack.c.bf16 %v2133_v12, %v2129_v61  ;;  %v7126_v19 = vpop.permute.xlu1 %7125  ;;  %6169 = vmatprep.subr.msk.bf16.mxu0 %vm8387_vm9, %v8516_v30  ;;  %v2276_v17 = vsel %vm9959_vm11, %v7048_v10, %v7062_v6  ;;  %v7107_v27 = vunpack.i.l.bf16 %v8646_v26 }
 0x409   : > { %v7123_v44 = vunpack.i.h.bf16 %v7121_v0  ;;  %v7122_v48 = vunpack.i.l.bf16 %v7121_v0  ;;  %v7128_v46 = vunpack.i.h.bf16 %v7126_v19  ;;  %v7127_v22 = vunpack.i.l.bf16 %v7126_v19 }
 0x40a   : > { %6202 = vmatprep.subr.bf16.mxu1 %v6201_v28  ;;  %v2337_v0 = vsel %vm9963_vm2, %v7102_v20, %v7052_v53 }
 0x40b   : > { %v2212_v56 = vsel %vm2207_vm5, %v7058_v35, %v7122_v48  ;;  %6204 = vmatpush1.bf16.msra.mxu1 %v6203_v42  ;;  %v2213_v1 = vsel %vm2207_vm5, %v7122_v48, %v7123_v44  ;;  %6172 = vmatpush1.bf16.msk.msra.mxu0 %vm8406_vm4, %v8511_v11  ;;  %v2214_v63 = vsel %vm2207_vm5, %v7123_v44, %v7127_v22  ;;  %v7063_v11 = vunpack.i.h.bf16 %v8615_v7 }
 0x40c   : > { %v7136_v30 = vpop.permute.xlu0 %7135  ;;  %6207 = vmatprep.subr.msk.bf16.mxu1 %vm8422_vm3, %v8523_v18  ;;  %v6173_v29 = vpack.c.bf16 %v2213_v1, %v2209_v15  ;;  %v6175_v62 = vpack.c.bf16 %v2212_v56, %v2208_v31  ;;  %v7131_v61 = vpop.permute.xlu1 %7130  ;;  %v2215_v5 = vsel %vm2207_vm5, %v7127_v22, %v7128_v46  ;;  %v7108_v18 = vunpack.i.h.bf16 %v8646_v26 }
 0x40d   : > { %v7138_v54 = vunpack.i.h.bf16 %v7136_v30  ;;  %v7137_v8 = vunpack.i.l.bf16 %v7136_v30  ;;  %v7133_v36 = vunpack.i.h.bf16 %v7131_v61  ;;  %v7132_v38 = vunpack.i.l.bf16 %v7131_v61 }
 0x40e   : > { %6174 = vmatprep.subr.bf16.mxu0 %v6173_v29  ;;  %v6211_v45 = vpack.c.bf16 %v2215_v5, %v2211_v52  ;;  %v7103_v7 = vunpack.i.h.bf16 %v8679_v24  ;;  %v6213_v59 = vpack.c.bf16 %v2214_v63, %v2210_v49  ;;  %v7113_v35 = vunpack.i.h.bf16 %v8659_v13 }
 0x40f   : > { %6210 = vmatpush1.bf16.msk.msra.mxu1 %vm8441_vm1, %v8518_v60  ;;  %v2280_v2 = vsel %vm9959_vm11, %v7137_v8, %v7138_v54  ;;  %v2277_v21 = vsel %vm9959_vm11, %v7063_v11, %v7132_v38  ;;  %6176 = vmatpush1.bf16.msra.mxu0 %v6175_v62  ;;  %v2278_v25 = vsel %vm9959_vm11, %v7132_v38, %v7133_v36 }
 0x410   : > { %v7141_v9 = vpop.permute.xlu0 %7140  ;;  %6212 = vmatprep.subr.bf16.mxu1 %v6211_v45  ;;  %v7151_v15 = vpop.permute.xlu1 %7150  ;;  %v6177_v60 = vpack.c.bf16 %v2278_v25, %v8685_v55  ;;  %v6179_v43 = vpack.c.bf16 %v2277_v21, %v8688_v40  ;;  %v2279_v10 = vsel %vm9959_vm11, %v7133_v36, %v7137_v8  ;;  %v6215_v24 = vpack.c.bf16 %v2280_v2, %v2276_v17  ;;  %v5889_v17 = vld [vmem:[%s9943_s1 + $0x40] sm:$0xff]  ;;  %v5892_v2 = vld [vmem:[%s9943_s1 + $0x58] sm:$0xff] }
 0x411   : > { %v7143_v4 = vunpack.i.h.bf16 %v7141_v9  ;;  %v7142_v14 = vunpack.i.l.bf16 %v7141_v9  ;;  %v7153_v47 = vunpack.i.h.bf16 %v7151_v15  ;;  %v7152_v12 = vunpack.i.l.bf16 %v7151_v15 }
 0x412   : > { %6178 = vmatprep.subr.bf16.mxu0 %v6177_v60  ;;  %v7112_v55 = vunpack.i.l.bf16 %v8659_v13  ;;  %vm9962_vm11 = vcmask 236544   ;;  %v6217_v26 = vpack.c.bf16 %v2279_v10, %v8698_v32  ;;  %v2340_v53 = vsel %vm9963_vm2, %v7103_v7, %v7107_v27 }
 0x413   : > { %v2341_v28 = vsel %vm9963_vm2, %v7108_v18, %v7142_v14  ;;  %6214 = vmatpush1.bf16.msra.mxu1 %v6213_v59  ;;  %v2342_v42 = vsel %vm9963_vm2, %v7142_v14, %v7143_v4  ;;  %6180 = vmatpush1.bf16.msra.mxu0 %v6179_v43  ;;  %v2344_v31 = vsel %vm9963_vm2, %v7152_v12, %v7153_v47 }
 0x414   : > { %v7146_v40 = vpop.permute.xlu0 %7145  ;;  %6216 = vmatprep.subr.bf16.mxu1 %v6215_v24  ;;  %v6181_v44 = vpack.c.bf16 %v2342_v42, %v2338_v57  ;;  %v6183_v48 = vpack.c.bf16 %v2341_v28, %v2337_v0  ;;  %v7156_v19 = vpop.permute.xlu1 %7155  ;;  %v2343_v49 = vsel %vm9963_vm2, %v7143_v4, %v7152_v12  ;;  %v6219_v6 = vpack.c.bf16 %v2344_v31, %v2340_v53 }
 0x415   : > { %v7158_v46 = vunpack.i.h.bf16 %v7156_v19  ;;  %v7157_v22 = vunpack.i.l.bf16 %v7156_v19  ;;  %v7148_v13 = vunpack.i.h.bf16 %v7146_v40  ;;  %v2339_v56 = vsel %vm9963_vm2, %v7053_v41, %v7103_v7  ;;  %v5891_v7 = vld [vmem:[%s9943_s1 + $0x50] sm:$0xff] }
 0x416   : > { %6182 = vmatprep.subr.bf16.mxu0 %v6181_v44  ;;  %v7147_v1 = vunpack.i.l.bf16 %v7146_v40  ;;  %v2403_v32 = vsel %vm9962_vm11, %v7112_v55, %v7113_v35  ;;  %v6221_v54 = vpack.c.bf16 %v2343_v49, %v2339_v56  ;;  %vm2821_vm2 = vcmask 1014784  }
 0x417   : > { %6218 = vmatpush1.bf16.msra.mxu1 %v6217_v26  ;;  %6184 = vmatpush1.bf16.msra.mxu0 %v6183_v48  ;;  %v2407_v30 = vsel %vm9962_vm11, %v7157_v22, %v7158_v46  ;;  %v2404_v5 = vsel %vm9962_vm11, %v7113_v35, %v7148_v13 }
 0x418   : > { %v7166_v52 = vpop.permute.xlu0 %7165  ;;  %6220 = vmatprep.subr.bf16.mxu1 %v6219_v6  ;;  %v7161_v57 = vpop.permute.xlu1 %7160  ;;  %v6185_v63 = vpack.c.bf16 %v2407_v30, %v2403_v32  ;;  %v2402_v11 = vsel %vm9962_vm11, %v7147_v1, %v7112_v55 }
 0x419   : > { %v7168_v29 = vunpack.i.h.bf16 %v7166_v52  ;;  %v7167_v62 = vunpack.i.l.bf16 %v7166_v52  ;;  %v7163_v8 = vunpack.i.h.bf16 %v7161_v57  ;;  %v7162_v61 = vunpack.i.l.bf16 %v7161_v57 }
 0x41a   : > { %6186 = vmatprep.subr.bf16.mxu0 %v6185_v63 }
 0x41b   : > { %v2408_v37 = vsel %vm9962_vm11, %v7158_v46, %v7167_v62  ;;  %6222 = vmatpush1.bf16.msra.mxu1 %v6221_v54  ;;  %v2409_v41 = vsel %vm9962_vm11, %v7167_v62, %v7168_v29  ;;  %v2406_v36 = vsel %vm9962_vm11, %v7163_v8, %v7157_v22  ;;  %v2405_v38 = vsel %vm9962_vm11, %v7148_v13, %v7162_v61 }
 0x41c   : > { %v6225_v45 = vpack.c.bf16 %v2408_v37, %v2404_v5  ;;  %v6187_v18 = vpack.c.bf16 %v2406_v36, %v2402_v11  ;;  %v6223_v20 = vpack.c.bf16 %v2409_v41, %v2405_v38  ;;  %vm2740_vm11 = vcmask 31744  }
 0x41e   : > { %6188 = vmatpush1.bf16.msra.mxu0 %v6187_v18  ;;  %6224 = vmatprep.subr.bf16.mxu1 %v6223_v20  ;;  %v5900_v18 = vld [vmem:[%s9943_s1 + $0x68] sm:$0xff]  ;;  %v5903_v20 = vld [vmem:[%s9944_s2 + $0x30] sm:$0xff] }
 0x41f   : > { %6226 = vmatpush1.bf16.msra.mxu1 %v6225_v45 }
 0x421   : > { %2587 = vmatmul.mubr.f32.vlgmr.msra.gmra.mrb[8].mxu0 %v5889_v17 }
 0x422   : > { %2664 = vmatmul.mubr.f32.vlgmr.msra.gmra.mrb[8].mxu1 %v5889_v17  ;;  %5896 = vmatprep.mubr.msk.f32.mxu0 %vm892_vm0, %v5892_v2  ;;  %v5904_v17 = vld [vmem:[%s9944_s2 + $0x38] sm:$0xff] }
 0x423   : > { %5898 = vmatprep.mubr.msk.f32.mxu1 %vm892_vm0, %v5892_v2 }
 0x425   : > { %2593 = vmatmul.mubr.f32.gmra.mrb[10].mxu0 %v5891_v7 }
 0x426   : > { %2670 = vmatmul.mubr.f32.gmra.mrb[10].mxu1 %v5891_v7  ;;  %5905 = vmatprep.mubr.msk.f32.mxu0 %vm892_vm0, %v5900_v18 }
 0x427   : > { %5907 = vmatprep.mubr.msk.f32.mxu1 %vm892_vm0, %v5900_v18 }
 0x429   : > { %v2509_v21 = vpop.permute.xlu1 %2508  ;;  %v2514_v47 = vpop.permute.xlu0 %2513 }
 0x42d   : > { %v7171_v2 = vpop.permute.xlu1 %7170 }
 0x431   : > { %v8841_v7 = vpop.permute.xlu1 %7180 }
 0x4f4   : > { %v2588_v9 = vpop.f32.mrb[8].mxu0 }
 0x4f5   : > { %v2589_v25 = vadd.f32 %v2588_v9, %v2509_v21  ;;  %v2590_v59 = vpop.f32.mrb[9].mxu0  ;;  %v2665_v4 = vpop.f32.mrb[8].mxu1 }
 0x4f6   : > { %v2591_v14 = vadd.f32 %v2590_v59, %v2509_v21  ;;  %v2666_v15 = vadd.f32 %v2665_v4, %v2509_v21  ;;  %v2667_v60 = vpop.f32.mrb[9].mxu1 }
 0x4f7   : > { %v2676_v43 = vmax.f32 %v2589_v25, 0.0  ;;  %v2668_v10 = vadd.f32 %v2667_v60, %v2509_v21  ;;  %v8843_v21 = vpop.permute.xlu0 %7175 }
 0x4f8   : > { %v2677_v12 = vmax.f32 %v2591_v14, 0.0  ;;  %v2678_v24 = vmax.f32 %v2666_v15, 0.0  ;;  %v2594_v27 = vpop.f32.mrb[10].mxu0 }
 0x4f9   : > { %v2684_v0 = vsel %vm8177_vm15, %v2676_v43, 0.0  ;;  %v2679_v28 = vmax.f32 %v2668_v10, 0.0  ;;  %v2595_v42 = vadd.f32 %v2594_v27, %v2514_v47  ;;  %v2596_v35 = vpop.f32.mrb[11].mxu0  ;;  %v2671_v55 = vpop.f32.mrb[10].mxu1  ;;  %v7172_v27 = vunpack.i.l.bf16 %v7171_v2 }
 0x4fa   : > { %v2685_v40 = vsel %vm8181_vm8, %v2677_v12, 0.0  ;;  %v2686_v44 = vsel %vm8185_vm6, %v2678_v24, 0.0  ;;  %v2597_v48 = vadd.f32 %v2596_v35, %v2514_v47  ;;  %v2672_v19 = vadd.f32 %v2671_v55, %v2514_v47  ;;  %v2673_v26 = vpop.f32.mrb[11].mxu1 }
 0x4fb   : > { %v2687_v53 = vsel %vm8207_vm10, %v2679_v28, 0.0  ;;  %v2680_v31 = vmax.f32 %v2595_v42, 0.0  ;;  %v2674_v49 = vadd.f32 %v2673_v26, %v2514_v47  ;;  %v7184_v46 = vpack.i.bf16 %v2684_v0, %v9964_v16 }
 0x4fc   : > { %v2681_v22 = vmax.f32 %v2597_v48, 0.0  ;;  %v2682_v6 = vmax.f32 %v2672_v19, 0.0  ;;  %v7189_v13 = vpack.i.bf16 %v2686_v44, %v2685_v40  ;;  %v7199_v56 = vpack.i.bf16 %v2687_v53, %v2686_v44 }
 0x4fd   : > { %v2688_v1 = vsel %vm8177_vm15, %v2680_v31, 0.0  ;;  %v8784_v52 = vpack.c.bf16 %v2680_v31, %v2676_v43  ;;  %v2683_v32 = vmax.f32 %v2674_v49, 0.0  ;;  %7185 = vrot.lane.b32.xlu1 %v7184_v46, %s7948_s7  ;;  %v7194_v30 = vpack.i.bf16 %v2685_v40, %v2684_v0 }
 0x4fe   : > { %v2689_v29 = vsel %vm8181_vm8, %v2681_v22, 0.0  ;;  %v8789_v62 = vpack.c.bf16 %v2681_v22, %v2677_v12  ;;  %v2690_v57 = vsel %vm8185_vm6, %v2682_v6, 0.0  ;;  %v8793_v63 = vpack.c.bf16 %v2682_v6, %v2678_v24  ;;  %7190 = vrot.lane.b32.xlu0 %v7189_v13, %s7948_s7 }
 0x4ff   : > { %v2691_v54 = vsel %vm8207_vm10, %v2683_v32, 0.0  ;;  %v8798_v8 = vpack.c.bf16 %v2683_v32, %v2679_v28  ;;  %v7229_v61 = vpack.i.bf16 %v2690_v57, %v2689_v29  ;;  %v7234_v5 = vpack.i.bf16 %v2688_v1, %v2684_v0 }
 0x500   : > { %v7249_v37 = vpack.i.bf16 %v2691_v54, %v2690_v57  ;;  %v7244_v41 = vpack.i.bf16 %v2689_v29, %v2688_v1  ;;  %v7314_v11 = vpack.i.bf16 %v2689_v29, %v2685_v40  ;;  %v7219_v36 = vpack.i.bf16 %v9964_v16, %v2687_v53 }
 0x501   : > { %7200 = vrot.lane.b32.xlu1 %v7199_v56, %s7949_s25  ;;  %v7224_v38 = vpack.i.bf16 %v2688_v1, %v9964_v16  ;;  %v7279_v45 = vpack.i.bf16 %v9964_v16, %v2691_v54  ;;  %v7173_v28 = vunpack.i.h.bf16 %v7171_v2 }
 0x502   : > { %7195 = vrot.lane.b32.xlu0 %v7194_v30, %s7949_s25 }
 0x505   : > { %7205 = vrot.lane.b32.xlu1 %v7194_v30, %s7948_s7 }
 0x506   : > { %7210 = vrot.lane.b32.xlu0 %v7199_v56, %s7948_s7 }
 0x509   : > { %7220 = vrot.lane.b32.xlu1 %v7219_v36, %s7949_s25 }
 0x50a   : > { %7215 = vrot.lane.b32.xlu0 %v7189_v13, %s7949_s25 }
 0x50d   : > { %7225 = vrot.lane.b32.xlu1 %v7224_v38, %s7948_s7  ;;  %v7182_v38 = vunpack.i.l.bf16 %v8841_v7 }
 0x50e   : > { %7230 = vrot.lane.b32.xlu0 %v7229_v61, %s7948_s7 }
 0x511   : > { %7240 = vrot.lane.b32.xlu1 %v7189_v13, %s7948_s7 }
 0x512   : > { %7235 = vrot.lane.b32.xlu0 %v7234_v5, %s7949_s25 }
 0x515   : > { %7250 = vrot.lane.b32.xlu1 %v7249_v37, %s7949_s25 }
 0x516   : > { %7245 = vrot.lane.b32.xlu0 %v7244_v41, %s7949_s25 }
 0x519   : > { %7255 = vrot.lane.b32.xlu1 %v7244_v41, %s7948_s7 }
 0x51a   : > { %7260 = vrot.lane.b32.xlu0 %v7249_v37, %s7948_s7 }
 0x51d   : > { %7270 = vrot.lane.b32.xlu1 %v7234_v5, %s7948_s7 }
 0x51e   : > { %7265 = vrot.lane.b32.xlu0 %v7219_v36, %s7948_s7  ;;  %v7183_v36 = vunpack.i.h.bf16 %v8841_v7 }
 0x521   : > { %7280 = vrot.lane.b32.xlu1 %v7279_v45, %s7949_s25 }
 0x522   : > { %7275 = vrot.lane.b32.xlu0 %v7229_v61, %s7949_s25 }
 0x525   : > { %7285 = vrot.lane.b32.xlu1 %v7229_v61, %s7948_s7 }
 0x526   : > { %7290 = vrot.lane.b32.xlu0 %v7279_v45, %s7948_s7  ;;  %v7177_v45 = vunpack.i.l.bf16 %v8843_v21 }
 0x529   : > { %7300 = vrot.lane.b32.xlu1 %v9964_v16, %s7949_s25 }
 0x52a   : > { %7295 = vrot.lane.b32.xlu0 %v7199_v56, %s7949_s25 }
 0x52d   : > { %7305 = vrot.lane.b32.xlu1 %v9964_v16, %s7949_s25 }
 0x52e   : > { %7310 = vrot.lane.b32.xlu0 %v7249_v37, %s7949_s25 }
 0x531   : > { %3216 = vperm.xlu1 %6768, %v5903_v20   ;;  %v7178_v20 = vunpack.i.h.bf16 %v8843_v21 }
 0x532   : > { %7315 = vrot.lane.b32.xlu0 %v7314_v11, %s7949_s25 }
 0x535   : > { %7320 = vrot.lane.b32.xlu1 %v9964_v16, %s7942_s28 }
 0x536   : > { %3221 = vperm.xlu0 %6767, %v5904_v17  }
 0x539   : > { %7330 = vrot.lane.b32.xlu1 %v9964_v16, %s7944_s30 }
 0x53a   : > { %7325 = vrot.lane.b32.xlu0 %v9964_v16, %s7933_s24 }
 0x53e   : > { %7335 = vrot.lane.b32.xlu0 %v9964_v16, %s7943_s29 }
 0x56f   : > { %v7186_v9 = vpop.permute.xlu1 %7185 }
 0x570   : > { %v7191_v25 = vpop.permute.xlu0 %7190  ;;  %v7188_v10 = vunpack.i.h.bf16 %v7186_v9  ;;  %v7187_v47 = vunpack.i.l.bf16 %v7186_v9 }
 0x571   : > { %v7193_v12 = vunpack.i.h.bf16 %v7191_v25  ;;  %v7192_v24 = vunpack.i.l.bf16 %v7191_v25 }
 0x572   : > { %v2741_v40 = vsel %vm2740_vm11, %v7172_v27, %v7187_v47  ;;  %v2742_v19 = vsel %vm2740_vm11, %v7187_v47, %v7188_v10 }
 0x573   : > { %v7201_v59 = vpop.permute.xlu1 %7200  ;;  %v2743_v26 = vsel %vm2740_vm11, %v7188_v10, %v7192_v24  ;;  %v2744_v49 = vsel %vm2740_vm11, %v7192_v24, %v7193_v12 }
 0x574   : > { %v8845_v4 = vpop.permute.xlu0 %7195  ;;  %v7203_v1 = vunpack.i.h.bf16 %v7201_v59  ;;  %v7202_v32 = vunpack.i.l.bf16 %v7201_v59 }
 0x575   : > { %v7198_v54 = vunpack.i.h.bf16 %v8845_v4  ;;  %v7197_v61 = vunpack.i.l.bf16 %v8845_v4 }
 0x576   : > { %v2825_v25 = vsel %vm2821_vm2, %v7202_v32, %v7203_v1 }
 0x577   : > { %v8847_v14 = vpop.permute.xlu1 %7205  ;;  %v2822_v7 = vsel %vm2821_vm2, %v7177_v45, %v7197_v61  ;;  %v2824_v59 = vsel %vm2821_vm2, %v7198_v54, %v7202_v32  ;;  %v2823_v10 = vsel %vm2821_vm2, %v7197_v61, %v7198_v54 }
 0x578   : > { %v8849_v15 = vpop.permute.xlu0 %7210  ;;  %v7208_v5 = vunpack.i.h.bf16 %v8847_v14  ;;  %v7207_v37 = vunpack.i.l.bf16 %v8847_v14 }
 0x579   : > { %v7213_v41 = vunpack.i.h.bf16 %v8849_v15  ;;  %v7212_v11 = vunpack.i.l.bf16 %v8849_v15  ;;  %v7950_v15 = vmov 0.0|0.0  }
 0x57a   : > { %v2887_v47 = vsel %vm2740_vm11, %v7207_v37, %v7208_v5 }
 0x57b   : > { %v8851_v60 = vpop.permute.xlu1 %7220  ;;  %v2889_v12 = vsel %vm2740_vm11, %v7212_v11, %v7213_v41  ;;  %v2888_v54 = vsel %vm2740_vm11, %v7208_v5, %v7212_v11 }
 0x57c   : > { %v8853_v43 = vpop.permute.xlu0 %7215 }
 0x57f   : > { %v7226_v0 = vpop.permute.xlu1 %7225 }
 0x580   : > { %v7228_v42 = vunpack.i.h.bf16 %v7226_v0  ;;  %v7227_v35 = vunpack.i.l.bf16 %v7226_v0  ;;  %v7231_v55 = vpop.permute.xlu0 %7230 }
 0x581   : > { %v7233_v44 = vunpack.i.h.bf16 %v7231_v55  ;;  %v7232_v48 = vunpack.i.l.bf16 %v7231_v55 }
 0x582   : > { %v2745_v53 = vsel %vm2740_vm11, %v7173_v28, %v7227_v35  ;;  %v2746_v31 = vsel %vm2740_vm11, %v7227_v35, %v7228_v42 }
 0x583   : > { %v2747_v46 = vsel %vm2740_vm11, %v7228_v42, %v7232_v48  ;;  %v8862_v22 = vpop.permute.xlu1 %7240  ;;  %v6227_v6 = vpack.c.bf16 %v2746_v31, %v2742_v19  ;;  %v6229_v13 = vpack.c.bf16 %v2745_v53, %v2741_v40  ;;  %v2748_v56 = vsel %vm2740_vm11, %v7232_v48, %v7233_v44 }
 0x584   : > { %v8865_v30 = vpop.permute.xlu0 %7235  ;;  %v6267_v29 = vpack.c.bf16 %v2748_v56, %v2744_v49  ;;  %v6269_v57 = vpack.c.bf16 %v2747_v46, %v2743_v26  ;;  %v7223_v19 = vunpack.i.h.bf16 %v8851_v60  ;;  %v7222_v49 = vunpack.i.l.bf16 %v8851_v60 }
 0x585   : > { %6228 = vmatprep.subr.bf16.mxu0 %v6227_v6  ;;  %v7218_v46 = vunpack.i.h.bf16 %v8853_v43  ;;  %v7217_v56 = vunpack.i.l.bf16 %v8853_v43  ;;  %v2886_v60 = vsel %vm2740_vm11, %v7182_v38, %v7207_v37  ;;  %v7243_v37 = vunpack.i.h.bf16 %v8862_v22 }
 0x586   : > { %6230 = vmatpush1.bf16.msra.mxu0 %v6229_v13  ;;  %6268 = vmatprep.subr.bf16.mxu1 %v6267_v29  ;;  %v7242_v5 = vunpack.i.l.bf16 %v8862_v22 }
 0x587   : > { %v7251_v18 = vpop.permute.xlu1 %7250  ;;  %6233 = vmatprep.subr.msk.bf16.mxu0 %vm8406_vm4, %v8784_v52  ;;  %6270 = vmatpush1.bf16.msra.mxu1 %v6269_v57 }
 0x588   : > { %v7253_v17 = vunpack.i.h.bf16 %v7251_v18  ;;  %v7252_v2 = vunpack.i.l.bf16 %v7251_v18  ;;  %v7246_v9 = vpop.permute.xlu0 %7245  ;;  %6273 = vmatprep.subr.msk.bf16.mxu1 %vm8441_vm1, %v8793_v63  ;;  %v2968_v18 = vsel %vm2821_vm2, %v7218_v46, %v7222_v49 }
 0x589   : > { %v7248_v4 = vunpack.i.h.bf16 %v7246_v9  ;;  %v7247_v14 = vunpack.i.l.bf16 %v7246_v9 }
 0x58a   : > { %6234 = vmatpush1.bf16.msra.mxu0 %v7950_v15  ;;  %v2829_v21 = vsel %vm2821_vm2, %v7252_v2, %v7253_v17  ;;  %v2969_v17 = vsel %vm2821_vm2, %v7222_v49, %v7223_v19 }
 0x58b   : > { %v2826_v24 = vsel %vm2821_vm2, %v7178_v20, %v7247_v14  ;;  %v2828_v27 = vsel %vm2821_vm2, %v7248_v4, %v7252_v2  ;;  %v7256_v0 = vpop.permute.xlu1 %7255  ;;  %6276 = vmatpush1.bf16.msk.msra.mxu1 %vm8387_vm9, %v8789_v62  ;;  %v6277_v28 = vpack.c.bf16 %v2829_v21, %v2825_v25  ;;  %v2827_v42 = vsel %vm2821_vm2, %v7247_v14, %v7248_v4 }
 0x58c   : > { %v7258_v35 = vunpack.i.h.bf16 %v7256_v0  ;;  %v7257_v55 = vunpack.i.l.bf16 %v7256_v0  ;;  %v7261_v40 = vpop.permute.xlu0 %7260  ;;  %v6235_v44 = vpack.c.bf16 %v2827_v42, %v2823_v10  ;;  %v6237_v48 = vpack.c.bf16 %v2826_v24, %v2822_v7 }
 0x58d   : > { %v7263_v26 = vunpack.i.h.bf16 %v7261_v40  ;;  %v7262_v53 = vunpack.i.l.bf16 %v7261_v40  ;;  %6278 = vmatprep.subr.bf16.mxu1 %v6277_v28  ;;  %v6279_v31 = vpack.c.bf16 %v2828_v27, %v2824_v59  ;;  %v2967_v2 = vsel %vm2821_vm2, %v7217_v56, %v7218_v46 }
 0x58e   : > { %v2890_v6 = vsel %vm2740_vm11, %v7183_v36, %v7257_v55  ;;  %6236 = vmatprep.subr.bf16.mxu0 %v6235_v44  ;;  %v2891_v13 = vsel %vm2740_vm11, %v7257_v55, %v7258_v35  ;;  %v7237_v36 = vunpack.i.l.bf16 %v8865_v30  ;;  %v7238_v25 = vunpack.i.h.bf16 %v8865_v30 }
 0x58f   : > { %v2892_v1 = vsel %vm2740_vm11, %v7258_v35, %v7262_v53  ;;  %v8904_v32 = vpop.permute.xlu1 %7270  ;;  %6238 = vmatpush1.bf16.msra.mxu0 %v6237_v48  ;;  %6280 = vmatpush1.bf16.msra.mxu1 %v6279_v31  ;;  %v6239_v29 = vpack.c.bf16 %v2891_v13, %v2887_v47  ;;  %v2893_v57 = vsel %vm2740_vm11, %v7262_v53, %v7263_v26 }
 0x590   : > { %v7266_v61 = vpop.permute.xlu0 %7265  ;;  %v6281_v41 = vpack.c.bf16 %v2893_v57, %v2889_v12  ;;  %v6241_v45 = vpack.c.bf16 %v2890_v6, %v2886_v60  ;;  %v6283_v43 = vpack.c.bf16 %v2892_v1, %v2888_v54  ;;  %v2966_v7 = vsel %vm2821_vm2, %v7237_v36, %v7217_v56 }
 0x591   : > { %6240 = vmatprep.subr.bf16.mxu0 %v6239_v29  ;;  %v7273_v14 = vunpack.i.h.bf16 %v8904_v32  ;;  %v7268_v22 = vunpack.i.h.bf16 %v7266_v61  ;;  %v7267_v21 = vunpack.i.l.bf16 %v7266_v61  ;;  %v7272_v47 = vunpack.i.l.bf16 %v8904_v32 }
 0x592   : > { %6282 = vmatprep.subr.bf16.mxu1 %v6281_v41 }
 0x593   : > { %v7281_v20 = vpop.permute.xlu1 %7280  ;;  %6242 = vmatpush1.bf16.msra.mxu0 %v6241_v45  ;;  %6284 = vmatpush1.bf16.msra.mxu1 %v6283_v43  ;;  %v3033_v31 = vsel %vm2740_vm11, %v7267_v21, %v7268_v22  ;;  %v3032_v56 = vsel %vm2740_vm11, %v7243_v37, %v7267_v21  ;;  %v3030_v57 = vsel %vm2740_vm11, %v7272_v47, %v7242_v5  ;;  %v5899_v21 = vld [vmem:[%s9943_s1 + $0x60] sm:$0xff]  ;;  %v5901_v47 = vld [vmem:[%s9943_s1 + $0x70] sm:$0xff] }
 0x594   : > { %v7283_v11 = vunpack.i.h.bf16 %v7281_v20  ;;  %v7282_v38 = vunpack.i.l.bf16 %v7281_v20  ;;  %v7276_v9 = vpop.permute.xlu0 %7275  ;;  %6245 = vmatprep.subr.msk.bf16.mxu0 %vm8387_vm9, %v8789_v62  ;;  %6287 = vmatprep.subr.msk.bf16.mxu1 %vm8422_vm3, %v8798_v8 }
 0x595   : > { %v7278_v59 = vunpack.i.h.bf16 %v7276_v9  ;;  %v7277_v4 = vunpack.i.l.bf16 %v7276_v9 }
 0x596   : > { %v2973_v10 = vsel %vm2821_vm2, %v7282_v38, %v7283_v11 }
 0x597   : > { %v2970_v12 = vsel %vm2821_vm2, %v7238_v25, %v7277_v4  ;;  %v2972_v24 = vsel %vm2821_vm2, %v7278_v59, %v7282_v38  ;;  %v7286_v27 = vpop.permute.xlu1 %7285  ;;  %6248 = vmatpush1.bf16.msk.msra.mxu0 %vm8406_vm4, %v8784_v52  ;;  %6290 = vmatpush1.bf16.msk.msra.mxu1 %vm8441_vm1, %v8793_v63  ;;  %v6291_v30 = vpack.c.bf16 %v2973_v10, %v2969_v17 }
 0x598   : > { %v7288_v0 = vunpack.i.h.bf16 %v7286_v27  ;;  %v7287_v28 = vunpack.i.l.bf16 %v7286_v27  ;;  %v7291_v42 = vpop.permute.xlu0 %7290  ;;  %v2971_v35 = vsel %vm2821_vm2, %v7277_v4, %v7278_v59  ;;  %v6251_v55 = vpack.c.bf16 %v2970_v12, %v2966_v7 }
 0x599   : > { %v7293_v40 = vunpack.i.h.bf16 %v7291_v42  ;;  %v7292_v44 = vunpack.i.l.bf16 %v7291_v42  ;;  %6292 = vmatprep.subr.bf16.mxu1 %v6291_v30  ;;  %v6249_v48 = vpack.c.bf16 %v2971_v35, %v2967_v2  ;;  %v6293_v19 = vpack.c.bf16 %v2972_v24, %v2968_v18 }
 0x59a   : > { %v3034_v26 = vsel %vm2740_vm11, %v7273_v14, %v7287_v28  ;;  %v3031_v52 = vsel %vm2740_vm11, %v7242_v5, %v7243_v37  ;;  %v3035_v53 = vsel %vm2740_vm11, %v7287_v28, %v7288_v0 }
 0x59b   : > { %v3036_v49 = vsel %vm2740_vm11, %v7288_v0, %v7292_v44  ;;  %6250 = vmatprep.subr.bf16.mxu0 %v6249_v48  ;;  %6294 = vmatpush1.bf16.msra.mxu1 %v6293_v19  ;;  %v7301_v46 = vpop.permute.xlu1 %7300  ;;  %v6253_v6 = vpack.c.bf16 %v3035_v53, %v3031_v52  ;;  %v3037_v13 = vsel %vm2740_vm11, %v7292_v44, %v7293_v40 }
 0x59c   : > { %6252 = vmatpush1.bf16.msra.mxu0 %v6251_v55  ;;  %v7296_v1 = vpop.permute.xlu0 %7295  ;;  %v7303_v32 = vunpack.i.h.bf16 %v7301_v46  ;;  %v6295_v29 = vpack.c.bf16 %v3037_v13, %v3033_v31  ;;  %v6297_v60 = vpack.c.bf16 %v3036_v49, %v3032_v56  ;;  %v7302_v61 = vunpack.i.l.bf16 %v7301_v46 }
 0x59d   : > { %6254 = vmatprep.subr.bf16.mxu0 %v6253_v6  ;;  %v7298_v54 = vunpack.i.h.bf16 %v7296_v1  ;;  %v6255_v41 = vpack.c.bf16 %v3034_v26, %v3030_v57  ;;  %v7297_v36 = vunpack.i.l.bf16 %v7296_v1 }
 0x59e   : > { %6296 = vmatprep.subr.bf16.mxu1 %v6295_v29  ;;  %v3113_v17 = vsel %vm2821_vm2, %v7302_v61, %v7303_v32 }
 0x59f   : > { %6298 = vmatpush1.bf16.msra.mxu1 %v6297_v60  ;;  %v7306_v45 = vpop.permute.xlu1 %7305  ;;  %v3112_v5 = vsel %vm2821_vm2, %v7298_v54, %v7302_v61 }
 0x5a0   : > { %6256 = vmatpush1.bf16.msra.mxu0 %v6255_v41  ;;  %v7311_v43 = vpop.permute.xlu0 %7310  ;;  %v7308_v18 = vunpack.i.h.bf16 %v7306_v45  ;;  %v7307_v20 = vunpack.i.l.bf16 %v7306_v45  ;;  %6299 = vmatprep.subr.bf16.mxu1 %v7950_v15  ;;  %v3111_v15 = vsel %vm2821_vm2, %v7297_v36, %v7298_v54 }
 0x5a1   : > { %v7313_v2 = vunpack.i.h.bf16 %v7311_v43  ;;  %v7312_v37 = vunpack.i.l.bf16 %v7311_v43  ;;  %6259 = vmatprep.subr.msk.bf16.mxu0 %vm8441_vm1, %v8793_v63 }
 0x5a2   : > { %v3117_v11 = vsel %vm2821_vm2, %v7307_v20, %v7308_v18 }
 0x5a3   : > { %v3116_v38 = vsel %vm2821_vm2, %v7313_v2, %v7307_v20  ;;  %6302 = vmatpush1.bf16.msk.msra.mxu1 %vm8422_vm3, %v8798_v8  ;;  %v3115_v9 = vsel %vm2821_vm2, %v7312_v37, %v7313_v2  ;;  %v6303_v25 = vpack.c.bf16 %v3117_v11, %v3113_v17 }
 0x5a4   : > { %6262 = vmatpush1.bf16.msk.msra.mxu0 %vm8387_vm9, %v8789_v62  ;;  %v7316_v63 = vpop.permute.xlu0 %7315  ;;  %v6263_v7 = vpack.c.bf16 %v3115_v9, %v3111_v15  ;;  %v6305_v59 = vpack.c.bf16 %v3116_v38, %v3112_v5  ;;  %v5902_v62 = vld [vmem:[%s9943_s1 + $0x78] sm:$0xff] }
 0x5a5   : > { %v7318_v4 = vunpack.i.h.bf16 %v7316_v63  ;;  %v7317_v14 = vunpack.i.l.bf16 %v7316_v63  ;;  %6304 = vmatprep.subr.bf16.mxu1 %v6303_v25 }
 0x5a6   : > { %6264 = vmatprep.subr.bf16.mxu0 %v6263_v7 }
 0x5a7   : > { %v3110_v22 = vsel %vm2821_vm2, %v7317_v14, %v7297_v36  ;;  %v3114_v8 = vsel %vm2821_vm2, %v7318_v4, %v7312_v37  ;;  %6306 = vmatpush1.bf16.msra.mxu1 %v6305_v59  ;;  %v5910_v4 = vld [vmem:[%s9943_s1 + $0x88] sm:$0xff]  ;;  %vm9992_vm2 = vcmask 285696  }
 0x5a8   : > { %v6265_v10 = vpack.c.bf16 %v3114_v8, %v3110_v22  ;;  %v5914_v14 = vld [vmem:[%s9944_s2 + $0x48] sm:$0xff]  ;;  %v5913_v22 = vld [vmem:[%s9944_s2 + $0x40] sm:$0xff]  ;;  %vm9995_vm11 = vmmov %vm9992_vm2 }
 0x5aa   : > { %6266 = vmatpush1.bf16.msra.mxu0 %v6265_v10  ;;  %3372 = vmatmul.mubr.f32.vlgmr.msra.gmra.mrb[12].mxu1 %v5899_v21 }
 0x5ab   : > { %5908 = vmatprep.mubr.msk.f32.mxu1 %vm892_vm0, %v5902_v62 }
 0x5ad   : > { %3295 = vmatmul.mubr.f32.vlgmr.msra.gmra.mrb[12].mxu0 %v5899_v21 }
 0x5ae   : > { %3378 = vmatmul.mubr.f32.gmra.mrb[14].mxu1 %v5901_v47  ;;  %5906 = vmatprep.mubr.msk.f32.mxu0 %vm892_vm0, %v5902_v62 }
 0x5af   : > { %5917 = vmatprep.mubr.msk.f32.mxu1 %vm892_vm0, %v5910_v4 }
 0x5b0   : > { %v3217_v12 = vpop.permute.xlu1 %3216 }
 0x5b1   : > { %3301 = vmatmul.mubr.f32.gmra.mrb[14].mxu0 %v5901_v47 }
 0x5b2   : > { %5915 = vmatprep.mubr.msk.f32.mxu0 %vm892_vm0, %v5910_v4 }
 0x5b4   : > { %v7321_v21 = vpop.permute.xlu1 %7320 }
 0x5b5   : > { %v3222_v28 = vpop.permute.xlu0 %3221 }
 0x5b8   : > { %v9057_v62 = vpop.permute.xlu1 %7330 }
 0x5b9   : > { %v9053_v8 = vpop.permute.xlu0 %7325 }
 0x5bd   : > { %v9055_v10 = vpop.permute.xlu0 %7335 }
 0x67d   : > { %v3373_v24 = vpop.f32.mrb[12].mxu1 }
 0x67e   : > { %v3374_v27 = vadd.f32 %v3373_v24, %v3217_v12  ;;  %v3375_v30 = vpop.f32.mrb[13].mxu1 }
 0x67f   : > { %v3376_v0 = vadd.f32 %v3375_v30, %v3217_v12 }
 0x680   : > { %v3386_v42 = vmax.f32 %v3374_v27, 0.0  ;;  %v3296_v35 = vpop.f32.mrb[12].mxu0 }
 0x681   : > { %v3387_v55 = vmax.f32 %v3376_v0, 0.0  ;;  %v3297_v40 = vadd.f32 %v3296_v35, %v3217_v12  ;;  %v3298_v44 = vpop.f32.mrb[13].mxu0  ;;  %v3379_v48 = vpop.f32.mrb[14].mxu1 }
 0x682   : > { %v3394_v19 = vsel %vm8185_vm6, %v3386_v42, 0.0  ;;  %v3299_v26 = vadd.f32 %v3298_v44, %v3217_v12  ;;  %v3380_v52 = vadd.f32 %v3379_v48, %v3222_v28  ;;  %v3381_v53 = vpop.f32.mrb[15].mxu1  ;;  %v7322_v48 = vunpack.i.l.bf16 %v7321_v21 }
 0x683   : > { %v3395_v31 = vsel %vm8207_vm10, %v3387_v55, 0.0  ;;  %v3384_v49 = vmax.f32 %v3297_v40, 0.0  ;;  %v3382_v46 = vadd.f32 %v3381_v53, %v3222_v28 }
 0x684   : > { %v3385_v6 = vmax.f32 %v3299_v26, 0.0  ;;  %v3390_v13 = vmax.f32 %v3380_v52, 0.0  ;;  %v3302_v56 = vpop.f32.mrb[14].mxu0  ;;  %v7369_v1 = vpack.i.bf16 %v3395_v31, %v3394_v19  ;;  %v7389_v7 = vpack.i.bf16 %v9964_v16, %v3395_v31 }
 0x685   : > { %v3392_v32 = vsel %vm8177_vm15, %v3384_v49, 0.0  ;;  %v3391_v29 = vmax.f32 %v3382_v46, 0.0  ;;  %v3303_v57 = vadd.f32 %v3302_v56, %v3222_v28  ;;  %v3304_v60 = vpop.f32.mrb[15].mxu0  ;;  %v7328_v46 = vunpack.i.h.bf16 %v9053_v8 }
 0x686   : > { %v3393_v54 = vsel %vm8181_vm8, %v3385_v6, 0.0  ;;  %v3398_v61 = vsel %vm8185_vm6, %v3390_v13, 0.0  ;;  %v8990_v41 = vpack.c.bf16 %v3390_v13, %v3386_v42  ;;  %v3305_v36 = vadd.f32 %v3304_v60, %v3222_v28 }
 0x687   : > { %v3399_v45 = vsel %vm8207_vm10, %v3391_v29, 0.0  ;;  %v8994_v43 = vpack.c.bf16 %v3391_v29, %v3387_v55  ;;  %v3388_v18 = vmax.f32 %v3303_v57, 0.0  ;;  %v7344_v20 = vpack.i.bf16 %v3393_v54, %v3392_v32 }
 0x688   : > { %v3389_v17 = vmax.f32 %v3305_v36, 0.0  ;;  %v7364_v5 = vpack.i.bf16 %v3394_v19, %v3393_v54  ;;  %v7429_v25 = vpack.i.bf16 %v3399_v45, %v3398_v61  ;;  %v7479_v59 = vpack.i.bf16 %v9964_v16, %v3399_v45 }
 0x689   : > { %v3396_v2 = vsel %vm8177_vm15, %v3388_v18, 0.0  ;;  %v8998_v37 = vpack.c.bf16 %v3388_v18, %v3384_v49  ;;  %7345 = vrot.lane.b32.xlu0 %v7344_v20, %s7933_s24  ;;  %7340 = vrot.lane.b32.xlu1 %v7344_v20, %s7942_s28  ;;  %v7323_v13 = vunpack.i.h.bf16 %v7321_v21  ;;  %v7337_v56 = vunpack.i.l.bf16 %v9055_v10 }
 0x68a   : > { %v3397_v11 = vsel %vm8181_vm8, %v3389_v17, 0.0  ;;  %v9003_v38 = vpack.c.bf16 %v3389_v17, %v3385_v6  ;;  %v7399_v9 = vpack.i.bf16 %v3396_v2, %v3392_v32  ;;  %v7327_v6 = vunpack.i.l.bf16 %v9053_v8 }
 0x68b   : > { %v7409_v15 = vpack.i.bf16 %v3397_v11, %v3396_v2  ;;  %v7434_v63 = vpack.i.bf16 %v3398_v61, %v3397_v11 }
 0x68d   : > { %7355 = vrot.lane.b32.xlu0 %v7344_v20, %s7943_s29  ;;  %7350 = vrot.lane.b32.xlu1 %v7344_v20, %s7944_s30 }
 0x691   : > { %7365 = vrot.lane.b32.xlu0 %v7364_v5, %s7945_s4  ;;  %7360 = vrot.lane.b32.xlu1 %v7364_v5, %s7946_s5 }
 0x695   : > { %7370 = vrot.lane.b32.xlu0 %v7369_v1, %s7942_s28  ;;  %7375 = vrot.lane.b32.xlu1 %v7369_v1, %s7933_s24 }
 0x699   : > { %7380 = vrot.lane.b32.xlu0 %v7369_v1, %s7944_s30  ;;  %7385 = vrot.lane.b32.xlu1 %v7369_v1, %s7943_s29  ;;  %v7332_v1 = vunpack.i.l.bf16 %v9057_v62 }
 0x69d   : > { %7390 = vrot.lane.b32.xlu0 %v7389_v7, %s7946_s5  ;;  %7395 = vrot.lane.b32.xlu1 %v7389_v7, %s7945_s4 }
 0x6a1   : > { %7410 = vrot.lane.b32.xlu0 %v7409_v15, %s7933_s24  ;;  %7400 = vrot.lane.b32.xlu1 %v7399_v9, %s7946_s5 }
 0x6a5   : > { %7420 = vrot.lane.b32.xlu0 %v7409_v15, %s7943_s29  ;;  %7405 = vrot.lane.b32.xlu1 %v7409_v15, %s7942_s28 }
 0x6a9   : > { %7430 = vrot.lane.b32.xlu0 %v7429_v25, %s7942_s28  ;;  %7415 = vrot.lane.b32.xlu1 %v7409_v15, %s7944_s30 }
 0x6ad   : > { %7435 = vrot.lane.b32.xlu0 %v7434_v63, %s7945_s4  ;;  %7425 = vrot.lane.b32.xlu1 %v7434_v63, %s7946_s5 }
 0x6b1   : > { %7445 = vrot.lane.b32.xlu0 %v7429_v25, %s7944_s30  ;;  %7440 = vrot.lane.b32.xlu1 %v7429_v25, %s7933_s24 }
 0x6b5   : > { %7450 = vrot.lane.b32.xlu0 %v7399_v9, %s7945_s4  ;;  %7455 = vrot.lane.b32.xlu1 %v7364_v5, %s7928_s19 }
 0x6b9   : > { %7460 = vrot.lane.b32.xlu0 %v7389_v7, %s7928_s19  ;;  %7465 = vrot.lane.b32.xlu1 %v7429_v25, %s7943_s29 }
 0x6bd   : > { %7480 = vrot.lane.b32.xlu0 %v7479_v59, %s7946_s5  ;;  %7470 = vrot.lane.b32.xlu1 %v7434_v63, %s7928_s19 }
 0x6c1   : > { %7485 = vrot.lane.b32.xlu0 %v7364_v5, %s7947_s6  ;;  %7475 = vrot.lane.b32.xlu1 %v7399_v9, %s7928_s19 }
 0x6c5   : > { %7500 = vrot.lane.b32.xlu0 %v7479_v59, %s7928_s19  ;;  %7490 = vrot.lane.b32.xlu1 %v7479_v59, %s7945_s4 }
 0x6c9   : > { %7505 = vrot.lane.b32.xlu0 %v7434_v63, %s7947_s6  ;;  %7495 = vrot.lane.b32.xlu1 %v7389_v7, %s7947_s6 }
 0x6cd   : > { %7515 = vrot.lane.b32.xlu0 %v7399_v9, %s7947_s6  ;;  %7510 = vrot.lane.b32.xlu1 %v7479_v59, %s7947_s6  ;;  %s10084_s6 = smov 127  }
 0x6d1   : > { %4023 = vperm.xlu0 %6767, %v5914_v14   ;;  %4018 = vperm.xlu1 %6768, %v5913_v22  }
 0x6fb   : > { %v9059_v47 = vpop.permute.xlu0 %7345  ;;  %v7341_v12 = vpop.permute.xlu1 %7340 }
 0x6fc   : > { %v7348_v19 = vunpack.i.h.bf16 %v9059_v47  ;;  %v7347_v26 = vunpack.i.l.bf16 %v9059_v47  ;;  %v7342_v52 = vunpack.i.l.bf16 %v7341_v12  ;;  %v7343_v53 = vunpack.i.h.bf16 %v7341_v12 }
 0x6fe   : > { %v3448_v32 = vsel %vm1932_vm14, %v7322_v48, %v7342_v52  ;;  %v3513_v29 = vsel %vm714_vm7, %v7347_v26, %v7348_v19  ;;  %v3449_v36 = vsel %vm1932_vm14, %v7342_v52, %v7343_v53 }
 0x6ff   : > { %v9061_v24 = vpop.permute.xlu0 %7355  ;;  %v9063_v27 = vpop.permute.xlu1 %7350 }
 0x700   : > { %v7358_v45 = vunpack.i.h.bf16 %v9061_v24  ;;  %v7357_v18 = vunpack.i.l.bf16 %v9061_v24  ;;  %v7353_v20 = vunpack.i.h.bf16 %v9063_v27  ;;  %v7352_v17 = vunpack.i.l.bf16 %v9063_v27 }
 0x703   : > { %v9065_v30 = vpop.permute.xlu0 %7365  ;;  %v9067_v0 = vpop.permute.xlu1 %7360 }
 0x704   : > { %v7363_v63 = vunpack.i.h.bf16 %v9067_v0 }
 0x707   : > { %v7371_v28 = vpop.permute.xlu0 %7370  ;;  %v9069_v42 = vpop.permute.xlu1 %7375 }
 0x708   : > { %v7372_v57 = vunpack.i.l.bf16 %v7371_v28  ;;  %v7373_v11 = vunpack.i.h.bf16 %v7371_v28  ;;  %v7377_v59 = vunpack.i.l.bf16 %v9069_v42 }
 0x70a   : > { %v3450_v4 = vsel %vm1932_vm14, %v7343_v53, %v7372_v57 }
 0x70b   : > { %v9071_v35 = vpop.permute.xlu0 %7380  ;;  %v9073_v55 = vpop.permute.xlu1 %7385 }
 0x70f   : > { %v9075_v40 = vpop.permute.xlu0 %7390  ;;  %v9077_v44 = vpop.permute.xlu1 %7395 }
 0x713   : > { %v9081_v31 = vpop.permute.xlu0 %7410  ;;  %v9083_v49 = vpop.permute.xlu1 %7400 }
 0x714   : > { %v9966_v60 = vunpack.i.h.bf16 %v9081_v31  ;;  %v7412_v54 = vunpack.i.l.bf16 %v9081_v31 }
 0x716   : > { %v3517_v21 = vsel %vm714_vm7, %v7412_v54, %v9966_v60  ;;  %v3516_v16 = vsel %vm714_vm7, %v7328_v46, %v7412_v54 }
 0x717   : > { %v9095_v61 = vpop.permute.xlu0 %7420  ;;  %v7406_v2 = vpop.permute.xlu1 %7405  ;;  %v6311_v60 = vpack.c.bf16 %v3517_v21, %v3513_v29 }
 0x718   : > { %v7408_v15 = vunpack.i.h.bf16 %v7406_v2  ;;  %v7407_v9 = vunpack.i.l.bf16 %v7406_v2  ;;  %v7422_v7 = vunpack.i.l.bf16 %v9095_v61 }
 0x71a   : > { %v3452_v14 = vsel %vm1932_vm14, %v7323_v13, %v7407_v9  ;;  %v3453_v8 = vsel %vm1932_vm14, %v7407_v9, %v7408_v15  ;;  %v3451_v13 = vsel %vm1932_vm14, %v7372_v57, %v7373_v11  ;;  %v7423_v9 = vunpack.i.h.bf16 %v9095_v61 }
 0x71b   : > { %v7431_v22 = vpop.permute.xlu0 %7430  ;;  %v9113_v48 = vpop.permute.xlu1 %7415  ;;  %v6307_v52 = vpack.c.bf16 %v3453_v8, %v3449_v36  ;;  %v6309_v2 = vpack.c.bf16 %v3452_v14, %v3448_v32  ;;  %v7333_v57 = vunpack.i.h.bf16 %v9057_v62  ;;  %v3512_v11 = vsel %vm714_vm7, %v7327_v6, %v7347_v26 }
 0x71c   : > { %v7433_v12 = vunpack.i.h.bf16 %v7431_v22  ;;  %v7432_v28 = vunpack.i.l.bf16 %v7431_v22  ;;  %v7418_v25 = vunpack.i.h.bf16 %v9113_v48  ;;  %v7417_v53 = vunpack.i.l.bf16 %v9113_v48 }
 0x71d   : > { %6308 = vmatprep.subr.bf16.mxu0 %v6307_v52  ;;  %v7338_v14 = vunpack.i.h.bf16 %v9055_v10  ;;  %v3640_v8 = vsel %vm2126_vm12, %v7337_v56, %v7357_v18  ;;  %v6313_v21 = vpack.c.bf16 %v3516_v16, %v3512_v11  ;;  %v3514_v10 = vsel %vm714_vm7, %v7348_v19, %v7377_v59 }
 0x71e   : > { %v3454_v5 = vsel %vm1932_vm14, %v7408_v15, %v7432_v28  ;;  %v3455_v22 = vsel %vm1932_vm14, %v7432_v28, %v7433_v12  ;;  %6310 = vmatpush1.bf16.msra.mxu0 %v6309_v2  ;;  %v3581_v36 = vsel %vm2061_vm13, %v7417_v53, %v7418_v25  ;;  %v7378_v15 = vunpack.i.h.bf16 %v9069_v42  ;;  %vm9998_vm14 = vmmov %vm9992_vm2 }
 0x71f   : > { %v9123_v32 = vpop.permute.xlu0 %7435  ;;  %v6345_v46 = vpack.c.bf16 %v3455_v22, %v3451_v13  ;;  %v6347_v54 = vpack.c.bf16 %v3454_v5, %v3450_v4  ;;  %v9131_v29 = vpop.permute.xlu1 %7425  ;;  %6312 = vmatprep.subr.bf16.mxu0 %v6311_v60  ;;  %v3577_v5 = vsel %vm2061_vm13, %v7352_v17, %v7353_v20  ;;  %v3576_v4 = vsel %vm2061_vm13, %v7332_v1, %v7352_v17 }
 0x720   : > { %v3580_v62 = vsel %vm2061_vm13, %v7333_v57, %v7417_v53  ;;  %v6315_v26 = vpack.c.bf16 %v3581_v36, %v3577_v5  ;;  %v3641_v42 = vsel %vm2126_vm12, %v7357_v18, %v7358_v45  ;;  %v3645_v6 = vsel %vm2126_vm12, %v7422_v7, %v7423_v9 }
 0x721   : > { %6346 = vmatprep.subr.bf16.mxu1 %v6345_v46  ;;  %v9989_v56 = vunpack.i.l.bf16 %v9067_v0  ;;  %v9990_v60 = vunpack.i.h.bf16 %v9065_v30  ;;  %v9991_v18 = vunpack.i.l.bf16 %v9065_v30  ;;  %v7383_v19 = vunpack.i.h.bf16 %v9071_v35 }
 0x722   : > { %6348 = vmatpush1.bf16.msra.mxu1 %v6347_v54  ;;  %6314 = vmatpush1.bf16.msra.mxu0 %v6313_v21  ;;  %v3515_v52 = vsel %vm714_vm7, %v7377_v59, %v7378_v15  ;;  %v7382_v2 = vunpack.i.l.bf16 %v9071_v35  ;;  %v6317_v22 = vpack.c.bf16 %v3580_v62, %v3576_v4  ;;  %v7387_v46 = vunpack.i.l.bf16 %v9073_v55 }
 0x723   : > { %v7446_v16 = vpop.permute.xlu0 %7445  ;;  %v9154_v1 = vsel %vm2207_vm5, %v9989_v56, %v7363_v63  ;;  %v9161_v47 = vsel %vm9992_vm2, %v9991_v18, %v9990_v60  ;;  %v7441_v28 = vpop.permute.xlu1 %7440  ;;  %6316 = vmatprep.subr.bf16.mxu0 %v6315_v26  ;;  %v3644_v54 = vsel %vm2126_vm12, %v7338_v14, %v7422_v7  ;;  %v7428_v36 = vunpack.i.h.bf16 %v9131_v29 }
 0x724   : > { %v7448_v17 = vunpack.i.h.bf16 %v7446_v16  ;;  %v7447_v12 = vunpack.i.l.bf16 %v7446_v16  ;;  %v7443_v53 = vunpack.i.h.bf16 %v7441_v28  ;;  %v7442_v13 = vunpack.i.l.bf16 %v7441_v28 }
 0x725   : > { %v6319_v57 = vpack.c.bf16 %v3645_v6, %v3641_v42  ;;  %v7427_v11 = vunpack.i.l.bf16 %v9131_v29  ;;  %v9993_v21 = vunpack.i.h.bf16 %v9081_v31  ;;  %v7388_v4 = vunpack.i.h.bf16 %v9073_v55 }
 0x726   : > { %6318 = vmatpush1.bf16.msra.mxu0 %v6317_v22  ;;  %v3519_v35 = vsel %vm714_vm7, %v7442_v13, %v7443_v53  ;;  %v3583_v15 = vsel %vm2061_vm13, %v7447_v12, %v7448_v17  ;;  %v7402_v62 = vunpack.i.l.bf16 %v9083_v49  ;;  %v7403_v42 = vunpack.i.h.bf16 %v9083_v49 }
 0x727   : > { %v3518_v5 = vsel %vm714_vm7, %v9993_v21, %v7442_v13  ;;  %v7451_v59 = vpop.permute.xlu0 %7450  ;;  %v9177_v7 = vpop.permute.xlu1 %7455  ;;  %6320 = vmatprep.subr.bf16.mxu0 %v6319_v57  ;;  %v6349_v14 = vpack.c.bf16 %v3519_v35, %v3515_v52  ;;  %v3582_v31 = vsel %vm2061_vm13, %v7418_v25, %v7447_v12  ;;  %v6321_v16 = vpack.c.bf16 %v3644_v54, %v3640_v8 }
 0x728   : > { %v6351_v26 = vpack.c.bf16 %v3518_v5, %v3514_v10  ;;  %v3579_v6 = vsel %vm2061_vm13, %v7382_v2, %v7383_v19  ;;  %v3578_v55 = vsel %vm2061_vm13, %v7353_v20, %v7382_v2  ;;  %v7438_v56 = vunpack.i.h.bf16 %v9123_v32  ;;  %vm9997_vm13 = vmmov %vm9992_vm2 }
 0x729   : > { %v7437_v60 = vunpack.i.l.bf16 %v9123_v32  ;;  %6350 = vmatprep.subr.bf16.mxu1 %v6349_v14  ;;  %v6353_v18 = vpack.c.bf16 %v3583_v15, %v3579_v6  ;;  %v3642_v49 = vsel %vm2126_vm12, %v7358_v45, %v7387_v46  ;;  %v3724_v48 = vsel %vm2207_vm5, %v7403_v42, %v7427_v11 }
 0x72a   : > { %6322 = vmatpush1.bf16.msra.mxu0 %v6321_v16  ;;  %6352 = vmatpush1.bf16.msra.mxu1 %v6351_v26  ;;  %v3725_v27 = vsel %vm2207_vm5, %v7427_v11, %v7428_v36  ;;  %v7393_v20 = vunpack.i.h.bf16 %v9075_v40  ;;  %v9994_v8 = vunpack.i.l.bf16 %v9067_v0  ;;  %v6355_v24 = vpack.c.bf16 %v3582_v31, %v3578_v55 }
 0x72b   : > { %v9193_v25 = vpop.permute.xlu0 %7460  ;;  %v7466_v19 = vpop.permute.xlu1 %7465  ;;  %6325 = vmatprep.subr.msk.bf16.mxu0 %vm8387_vm9, %v9003_v38  ;;  %6354 = vmatprep.subr.bf16.mxu1 %v6353_v18  ;;  %v3643_v45 = vsel %vm2126_vm12, %v7387_v46, %v7388_v4  ;;  %v7453_v17 = vunpack.i.h.bf16 %v7451_v59  ;;  %v7452_v12 = vunpack.i.l.bf16 %v7451_v59  ;;  %v7392_v2 = vunpack.i.l.bf16 %v9075_v40 }
 0x72c   : > { %v3720_v10 = vsel %vm2207_vm5, %v7402_v62, %v9994_v8  ;;  %v7468_v28 = vunpack.i.h.bf16 %v7466_v19  ;;  %v7467_v52 = vunpack.i.l.bf16 %v7466_v19  ;;  %v6329_v53 = vpack.c.bf16 %v3725_v27, %v9154_v1 }
 0x72d   : > { %v6331_v13 = vpack.c.bf16 %v3724_v48, %v3720_v10  ;;  %v3789_v22 = vsel %vm9995_vm11, %v7437_v60, %v7438_v56  ;;  %v7458_v54 = vunpack.i.h.bf16 %v9177_v7  ;;  %v7457_v38 = vunpack.i.l.bf16 %v9177_v7 }
 0x72e   : > { %v3646_v46 = vsel %vm2126_vm12, %v7423_v9, %v7467_v52  ;;  %6328 = vmatpush1.bf16.msk.msra.mxu0 %vm8406_vm4, %v8998_v37  ;;  %6356 = vmatpush1.bf16.msra.mxu1 %v6355_v24  ;;  %v3647_v1 = vsel %vm2126_vm12, %v7467_v52, %v7468_v28  ;;  %v9996_v35 = vunpack.i.l.bf16 %v9065_v30  ;;  %v3788_v9 = vsel %vm9998_vm14, %v7453_v17, %v7437_v60 }
 0x72f   : > { %v7481_v40 = vpop.permute.xlu0 %7480  ;;  %v6359_v57 = vpack.c.bf16 %v3646_v46, %v3642_v49  ;;  %v9220_v5 = vpop.permute.xlu1 %7470  ;;  %6330 = vmatprep.subr.bf16.mxu0 %v6329_v53  ;;  %v6357_v59 = vpack.c.bf16 %v3647_v1, %v3643_v45  ;;  %v6333_v4 = vpack.c.bf16 %v3789_v22, %v9161_v47  ;;  %vm9999_vm12 = vcmask 261120  }
 0x730   : > { %v7483_v11 = vunpack.i.h.bf16 %v7481_v40  ;;  %v7482_v21 = vunpack.i.l.bf16 %v7481_v40  ;;  %v3784_v61 = vsel %vm9997_vm13, %v7452_v12, %v9996_v35  ;;  %v7473_v15 = vunpack.i.h.bf16 %v9220_v5  ;;  %vm10000_vm2 = vmmov %vm9999_vm12 }
 0x731   : > { %v7472_v37 = vunpack.i.l.bf16 %v9220_v5  ;;  %6358 = vmatprep.subr.bf16.mxu1 %v6357_v59  ;;  %v7398_v42 = vunpack.i.h.bf16 %v9077_v44  ;;  %v6335_v31 = vpack.c.bf16 %v3788_v9, %v3784_v61  ;;  %v3723_v6 = vsel %vm2207_vm5, %v7392_v2, %v7393_v20  ;;  %vm10001_vm11 = vmmov %vm10000_vm2 }
 0x732   : > { %6332 = vmatpush1.bf16.msra.mxu0 %v6331_v13  ;;  %6360 = vmatpush1.bf16.msra.mxu1 %v6359_v57  ;;  %v3727_v26 = vsel %vm2207_vm5, %v7482_v21, %v7483_v11  ;;  %v3726_v47 = vsel %vm2207_vm5, %v7428_v36, %v7482_v21  ;;  %v3849_v18 = vsel %vm10000_vm2, %v7457_v38, %v7458_v54  ;;  %v7397_v48 = vunpack.i.l.bf16 %v9077_v44  ;;  %vm10002_vm13 = vmmov %vm10000_vm2 }
 0x733   : > { %v9229_v62 = vpop.permute.xlu0 %7485  ;;  %v3853_v14 = vsel %vm9999_vm12, %v7472_v37, %v7473_v15  ;;  %v7476_v16 = vpop.permute.xlu1 %7475  ;;  %6334 = vmatprep.subr.bf16.mxu0 %v6333_v4  ;;  %6363 = vmatprep.subr.msk.bf16.mxu1 %vm8422_vm3, %v8994_v43  ;;  %v3722_v49 = vsel %vm2207_vm5, %v7363_v63, %v7392_v2  ;;  %v6367_v43 = vpack.c.bf16 %v3727_v26, %v3723_v6  ;;  %v7463_v20 = vunpack.i.h.bf16 %v9193_v25  ;;  %vm10004_vm5 = vmmov %vm9998_vm14 }
 0x734   : > { %v7478_v55 = vunpack.i.h.bf16 %v7476_v16  ;;  %v7477_v60 = vunpack.i.l.bf16 %v7476_v16  ;;  %v6337_v27 = vpack.c.bf16 %v3853_v14, %v3849_v18  ;;  %v7462_v29 = vunpack.i.l.bf16 %v9193_v25  ;;  %vm10005_vm14 = vmmov %vm10004_vm5  ;;  %v5909_v18 = vld [vmem:[%s9943_s1 + $0x80] sm:$0xff] }
 0x735   : > { %v6369_v10 = vpack.c.bf16 %v3726_v47, %v3722_v49  ;;  %v7488_v45 = vunpack.i.h.bf16 %v9229_v62  ;;  %v7487_v25 = vunpack.i.l.bf16 %v9229_v62  ;;  %v10003_v28 = vunpack.i.h.bf16 %v9065_v30  ;;  %vm10006_vm12 = vmmov %vm10004_vm5  ;;  %v5912_v49 = vld [vmem:[%s9943_s1 + $0x98] sm:$0xff] }
 0x736   : > { %v3848_v36 = vsel %vm10001_vm11, %v7477_v60, %v7457_v38  ;;  %v3852_v8 = vsel %vm10002_vm13, %v7478_v55, %v7472_v37  ;;  %6336 = vmatpush1.bf16.msra.mxu0 %v6335_v31  ;;  %6366 = vmatpush1.bf16.msk.msra.mxu1 %vm8441_vm1, %v8990_v41  ;;  %v3787_v41 = vsel %vm10005_vm14, %v7397_v48, %v7398_v42  ;;  %vm10007_vm2 = vmmov %vm10004_vm5 }
 0x737   : > { %v7501_v0 = vpop.permute.xlu0 %7500  ;;  %v6339_v63 = vpack.c.bf16 %v3852_v8, %v3848_v36  ;;  %v7491_v24 = vpop.permute.xlu1 %7490  ;;  %6338 = vmatprep.subr.bf16.mxu0 %v6337_v27  ;;  %6368 = vmatprep.subr.bf16.mxu1 %v6367_v43  ;;  %v3786_v52 = vsel %vm10004_vm5, %v10003_v28, %v7397_v48  ;;  %vm10008_vm13 = vmmov %vm10001_vm11  ;;  %vm10009_vm5 = vcmask 236544   ;;  %v5911_v48 = vld [vmem:[%s9943_s1 + $0x90] sm:$0xff]  ;;  %v10018_v27 = vmov 0.0  }
 0x738   : > { %v7503_v19 = vunpack.i.h.bf16 %v7501_v0  ;;  %v7502_v44 = vunpack.i.l.bf16 %v7501_v0  ;;  %v7493_v17 = vunpack.i.h.bf16 %v7491_v24  ;;  %v7492_v12 = vunpack.i.l.bf16 %v7491_v24  ;;  %vm10010_vm14 = vmmov %vm10001_vm11  ;;  %7525 = vrot.lane.b32.xlu0 %v10018_v27, %s7937_s11  ;;  %7520 = vrot.lane.b32.xlu1 %v10018_v27, %s7938_s14 }
 0x739   : > { %v3851_v57 = vsel %vm10008_vm13, %v7462_v29, %v7463_v20  ;;  %v3913_v11 = vsel %vm10009_vm5, %v7487_v25, %v7488_v45  ;;  %vm10014_vm13 = vmmov %vm10009_vm5 }
 0x73a   : > { %v3790_v2 = vsel %vm10006_vm12, %v7438_v56, %v7492_v12  ;;  %6340 = vmatpush1.bf16.msra.mxu0 %v6339_v63  ;;  %6370 = vmatpush1.bf16.msra.mxu1 %v6369_v10  ;;  %v3791_v13 = vsel %vm10007_vm2, %v7492_v12, %v7493_v17  ;;  %v3855_v22 = vsel %vm10001_vm11, %v7502_v44, %v7503_v19  ;;  %vm10011_vm12 = vmmov %vm10009_vm5 }
 0x73b   : > { %v7506_v53 = vpop.permute.xlu0 %7505  ;;  %v6373_v38 = vpack.c.bf16 %v3790_v2, %v3786_v52  ;;  %v7496_v1 = vpop.permute.xlu1 %7495  ;;  %v6371_v30 = vpack.c.bf16 %v3791_v13, %v3787_v41  ;;  %v3854_v32 = vsel %vm10010_vm14, %v7473_v15, %v7502_v44  ;;  %v6375_v56 = vpack.c.bf16 %v3855_v22, %v3851_v57  ;;  %vm10012_vm2 = vmmov %vm10001_vm11 }
 0x73c   : > { %v7508_v46 = vunpack.i.h.bf16 %v7506_v53  ;;  %v7507_v40 = vunpack.i.l.bf16 %v7506_v53  ;;  %v7497_v21 = vunpack.i.l.bf16 %v7496_v1  ;;  %v7498_v59 = vunpack.i.h.bf16 %v7496_v1  ;;  %vm10013_vm11 = vmmov %vm10009_vm5  ;;  %7535 = vrot.lane.b32.xlu0 %v10018_v27, %s7939_s15  ;;  %7530 = vrot.lane.b32.xlu1 %v10018_v27, %s7940_s16 }
 0x73d   : > { %6372 = vmatprep.subr.bf16.mxu1 %v6371_v30  ;;  %v3850_v9 = vsel %vm10012_vm2, %v7458_v54, %v7462_v29  ;;  %vm10015_vm14 = vmmov %vm10009_vm5 }
 0x73e   : > { %v3917_v5 = vsel %vm10011_vm12, %v7507_v40, %v7508_v46  ;;  %6374 = vmatpush1.bf16.msra.mxu1 %v6373_v38  ;;  %v6377_v14 = vpack.c.bf16 %v3854_v32, %v3850_v9  ;;  %v3914_v42 = vsel %vm10013_vm11, %v7488_v45, %v7497_v21  ;;  %vm10016_vm12 = vmmov %vm10009_vm5  ;;  %vm10019_vm11 = vcmask 539648  }
 0x73f   : > { %v7516_v35 = vpop.permute.xlu0 %7515  ;;  %v6341_v61 = vpack.c.bf16 %v3917_v5, %v3913_v11  ;;  %v7511_v62 = vpop.permute.xlu1 %7510  ;;  %6376 = vmatprep.subr.bf16.mxu1 %v6375_v56  ;;  %v3915_v7 = vsel %vm10016_vm12, %v7497_v21, %v7498_v59  ;;  %vm10017_vm2 = vmmov %vm10009_vm5 }
 0x740   : > { %v7518_v37 = vunpack.i.h.bf16 %v7516_v35  ;;  %v7517_v4 = vunpack.i.l.bf16 %v7516_v35  ;;  %v7513_v26 = vunpack.i.h.bf16 %v7511_v62  ;;  %v7512_v15 = vunpack.i.l.bf16 %v7511_v62 }
 0x741   : > { %6342 = vmatprep.subr.bf16.mxu0 %v6341_v61 }
 0x742   : > { %v3912_v31 = vsel %vm10014_vm13, %v7517_v4, %v7487_v25  ;;  %v3916_v16 = vsel %vm10009_vm5, %v7518_v37, %v7507_v40  ;;  %v3918_v47 = vsel %vm10015_vm14, %v7508_v46, %v7512_v15  ;;  %6378 = vmatpush1.bf16.msra.mxu1 %v6377_v14  ;;  %v3919_v54 = vsel %vm10017_vm2, %v7512_v15, %v7513_v26  ;;  %vm10021_vm5 = vmmov %vm10019_vm11 }
 0x743   : > { %v6343_v6 = vpack.c.bf16 %v3916_v16, %v3912_v31  ;;  %v6381_v55 = vpack.c.bf16 %v3918_v47, %v3914_v42  ;;  %v6379_v60 = vpack.c.bf16 %v3919_v54, %v3915_v7  ;;  %v5920_v47 = vld [vmem:[%s9943_s1 + $0xa8] sm:$0xff]  ;;  %v5924_v7 = vld [vmem:[%s9944_s2 + $0x58] sm:$0xff]  ;;  %v5923_v54 = vld [vmem:[%s9944_s2 + $0x50] sm:$0xff]  ;;  %vm10020_vm13 = vcmask 523264  }
 0x744   : > { %vm10022_vm14 = vmmov %vm10021_vm5 }
 0x745   : > { %6344 = vmatpush1.bf16.msra.mxu0 %v6343_v6  ;;  %6380 = vmatprep.subr.bf16.mxu1 %v6379_v60  ;;  %vm10023_vm12 = vmmov %vm10021_vm5 }
 0x746   : > { %6382 = vmatpush1.bf16.msra.mxu1 %v6381_v55  ;;  %vm10024_vm2 = vmmov %vm10021_vm5 }
 0x748   : > { %4097 = vmatmul.mubr.f32.vlgmr.msra.gmra.mrb[16].mxu0 %v5909_v18 }
 0x749   : > { %5916 = vmatprep.mubr.msk.f32.mxu0 %vm892_vm0, %v5912_v49  ;;  %4174 = vmatmul.mubr.f32.vlgmr.msra.gmra.mrb[16].mxu1 %v5909_v18 }
 0x74a   : > { %5918 = vmatprep.mubr.msk.f32.mxu1 %vm892_vm0, %v5912_v49 }
 0x74c   : > { %4103 = vmatmul.mubr.f32.gmra.mrb[18].mxu0 %v5911_v48 }
 0x74d   : > { %4180 = vmatmul.mubr.f32.gmra.mrb[18].mxu1 %v5911_v48  ;;  %5925 = vmatprep.mubr.msk.f32.mxu0 %vm892_vm0, %v5920_v47 }
 0x74e   : > { %5927 = vmatprep.mubr.msk.f32.mxu1 %vm892_vm0, %v5920_v47 }
 0x750   : > { %v4019_v43 = vpop.permute.xlu1 %4018  ;;  %v4024_v44 = vpop.permute.xlu0 %4023 }
 0x7aa   : > { %v9371_v55 = vpop.permute.xlu0 %7525  ;;  %v7521_v60 = vpop.permute.xlu1 %7520 }
 0x7ae   : > { %v9373_v18 = vpop.permute.xlu0 %7535  ;;  %v9375_v49 = vpop.permute.xlu1 %7530 }
 0x81b   : > { %v4098_v20 = vpop.f32.mrb[16].mxu0 }
 0x81c   : > { %v4099_v29 = vadd.f32 %v4098_v20, %v4019_v43  ;;  %v4100_v36 = vpop.f32.mrb[17].mxu0  ;;  %v4175_v0 = vpop.f32.mrb[16].mxu1 }
 0x81d   : > { %v4101_v8 = vadd.f32 %v4100_v36, %v4019_v43  ;;  %v4176_v63 = vadd.f32 %v4175_v0, %v4019_v43  ;;  %v4177_v19 = vpop.f32.mrb[17].mxu1 }
 0x81e   : > { %v4186_v10 = vmax.f32 %v4099_v29, 0.0  ;;  %v4178_v45 = vadd.f32 %v4177_v19, %v4019_v43 }
 0x81f   : > { %v4187_v24 = vmax.f32 %v4101_v8, 0.0  ;;  %v4104_v25 = vpop.f32.mrb[18].mxu0  ;;  %v4188_v12 = vmax.f32 %v4176_v63, 0.0 }
 0x820   : > { %v4194_v17 = vsel %vm8177_vm15, %v4186_v10, 0.0  ;;  %v4105_v28 = vadd.f32 %v4104_v25, %v4024_v44  ;;  %v4106_v52 = vpop.f32.mrb[19].mxu0  ;;  %v4189_v2 = vmax.f32 %v4178_v45, 0.0  ;;  %v4181_v13 = vpop.f32.mrb[18].mxu1  ;;  %v7522_v45 = vunpack.i.l.bf16 %v7521_v60 }
 0x821   : > { %v4195_v41 = vsel %vm8181_vm8, %v4187_v24, 0.0  ;;  %v4107_v53 = vadd.f32 %v4106_v52, %v4024_v44  ;;  %v4196_v22 = vsel %vm8185_vm6, %v4188_v12, 0.0  ;;  %v4182_v46 = vadd.f32 %v4181_v13, %v4024_v44  ;;  %v4183_v40 = vpop.f32.mrb[19].mxu1 }
 0x822   : > { %v4190_v38 = vmax.f32 %v4105_v28, 0.0  ;;  %v7544_v1 = vpack.i.bf16 %v4195_v41, %v4194_v17  ;;  %v4197_v30 = vsel %vm8207_vm10, %v4189_v2, 0.0  ;;  %v4184_v11 = vadd.f32 %v4183_v40, %v4024_v44 }
 0x823   : > { %v4191_v57 = vmax.f32 %v4107_v53, 0.0  ;;  %v4192_v56 = vmax.f32 %v4182_v46, 0.0  ;;  %v7564_v37 = vpack.i.bf16 %v4196_v22, %v4195_v41  ;;  %v7569_v14 = vpack.i.bf16 %v4197_v30, %v4196_v22 }
 0x824   : > { %v4198_v32 = vsel %vm8177_vm15, %v4190_v38, 0.0  ;;  %v9308_v21 = vpack.c.bf16 %v4190_v38, %v4186_v10  ;;  %7545 = vrot.lane.b32.xlu0 %v7544_v1, %s7937_s11  ;;  %v4193_v35 = vmax.f32 %v4184_v11, 0.0  ;;  %7540 = vrot.lane.b32.xlu1 %v7544_v1, %s7938_s14  ;;  %v7589_v16 = vpack.i.bf16 %v10018_v27, %v4197_v30 }
 0x825   : > { %v4199_v5 = vsel %vm8181_vm8, %v4191_v57, 0.0  ;;  %v9313_v59 = vpack.c.bf16 %v4191_v57, %v4187_v24  ;;  %v4200_v61 = vsel %vm8185_vm6, %v4192_v56, 0.0  ;;  %v9318_v9 = vpack.c.bf16 %v4192_v56, %v4188_v12 }
 0x826   : > { %v4201_v4 = vsel %vm8207_vm10, %v4193_v35, 0.0  ;;  %v9322_v62 = vpack.c.bf16 %v4193_v35, %v4189_v2  ;;  %v7609_v26 = vpack.i.bf16 %v4199_v5, %v4198_v32  ;;  %v7599_v15 = vpack.i.bf16 %v4198_v32, %v4194_v17 }
 0x827   : > { %v7629_v42 = vpack.i.bf16 %v4201_v4, %v4200_v61  ;;  %v7634_v31 = vpack.i.bf16 %v4200_v61, %v4199_v5  ;;  %v7679_v6 = vpack.i.bf16 %v10018_v27, %v4201_v4  ;;  %v7528_v2 = vunpack.i.h.bf16 %v9371_v55 }
 0x828   : > { %7555 = vrot.lane.b32.xlu0 %v7544_v1, %s7939_s15  ;;  %7550 = vrot.lane.b32.xlu1 %v7544_v1, %s7940_s16  ;;  %v7527_v53 = vunpack.i.l.bf16 %v9371_v55  ;;  %v7523_v13 = vunpack.i.h.bf16 %v7521_v60  ;;  %v7537_v22 = vunpack.i.l.bf16 %v9373_v18  ;;  %v7532_v38 = vunpack.i.l.bf16 %v9375_v49 }
 0x82c   : > { %7565 = vrot.lane.b32.xlu0 %v7564_v37, %s7938_s14  ;;  %7560 = vrot.lane.b32.xlu1 %v7564_v37, %s7941_s26 }
 0x830   : > { %7570 = vrot.lane.b32.xlu0 %v7569_v14, %s7938_s14  ;;  %7575 = vrot.lane.b32.xlu1 %v7569_v14, %s7937_s11 }
 0x834   : > { %7580 = vrot.lane.b32.xlu0 %v7569_v14, %s7940_s16  ;;  %7585 = vrot.lane.b32.xlu1 %v7569_v14, %s7939_s15 }
 0x838   : > { %7590 = vrot.lane.b32.xlu0 %v7589_v16, %s7941_s26  ;;  %7595 = vrot.lane.b32.xlu1 %v7589_v16, %s7938_s14 }
 0x83c   : > { %7610 = vrot.lane.b32.xlu0 %v7609_v26, %s7937_s11  ;;  %7600 = vrot.lane.b32.xlu1 %v7599_v15, %s7941_s26 }
 0x840   : > { %7620 = vrot.lane.b32.xlu0 %v7609_v26, %s7939_s15  ;;  %7605 = vrot.lane.b32.xlu1 %v7609_v26, %s7938_s14 }
 0x844   : > { %7630 = vrot.lane.b32.xlu0 %v7629_v42, %s7938_s14  ;;  %7615 = vrot.lane.b32.xlu1 %v7609_v26, %s7940_s16 }
 0x848   : > { %7635 = vrot.lane.b32.xlu0 %v7634_v31, %s7938_s14  ;;  %7625 = vrot.lane.b32.xlu1 %v7634_v31, %s7941_s26 }
 0x84c   : > { %7645 = vrot.lane.b32.xlu0 %v7629_v42, %s7940_s16  ;;  %7640 = vrot.lane.b32.xlu1 %v7629_v42, %s7937_s11 }
 0x850   : > { %7650 = vrot.lane.b32.xlu0 %v7599_v15, %s7938_s14  ;;  %7655 = vrot.lane.b32.xlu1 %v7564_v37, %s7937_s11 }
 0x854   : > { %7660 = vrot.lane.b32.xlu0 %v7589_v16, %s7937_s11  ;;  %7665 = vrot.lane.b32.xlu1 %v7629_v42, %s7939_s15 }
 0x858   : > { %7680 = vrot.lane.b32.xlu0 %v7679_v6, %s7941_s26  ;;  %7670 = vrot.lane.b32.xlu1 %v7634_v31, %s7937_s11 }
 0x85c   : > { %7685 = vrot.lane.b32.xlu0 %v7564_v37, %s7940_s16  ;;  %7675 = vrot.lane.b32.xlu1 %v7599_v15, %s7937_s11 }
 0x860   : > { %7700 = vrot.lane.b32.xlu0 %v7679_v6, %s7937_s11  ;;  %7690 = vrot.lane.b32.xlu1 %v7679_v6, %s7938_s14 }
 0x864   : > { %7705 = vrot.lane.b32.xlu0 %v7634_v31, %s7940_s16  ;;  %7695 = vrot.lane.b32.xlu1 %v7589_v16, %s7940_s16 }
 0x868   : > { %7715 = vrot.lane.b32.xlu0 %v7599_v15, %s7940_s16  ;;  %7710 = vrot.lane.b32.xlu1 %v7679_v6, %s7940_s16 }
 0x86c   : > { %4825 = vperm.xlu0 %6767, %v5924_v7   ;;  %4820 = vperm.xlu1 %6768, %v5923_v54  }
 0x870   : > { %7725 = vrot.lane.b32.xlu0 %v10018_v27, %s7928_s19  ;;  %7720 = vrot.lane.b32.xlu1 %v10018_v27, %s7927_s18 }
 0x874   : > { %7735 = vrot.lane.b32.xlu0 %v10018_v27, %s7930_s21  ;;  %7730 = vrot.lane.b32.xlu1 %v10018_v27, %s7929_s20 }
 0x896   : > { %v9377_v48 = vpop.permute.xlu0 %7545  ;;  %v7541_v43 = vpop.permute.xlu1 %7540 }
 0x897   : > { %v7548_v25 = vunpack.i.h.bf16 %v9377_v48  ;;  %v7547_v17 = vunpack.i.l.bf16 %v9377_v48  ;;  %v7542_v12 = vunpack.i.l.bf16 %v7541_v43  ;;  %v7543_v28 = vunpack.i.h.bf16 %v7541_v43 }
 0x899   : > { %v4250_v46 = vsel %vm10019_vm11, %v7522_v45, %v7542_v12  ;;  %v4315_v40 = vsel %vm10020_vm13, %v7547_v17, %v7548_v25  ;;  %v4251_v32 = vsel %vm10021_vm5, %v7542_v12, %v7543_v28  ;;  %vm10025_vm11 = vmmov %vm10020_vm13 }
 0x89a   : > { %v9379_v20 = vpop.permute.xlu0 %7555  ;;  %v9381_v29 = vpop.permute.xlu1 %7550  ;;  %vm10026_vm13 = vmmov %vm10025_vm11 }
 0x89b   : > { %v7558_v56 = vunpack.i.h.bf16 %v9379_v20  ;;  %v7557_v5 = vunpack.i.l.bf16 %v9379_v20  ;;  %v7553_v35 = vunpack.i.h.bf16 %v9381_v29  ;;  %v7552_v61 = vunpack.i.l.bf16 %v9381_v29  ;;  %vm10027_vm5 = vmmov %vm10024_vm2 }
 0x89e   : > { %v9383_v36 = vpop.permute.xlu0 %7565  ;;  %v9385_v8 = vpop.permute.xlu1 %7560 }
 0x89f   : > { %v7563_v31 = vunpack.i.h.bf16 %v9385_v8 }
 0x8a2   : > { %v7571_v0 = vpop.permute.xlu0 %7570  ;;  %v9387_v10 = vpop.permute.xlu1 %7575 }
 0x8a3   : > { %v7572_v1 = vunpack.i.l.bf16 %v7571_v0  ;;  %v7573_v14 = vunpack.i.h.bf16 %v7571_v0  ;;  %v7577_v6 = vunpack.i.l.bf16 %v9387_v10 }
 0x8a5   : > { %v4252_v47 = vsel %vm10022_vm14, %v7543_v28, %v7572_v1  ;;  %vm10028_vm14 = vmmov %vm10024_vm2 }
 0x8a6   : > { %v9389_v63 = vpop.permute.xlu0 %7580  ;;  %v9391_v19 = vpop.permute.xlu1 %7585 }
 0x8aa   : > { %v9393_v44 = vpop.permute.xlu0 %7590  ;;  %v9395_v24 = vpop.permute.xlu1 %7595 }
 0x8ae   : > { %v9399_v52 = vpop.permute.xlu0 %7610  ;;  %v9401_v41 = vpop.permute.xlu1 %7600 }
 0x8af   : > { %v9967_v30 = vunpack.i.h.bf16 %v9399_v52  ;;  %v7612_v57 = vunpack.i.l.bf16 %v9399_v52 }
 0x8b1   : > { %v4319_v60 = vsel %vm10025_vm11, %v7612_v57, %v9967_v30  ;;  %v4318_v42 = vsel %vm10026_vm13, %v7528_v2, %v7612_v57  ;;  %vm10031_vm13 = vcmask 15360  }
 0x8b2   : > { %v9413_v11 = vpop.permute.xlu0 %7620  ;;  %v7606_v37 = vpop.permute.xlu1 %7605  ;;  %v6387_v30 = vpack.c.bf16 %v4319_v60, %v4315_v40 }
 0x8b3   : > { %v7608_v26 = vunpack.i.h.bf16 %v7606_v37  ;;  %v7607_v15 = vunpack.i.l.bf16 %v7606_v37 }
 0x8b5   : > { %v4254_v7 = vsel %vm10023_vm12, %v7523_v13, %v7607_v15  ;;  %v4255_v55 = vsel %vm10024_vm2, %v7607_v15, %v7608_v26  ;;  %v4253_v13 = vsel %vm10027_vm5, %v7572_v1, %v7573_v14  ;;  %v7623_v15 = vunpack.i.h.bf16 %v9413_v11  ;;  %vm10029_vm12 = vmmov %vm10024_vm2 }
 0x8b6   : > { %v7631_v54 = vpop.permute.xlu0 %7630  ;;  %v6385_v43 = vpack.c.bf16 %v4254_v7, %v4250_v46  ;;  %v9431_v12 = vpop.permute.xlu1 %7615  ;;  %v6383_v37 = vpack.c.bf16 %v4255_v55, %v4251_v32  ;;  %v7622_v7 = vunpack.i.l.bf16 %v9413_v11  ;;  %vm10030_vm2 = vcmask 506880  }
 0x8b7   : > { %v7633_v0 = vunpack.i.h.bf16 %v7631_v54  ;;  %v7632_v45 = vunpack.i.l.bf16 %v7631_v54  ;;  %v7618_v4 = vunpack.i.h.bf16 %v9431_v12  ;;  %v7617_v28 = vunpack.i.l.bf16 %v9431_v12  ;;  %vm10032_vm5 = vmmov %vm10030_vm2 }
 0x8b8   : > { %6384 = vmatprep.subr.bf16.mxu0 %v6383_v37  ;;  %v7533_v1 = vunpack.i.h.bf16 %v9375_v49  ;;  %v4314_v14 = vsel %vm10025_vm11, %v7527_v53, %v7547_v17  ;;  %v7538_v55 = vunpack.i.h.bf16 %v9373_v18  ;;  %v4379_v60 = vsel %vm10032_vm5, %v7552_v61, %v7553_v35 }
 0x8b9   : > { %v4256_v16 = vsel %vm10028_vm14, %v7608_v26, %v7632_v45  ;;  %v4257_v46 = vsel %vm10029_vm12, %v7632_v45, %v7633_v0  ;;  %6386 = vmatpush1.bf16.msra.mxu0 %v6385_v43  ;;  %v4383_v57 = vsel %vm10030_vm2, %v7617_v28, %v7618_v4  ;;  %v7578_v26 = vunpack.i.h.bf16 %v9387_v10  ;;  %vm10033_vm14 = vmmov %vm10030_vm2 }
 0x8ba   : > { %v6423_v54 = vpack.c.bf16 %v4256_v16, %v4252_v47  ;;  %v9441_v32 = vpop.permute.xlu0 %7635  ;;  %v6421_v2 = vpack.c.bf16 %v4257_v46, %v4253_v13  ;;  %v9449_v40 = vpop.permute.xlu1 %7625  ;;  %6388 = vmatprep.subr.bf16.mxu0 %v6387_v30  ;;  %v4442_v16 = vsel %vm10031_vm13, %v7537_v22, %v7557_v5  ;;  %v6389_v47 = vpack.c.bf16 %v4318_v42, %v4314_v14  ;;  %vm10034_vm12 = vmmov %vm10030_vm2 }
 0x8bb   : > { %v4378_v43 = vsel %vm10033_vm14, %v7532_v38, %v7552_v61  ;;  %v4382_v49 = vsel %vm10034_vm12, %v7533_v1, %v7617_v28  ;;  %v6391_v17 = vpack.c.bf16 %v4383_v57, %v4379_v60  ;;  %vm10035_vm2 = vmmov %vm10031_vm13  ;;  %v4316_v18 = vsel %vm10025_vm11, %v7548_v25, %v7577_v6 }
 0x8bc   : > { %6422 = vmatprep.subr.bf16.mxu1 %v6421_v2  ;;  %v4443_v10 = vsel %vm10035_vm2, %v7557_v5, %v7558_v56  ;;  %vm10036_vm13 = vmmov %vm10035_vm2  ;;  %v10037_v38 = vunpack.i.l.bf16 %v9385_v8  ;;  %vm10038_vm5 = vcmask 1031168   ;;  %v10039_v61 = vunpack.i.h.bf16 %v9383_v36 }
 0x8bd   : > { %6424 = vmatpush1.bf16.msra.mxu1 %v6423_v54  ;;  %6390 = vmatpush1.bf16.msra.mxu0 %v6389_v47  ;;  %v4447_v22 = vsel %vm10036_vm13, %v7622_v7, %v7623_v15  ;;  %v10040_v5 = vunpack.i.l.bf16 %v9383_v36  ;;  %vm10041_vm14 = vcmask 539648   ;;  %v7583_v25 = vunpack.i.h.bf16 %v9389_v63  ;;  %vm10042_vm12 = vmmov %vm10025_vm11 }
 0x8be   : > { %v7646_v53 = vpop.permute.xlu0 %7645  ;;  %v9472_v30 = vsel %vm10038_vm5, %v10037_v38, %v7563_v31  ;;  %v7641_v45 = vpop.permute.xlu1 %7640  ;;  %6392 = vmatprep.subr.bf16.mxu0 %v6391_v17  ;;  %v4317_v37 = vsel %vm10042_vm12, %v7577_v6, %v7578_v26  ;;  %v7582_v28 = vunpack.i.l.bf16 %v9389_v63  ;;  %v6393_v13 = vpack.c.bf16 %v4382_v49, %v4378_v43  ;;  %vm10044_vm13 = vmmov %vm10025_vm11 }
 0x8bf   : > { %v9479_v48 = vsel %vm10041_vm14, %v10040_v5, %v10039_v61  ;;  %v7648_v42 = vunpack.i.h.bf16 %v7646_v53  ;;  %v7647_v0 = vunpack.i.l.bf16 %v7646_v53  ;;  %v7643_v46 = vunpack.i.h.bf16 %v7641_v45 }
 0x8c0   : > { %v7642_v54 = vunpack.i.l.bf16 %v7641_v45  ;;  %v7587_v2 = vunpack.i.l.bf16 %v9391_v19  ;;  %v4446_v57 = vsel %vm10035_vm2, %v7538_v55, %v7622_v7  ;;  %v7628_v1 = vunpack.i.h.bf16 %v9449_v40 }
 0x8c1   : > { %v6395_v14 = vpack.c.bf16 %v4447_v22, %v4443_v10  ;;  %v7627_v47 = vunpack.i.l.bf16 %v9449_v40  ;;  %v10043_v60 = vunpack.i.h.bf16 %v9399_v52  ;;  %6394 = vmatpush1.bf16.msra.mxu0 %v6393_v13  ;;  %vm10045_vm5 = vcmask 506880  }
 0x8c2   : > { %v7651_v6 = vpop.permute.xlu0 %7650  ;;  %v4321_v63 = vsel %vm10044_vm13, %v7642_v54, %v7643_v46  ;;  %v4385_v26 = vsel %vm10045_vm5, %v7647_v0, %v7648_v42  ;;  %v7588_v43 = vunpack.i.h.bf16 %v9391_v19  ;;  %v7602_v49 = vunpack.i.l.bf16 %v9401_v41  ;;  %v9495_v55 = vpop.permute.xlu1 %7655  ;;  %vm10046_vm14 = vmmov %vm10045_vm5 }
 0x8c3   : > { %v4320_v17 = vsel %vm10025_vm11, %v10043_v60, %v7642_v54  ;;  %6396 = vmatprep.subr.bf16.mxu0 %v6395_v14  ;;  %v6425_v10 = vpack.c.bf16 %v4321_v63, %v4317_v37  ;;  %v7603_v53 = vunpack.i.h.bf16 %v9401_v41  ;;  %v6397_v52 = vpack.c.bf16 %v4446_v57, %v4442_v16  ;;  %vm10047_vm12 = vmmov %vm10045_vm5 }
 0x8c4   : > { %v6427_v7 = vpack.c.bf16 %v4320_v17, %v4316_v18  ;;  %v4384_v22 = vsel %vm10046_vm14, %v7618_v4, %v7647_v0  ;;  %v4381_v38 = vsel %vm10047_vm12, %v7582_v28, %v7583_v25  ;;  %vm10048_vm2 = vmmov %vm10045_vm5  ;;  %v7638_v61 = vunpack.i.h.bf16 %v9441_v32 }
 0x8c5   : > { %v4380_v19 = vsel %vm10048_vm2, %v7553_v35, %v7582_v28  ;;  %v7637_v18 = vunpack.i.l.bf16 %v9441_v32  ;;  %6426 = vmatprep.subr.bf16.mxu1 %v6425_v10  ;;  %v6429_v5 = vpack.c.bf16 %v4385_v26, %v4381_v38  ;;  %vm10049_vm11 = vcmask 15360   ;;  %6398 = vmatpush1.bf16.msra.mxu0 %v6397_v52 }
 0x8c6   : > { %v4444_v41 = vsel %vm10049_vm11, %v7558_v56, %v7587_v2  ;;  %vm10050_vm13 = vcmask 1031168   ;;  %6428 = vmatpush1.bf16.msra.mxu1 %v6427_v7  ;;  %v9511_v4 = vpop.permute.xlu0 %7660  ;;  %v7593_v35 = vunpack.i.h.bf16 %v9393_v44  ;;  %v10052_v16 = vunpack.i.l.bf16 %v9385_v8  ;;  %v7666_v20 = vpop.permute.xlu1 %7665  ;;  %6401 = vmatprep.subr.msk.bf16.mxu0 %vm8387_vm9, %v9313_v59  ;;  %vm10054_vm12 = vmmov %vm10049_vm11 }
 0x8c7   : > { %v4526_v12 = vsel %vm10050_vm13, %v7603_v53, %v7627_v47  ;;  %vm10051_vm5 = vmmov %vm10050_vm13  ;;  %v6431_v42 = vpack.c.bf16 %v4384_v22, %v4380_v19  ;;  %6430 = vmatprep.subr.bf16.mxu1 %v6429_v5  ;;  %v4445_v56 = vsel %vm10054_vm12, %v7587_v2, %v7588_v43  ;;  %v7653_v0 = vunpack.i.h.bf16 %v7651_v6 }
 0x8c8   : > { %v4527_v29 = vsel %vm10051_vm5, %v7627_v47, %v7628_v1  ;;  %vm10053_vm14 = vmmov %vm10051_vm5  ;;  %v7652_v45 = vunpack.i.l.bf16 %v7651_v6  ;;  %v7668_v37 = vunpack.i.h.bf16 %v7666_v20  ;;  %v7667_v28 = vunpack.i.l.bf16 %v7666_v20 }
 0x8c9   : > { %v4522_v25 = vsel %vm10053_vm14, %v7602_v49, %v10052_v16  ;;  %v7592_v13 = vunpack.i.l.bf16 %v9393_v44  ;;  %v6405_v54 = vpack.c.bf16 %v4527_v29, %v9472_v30  ;;  %vm10055_vm2 = vcmask 539648   ;;  %6404 = vmatpush1.bf16.msk.msra.mxu0 %vm8406_vm4, %v9308_v21  ;;  %vm10056_vm13 = vmmov %vm10049_vm11 }
 0x8ca   : > { %v6407_v46 = vpack.c.bf16 %v4526_v12, %v4522_v25  ;;  %v4591_v57 = vsel %vm10055_vm2, %v7637_v18, %v7638_v61  ;;  %v7658_v14 = vunpack.i.h.bf16 %v9495_v55  ;;  %v7657_v59 = vunpack.i.l.bf16 %v9495_v55  ;;  %6432 = vmatpush1.bf16.msra.mxu1 %v6431_v42  ;;  %v7681_v44 = vpop.permute.xlu0 %7680  ;;  %v9538_v6 = vpop.permute.xlu1 %7670  ;;  %vm10058_vm5 = vmmov %vm10055_vm2 }
 0x8cb   : > { %v4448_v2 = vsel %vm10049_vm11, %v7623_v15, %v7667_v28  ;;  %v4449_v30 = vsel %vm10056_vm13, %v7667_v28, %v7668_v37  ;;  %v7683_v60 = vunpack.i.h.bf16 %v7681_v44  ;;  %v7682_v17 = vunpack.i.l.bf16 %v7681_v44  ;;  %6406 = vmatprep.subr.bf16.mxu0 %v6405_v54  ;;  %vm10059_vm14 = vmmov %vm10055_vm2 }
 0x8cc   : > { %v6435_v47 = vpack.c.bf16 %v4448_v2, %v4444_v41  ;;  %v6433_v63 = vpack.c.bf16 %v4449_v30, %v4445_v56  ;;  %v10057_v26 = vunpack.i.l.bf16 %v9383_v36  ;;  %v4590_v15 = vsel %vm10059_vm14, %v7653_v0, %v7637_v18 }
 0x8cd   : > { %v7673_v43 = vunpack.i.h.bf16 %v9538_v6  ;;  %v7672_v21 = vunpack.i.l.bf16 %v9538_v6  ;;  %v6409_v49 = vpack.c.bf16 %v4591_v57, %v9479_v48  ;;  %6408 = vmatpush1.bf16.msra.mxu0 %v6407_v46  ;;  %vm10060_vm12 = vcmask 523264  }
 0x8ce   : > { %v4586_v11 = vsel %vm10058_vm5, %v7652_v45, %v10057_v26  ;;  %6434 = vmatprep.subr.bf16.mxu1 %v6433_v63  ;;  %v9547_v7 = vpop.permute.xlu0 %7685  ;;  %vm10061_vm2 = vcmask 1031168   ;;  %v7598_v52 = vunpack.i.h.bf16 %v9395_v24  ;;  %v7676_v38 = vpop.permute.xlu1 %7675  ;;  %vm10064_vm5 = vmmov %vm10060_vm12  ;;  %v7597_v29 = vunpack.i.l.bf16 %v9395_v24 }
 0x8cf   : > { %6436 = vmatpush1.bf16.msra.mxu1 %v6435_v47  ;;  %v4655_v10 = vsel %vm10060_vm12, %v7672_v21, %v7673_v43  ;;  %v4529_v53 = vsel %vm10061_vm2, %v7682_v17, %v7683_v60  ;;  %v6411_v22 = vpack.c.bf16 %v4590_v15, %v4586_v11  ;;  %6410 = vmatprep.subr.bf16.mxu0 %v6409_v49  ;;  %vm10062_vm11 = vmmov %vm10061_vm2  ;;  %v7678_v18 = vunpack.i.h.bf16 %v7676_v38 }
 0x8d0   : > { %6439 = vmatprep.subr.msk.bf16.mxu1 %vm8422_vm3, %v9322_v62  ;;  %v4525_v19 = vsel %vm10062_vm11, %v7592_v13, %v7593_v35  ;;  %vm10063_vm13 = vmmov %vm10061_vm2  ;;  %v7677_v5 = vunpack.i.l.bf16 %v7676_v38  ;;  %v4651_v41 = vsel %vm10064_vm5, %v7657_v59, %v7658_v14  ;;  %v7663_v35 = vunpack.i.h.bf16 %v9511_v4 }
 0x8d1   : > { %v4528_v48 = vsel %vm10063_vm13, %v7628_v1, %v7682_v17  ;;  %vm10065_vm14 = vmmov %vm10061_vm2  ;;  %v6413_v16 = vpack.c.bf16 %v4655_v10, %v4651_v41  ;;  %v6443_v62 = vpack.c.bf16 %v4529_v53, %v4525_v19  ;;  %v7662_v40 = vunpack.i.l.bf16 %v9511_v4  ;;  %6412 = vmatpush1.bf16.msra.mxu0 %v6411_v22 }
 0x8d2   : > { %v4524_v12 = vsel %vm10065_vm14, %v7563_v31, %v7592_v13  ;;  %vm10066_vm12 = vmmov %vm10064_vm5  ;;  %v7701_v8 = vpop.permute.xlu0 %7700  ;;  %v7691_v56 = vpop.permute.xlu1 %7690  ;;  %v7688_v0 = vunpack.i.h.bf16 %v9547_v7  ;;  %v7687_v4 = vunpack.i.l.bf16 %v9547_v7  ;;  %v10068_v28 = vunpack.i.h.bf16 %v9383_v36 }
 0x8d3   : > { %v4650_v1 = vsel %vm10066_vm12, %v7677_v5, %v7657_v59  ;;  %vm10067_vm2 = vmmov %vm10064_vm5  ;;  %6442 = vmatpush1.bf16.msk.msra.mxu1 %vm8441_vm1, %v9318_v9  ;;  %v6445_v42 = vpack.c.bf16 %v4528_v48, %v4524_v12  ;;  %v7703_v20 = vunpack.i.h.bf16 %v7701_v8  ;;  %v7702_v24 = vunpack.i.l.bf16 %v7701_v8  ;;  %6414 = vmatprep.subr.bf16.mxu0 %v6413_v16  ;;  %v5919_v12 = vld [vmem:[%s9943_s1 + $0xa0] sm:$0xff]  ;;  %v5921_v16 = vld [vmem:[%s9943_s1 + $0xb0] sm:$0xff] }
 0x8d4   : > { %v4654_v25 = vsel %vm10067_vm2, %v7678_v18, %v7672_v21  ;;  %6444 = vmatprep.subr.bf16.mxu1 %v6443_v62  ;;  %v7693_v45 = vunpack.i.h.bf16 %v7691_v56  ;;  %v7692_v37 = vunpack.i.l.bf16 %v7691_v56  ;;  %vm10069_vm11 = vcmask 539648   ;;  %vm10073_vm12 = vmmov %vm10067_vm2 }
 0x8d5   : > { %v6415_v31 = vpack.c.bf16 %v4654_v25, %v4650_v1  ;;  %v4588_v13 = vsel %vm10069_vm11, %v10068_v28, %v7597_v29  ;;  %vm10070_vm13 = vmmov %vm10069_vm11  ;;  %v4657_v59 = vsel %vm10073_vm12, %v7702_v24, %v7703_v20  ;;  %v4653_v60 = vsel %vm10067_vm2, %v7662_v40, %v7663_v35 }
 0x8d6   : > { %v4589_v9 = vsel %vm10070_vm13, %v7597_v29, %v7598_v52  ;;  %vm10071_vm5 = vmmov %vm10069_vm11  ;;  %v7706_v54 = vpop.permute.xlu0 %7705  ;;  %v7696_v47 = vpop.permute.xlu1 %7695  ;;  %vm10074_vm11 = vcmask 506880   ;;  %v5922_v29 = vld [vmem:[%s9943_s1 + $0xb8] sm:$0xff] }
 0x8d7   : > { %v4592_v46 = vsel %vm10071_vm5, %v7638_v61, %v7692_v37  ;;  %6416 = vmatpush1.bf16.msra.mxu0 %v6415_v31  ;;  %6446 = vmatpush1.bf16.msra.mxu1 %v6445_v42  ;;  %vm10072_vm14 = vmmov %vm10071_vm5  ;;  %v7708_v44 = vunpack.i.h.bf16 %v7706_v54  ;;  %v7707_v30 = vunpack.i.l.bf16 %v7706_v54  ;;  %v4715_v17 = vsel %vm10074_vm11, %v7687_v4, %v7688_v0 }
 0x8d8   : > { %v4593_v57 = vsel %vm10072_vm14, %v7692_v37, %v7693_v45  ;;  %v6449_v2 = vpack.c.bf16 %v4592_v46, %v4588_v13  ;;  %vm10075_vm13 = vmmov %vm10067_vm2  ;;  %v7697_v6 = vunpack.i.l.bf16 %v7696_v47  ;;  %v6451_v61 = vpack.c.bf16 %v4657_v59, %v4653_v60 }
 0x8d9   : > { %v6447_v36 = vpack.c.bf16 %v4593_v57, %v4589_v9  ;;  %v4656_v32 = vsel %vm10075_vm13, %v7673_v43, %v7702_v24  ;;  %vm10076_vm5 = vmmov %vm10074_vm11  ;;  %v7698_v26 = vunpack.i.h.bf16 %v7696_v47 }
 0x8da   : > { %v4719_v63 = vsel %vm10076_vm5, %v7707_v30, %v7708_v44  ;;  %v7716_v11 = vpop.permute.xlu0 %7715  ;;  %vm10077_vm14 = vmmov %vm10067_vm2  ;;  %v7711_v10 = vpop.permute.xlu1 %7710 }
 0x8db   : > { %6448 = vmatprep.subr.bf16.mxu1 %v6447_v36  ;;  %v6417_v15 = vpack.c.bf16 %v4719_v63, %v4715_v17  ;;  %v4652_v21 = vsel %vm10077_vm14, %v7658_v14, %v7662_v40  ;;  %v7718_v49 = vunpack.i.h.bf16 %v7716_v11  ;;  %v7717_v7 = vunpack.i.l.bf16 %v7716_v11  ;;  %vm10078_vm12 = vmmov %vm10076_vm5 }
 0x8dc   : > { %6450 = vmatpush1.bf16.msra.mxu1 %v6449_v2  ;;  %v6453_v53 = vpack.c.bf16 %v4656_v32, %v4652_v21  ;;  %v7713_v52 = vunpack.i.h.bf16 %v7711_v10  ;;  %v7712_v43 = vunpack.i.l.bf16 %v7711_v10  ;;  %v4716_v22 = vsel %vm10078_vm12, %v7688_v0, %v7697_v6  ;;  %vm10079_vm2 = vmmov %vm10076_vm5 }
 0x8dd   : > { %6452 = vmatprep.subr.bf16.mxu1 %v6451_v61  ;;  %6418 = vmatprep.subr.bf16.mxu0 %v6417_v15  ;;  %v4714_v38 = vsel %vm10079_vm2, %v7717_v7, %v7687_v4  ;;  %vm10080_vm11 = vmmov %vm10079_vm2  ;;  %vm10086_vm12 = vcmask 269312  }
 0x8de   : > { %v4718_v19 = vsel %vm10080_vm11, %v7718_v49, %v7707_v30  ;;  %vm10081_vm13 = vmmov %vm10079_vm2 }
 0x8df   : > { %v6419_v48 = vpack.c.bf16 %v4718_v19, %v4714_v38  ;;  %v4720_v18 = vsel %vm10081_vm13, %v7708_v44, %v7712_v43  ;;  %vm10082_vm5 = vmmov %vm10079_vm2 }
 0x8e0   : > { %6454 = vmatpush1.bf16.msra.mxu1 %v6453_v53  ;;  %v4717_v55 = vsel %vm10082_vm5, %v7697_v6, %v7698_v26  ;;  %vm10083_vm14 = vmmov %vm10079_vm2  ;;  %v6457_v5 = vpack.c.bf16 %v4720_v18, %v4716_v22  ;;  %v5930_v18 = vld [vmem:[%s9943_s1 + $0xc8] sm:$0xff]  ;;  %vm10087_vm2 = vcmask 261120  }
 0x8e1   : > { %v4721_v14 = vsel %vm10083_vm14, %v7712_v43, %v7713_v52  ;;  %6420 = vmatpush1.bf16.msra.mxu0 %v6419_v48  ;;  %vm10088_vm11 = vmmov %vm10086_vm12 }
 0x8e2   : > { %v6455_v41 = vpack.c.bf16 %v4721_v14, %v4717_v55  ;;  %vm10089_vm13 = vmmov %vm10088_vm11 }
 0x8e3   : > { %vm10090_vm5 = vmmov %vm10088_vm11 }
 0x8e4   : > { %6456 = vmatprep.subr.bf16.mxu1 %v6455_v41  ;;  %4899 = vmatmul.mubr.f32.vlgmr.msra.gmra.mrb[20].mxu0 %v5919_v12  ;;  %vm10091_vm14 = vmmov %vm10090_vm5 }
 0x8e5   : > { %6458 = vmatpush1.bf16.msra.mxu1 %v6457_v5  ;;  %5926 = vmatprep.mubr.msk.f32.mxu0 %vm892_vm0, %v5922_v29 }
 0x8e8   : > { %4976 = vmatmul.mubr.f32.vlgmr.msra.gmra.mrb[20].mxu1 %v5919_v12  ;;  %4905 = vmatmul.mubr.f32.gmra.mrb[22].mxu0 %v5921_v16 }
 0x8e9   : > { %5928 = vmatprep.mubr.msk.f32.mxu1 %vm892_vm0, %v5922_v29  ;;  %5935 = vmatprep.mubr.msk.f32.mxu0 %vm892_vm0, %v5930_v18 }
 0x8eb   : > { %v4821_v62 = vpop.permute.xlu1 %4820  ;;  %v4826_v24 = vpop.permute.xlu0 %4825 }
 0x8ec   : > { %4982 = vmatmul.mubr.f32.gmra.mrb[22].mxu1 %v5921_v16 }
 0x8ed   : > { %5937 = vmatprep.mubr.msk.f32.mxu1 %vm892_vm0, %v5930_v18 }
 0x8ef   : > { %v9686_v55 = vpop.permute.xlu0 %7725  ;;  %v7721_v14 = vpop.permute.xlu1 %7720 }
 0x8f3   : > { %v9688_v5 = vpop.permute.xlu0 %7735  ;;  %v9690_v41 = vpop.permute.xlu1 %7730 }
 0x9b7   : > { %v4900_v35 = vpop.f32.mrb[20].mxu0 }
 0x9b8   : > { %v4901_v40 = vadd.f32 %v4900_v35, %v4821_v62  ;;  %v4902_v1 = vpop.f32.mrb[21].mxu0 }
 0x9b9   : > { %v4903_v25 = vadd.f32 %v4902_v1, %v4821_v62 }
 0x9ba   : > { %v4988_v42 = vmax.f32 %v4901_v40, 0.0 }
 0x9bb   : > { %v4977_v8 = vpop.f32.mrb[20].mxu1  ;;  %v4989_v56 = vmax.f32 %v4903_v25, 0.0  ;;  %v4906_v4 = vpop.f32.mrb[22].mxu0 }
 0x9bc   : > { %v4978_v31 = vadd.f32 %v4977_v8, %v4821_v62  ;;  %v4979_v20 = vpop.f32.mrb[21].mxu1  ;;  %v4996_v45 = vsel %vm8177_vm15, %v4988_v42, 0.0  ;;  %v4907_v28 = vadd.f32 %v4906_v4, %v4826_v24  ;;  %v4908_v13 = vpop.f32.mrb[23].mxu0 }
 0x9bd   : > { %v4980_v0 = vadd.f32 %v4979_v20, %v4821_v62  ;;  %v4997_v9 = vsel %vm8181_vm8, %v4989_v56, 0.0  ;;  %v4909_v54 = vadd.f32 %v4908_v13, %v4826_v24  ;;  %v7728_v13 = vunpack.i.h.bf16 %v9686_v55 }
 0x9be   : > { %v4990_v37 = vmax.f32 %v4978_v31, 0.0  ;;  %v4992_v2 = vmax.f32 %v4907_v28, 0.0  ;;  %v7744_v47 = vpack.i.bf16 %v4997_v9, %v4996_v45 }
 0x9bf   : > { %v4991_v46 = vmax.f32 %v4980_v0, 0.0  ;;  %v4983_v57 = vpop.f32.mrb[22].mxu1  ;;  %v4993_v60 = vmax.f32 %v4909_v54, 0.0  ;;  %v7737_v54 = vunpack.i.l.bf16 %v9688_v5 }
 0x9c0   : > { %v4998_v59 = vsel %vm8185_vm6, %v4990_v37, 0.0  ;;  %v4984_v44 = vadd.f32 %v4983_v57, %v4826_v24  ;;  %v4985_v30 = vpop.f32.mrb[23].mxu1  ;;  %v5000_v32 = vsel %vm8177_vm15, %v4992_v2, 0.0  ;;  %v9626_v6 = vpack.c.bf16 %v4992_v2, %v4988_v42  ;;  %7745 = vrot.lane.b32.xlu0 %v7744_v47, %s7928_s19  ;;  %7740 = vrot.lane.b32.xlu1 %v7744_v47, %s7927_s18 }
 0x9c1   : > { %v4999_v36 = vsel %vm8207_vm10, %v4991_v46, 0.0  ;;  %v4986_v17 = vadd.f32 %v4985_v30, %v4826_v24  ;;  %v5001_v63 = vsel %vm8181_vm8, %v4993_v60, 0.0  ;;  %v9631_v26 = vpack.c.bf16 %v4993_v60, %v4989_v56 }
 0x9c2   : > { %v4994_v61 = vmax.f32 %v4984_v44, 0.0  ;;  %v7764_v49 = vpack.i.bf16 %v4998_v59, %v4997_v9  ;;  %v7769_v53 = vpack.i.bf16 %v4999_v36, %v4998_v59  ;;  %v7809_v52 = vpack.i.bf16 %v5001_v63, %v5000_v32 }
 0x9c3   : > { %v4995_v11 = vmax.f32 %v4986_v17, 0.0  ;;  %v7799_v43 = vpack.i.bf16 %v5000_v32, %v4996_v45  ;;  %v7789_v19 = vpack.i.bf16 %v10018_v27, %v4999_v36  ;;  %v7727_v9 = vunpack.i.l.bf16 %v9686_v55 }
 0x9c4   : > { %v5002_v15 = vsel %vm8185_vm6, %v4994_v61, 0.0  ;;  %v9636_v21 = vpack.c.bf16 %v4994_v61, %v4990_v37  ;;  %7755 = vrot.lane.b32.xlu0 %v7744_v47, %s7930_s21  ;;  %7750 = vrot.lane.b32.xlu1 %v7744_v47, %s7929_s20  ;;  %v7722_v37 = vunpack.i.l.bf16 %v7721_v14 }
 0x9c5   : > { %v5003_v7 = vsel %vm8207_vm10, %v4995_v11, 0.0  ;;  %v9640_v10 = vpack.c.bf16 %v4995_v11, %v4991_v46  ;;  %v7834_v38 = vpack.i.bf16 %v5002_v15, %v5001_v63  ;;  %v7723_v46 = vunpack.i.h.bf16 %v7721_v14 }
 0x9c6   : > { %v7829_v22 = vpack.i.bf16 %v5003_v7, %v5002_v15  ;;  %v7879_v48 = vpack.i.bf16 %v10018_v27, %v5003_v7  ;;  %v5933_v27 = vld [vmem:[%s9944_s2 + $0x60] sm:$0xff] }
 0x9c8   : > { %7765 = vrot.lane.b32.xlu0 %v7764_v49, %s7932_s23  ;;  %7760 = vrot.lane.b32.xlu1 %v7764_v49, %s10084_s6 }
 0x9cc   : > { %7770 = vrot.lane.b32.xlu0 %v7769_v53, %s7927_s18  ;;  %7775 = vrot.lane.b32.xlu1 %v7769_v53, %s7928_s19 }
 0x9d0   : > { %7780 = vrot.lane.b32.xlu0 %v7769_v53, %s7929_s20  ;;  %7785 = vrot.lane.b32.xlu1 %v7769_v53, %s7930_s21 }
 0x9d4   : > { %7790 = vrot.lane.b32.xlu0 %v7789_v19, %s10084_s6  ;;  %7795 = vrot.lane.b32.xlu1 %v7789_v19, %s7932_s23 }
 0x9d8   : > { %7810 = vrot.lane.b32.xlu0 %v7809_v52, %s7928_s19  ;;  %7800 = vrot.lane.b32.xlu1 %v7799_v43, %s10084_s6 }
 0x9dc   : > { %7820 = vrot.lane.b32.xlu0 %v7809_v52, %s7930_s21  ;;  %7805 = vrot.lane.b32.xlu1 %v7809_v52, %s7927_s18 }
 0x9e0   : > { %7830 = vrot.lane.b32.xlu0 %v7829_v22, %s7927_s18  ;;  %7815 = vrot.lane.b32.xlu1 %v7809_v52, %s7929_s20  ;;  %s10085_s18 = smov 95  }
 0x9e4   : > { %7835 = vrot.lane.b32.xlu0 %v7834_v38, %s7932_s23  ;;  %7825 = vrot.lane.b32.xlu1 %v7834_v38, %s10084_s6 }
 0x9e8   : > { %7845 = vrot.lane.b32.xlu0 %v7829_v22, %s7929_s20  ;;  %7840 = vrot.lane.b32.xlu1 %v7829_v22, %s7928_s19 }
 0x9ec   : > { %7850 = vrot.lane.b32.xlu0 %v7799_v43, %s7932_s23  ;;  %7855 = vrot.lane.b32.xlu1 %v7764_v49, %s7933_s24 }
 0x9f0   : > { %7860 = vrot.lane.b32.xlu0 %v7789_v19, %s7933_s24  ;;  %7865 = vrot.lane.b32.xlu1 %v7829_v22, %s7930_s21 }
 0x9f4   : > { %7880 = vrot.lane.b32.xlu0 %v7879_v48, %s10084_s6  ;;  %7870 = vrot.lane.b32.xlu1 %v7834_v38, %s7933_s24 }
 0x9f8   : > { %7885 = vrot.lane.b32.xlu0 %v7764_v49, %s10085_s18  ;;  %7875 = vrot.lane.b32.xlu1 %v7799_v43, %s7933_s24 }
 0x9fc   : > { %7900 = vrot.lane.b32.xlu0 %v7879_v48, %s7933_s24  ;;  %7890 = vrot.lane.b32.xlu1 %v7879_v48, %s7932_s23 }
 0xa00   : > { %7905 = vrot.lane.b32.xlu0 %v7834_v38, %s10085_s18  ;;  %7895 = vrot.lane.b32.xlu1 %v7789_v19, %s10085_s18 }
 0xa04   : > { %7915 = vrot.lane.b32.xlu0 %v7799_v43, %s10085_s18  ;;  %7910 = vrot.lane.b32.xlu1 %v7879_v48, %s10085_s18 }
 0xa08   : > { %5622 = vperm.xlu1 %6768, %v5933_v27  }
 0xa32   : > { %v9692_v12 = vpop.permute.xlu0 %7745  ;;  %v7741_v29 = vpop.permute.xlu1 %7740 }
 0xa33   : > { %v7748_v24 = vunpack.i.h.bf16 %v9692_v12  ;;  %v7747_v56 = vunpack.i.l.bf16 %v9692_v12  ;;  %v7742_v0 = vunpack.i.l.bf16 %v7741_v29  ;;  %v7743_v4 = vunpack.i.h.bf16 %v7741_v29 }
 0xa35   : > { %v5052_v57 = vsel %vm10086_vm12, %v7722_v37, %v7742_v0  ;;  %v5117_v59 = vsel %vm10087_vm2, %v7747_v56, %v7748_v24  ;;  %v5053_v36 = vsel %vm10088_vm11, %v7742_v0, %v7743_v4  ;;  %vm10092_vm12 = vmmov %vm10087_vm2 }
 0xa36   : > { %v9694_v16 = vpop.permute.xlu0 %7755  ;;  %v9696_v62 = vpop.permute.xlu1 %7750  ;;  %vm10093_vm11 = vmmov %vm10090_vm5 }
 0xa37   : > { %v7758_v60 = vunpack.i.h.bf16 %v9694_v16  ;;  %v7757_v17 = vunpack.i.l.bf16 %v9694_v16  ;;  %v7753_v32 = vunpack.i.h.bf16 %v9696_v62  ;;  %v7752_v61 = vunpack.i.l.bf16 %v9696_v62 }
 0xa3a   : > { %v9698_v35 = vpop.permute.xlu0 %7765  ;;  %v9700_v40 = vpop.permute.xlu1 %7760 }
 0xa3b   : > { %v7768_v11 = vunpack.i.h.bf16 %v9698_v35  ;;  %v7763_v52 = vunpack.i.h.bf16 %v9700_v40  ;;  %v7762_v43 = vunpack.i.l.bf16 %v9700_v40 }
 0xa3e   : > { %v7771_v1 = vpop.permute.xlu0 %7770  ;;  %v9702_v25 = vpop.permute.xlu1 %7775 }
 0xa3f   : > { %v7772_v2 = vunpack.i.l.bf16 %v7771_v1  ;;  %v7773_v15 = vunpack.i.h.bf16 %v7771_v1  ;;  %v7777_v22 = vunpack.i.l.bf16 %v9702_v25 }
 0xa41   : > { %v5054_v38 = vsel %vm10089_vm13, %v7743_v4, %v7772_v2  ;;  %vm10094_vm13 = vmmov %vm10090_vm5 }
 0xa42   : > { %v9704_v8 = vpop.permute.xlu0 %7780  ;;  %v9706_v42 = vpop.permute.xlu1 %7785 }
 0xa46   : > { %v9708_v31 = vpop.permute.xlu0 %7790  ;;  %v9710_v20 = vpop.permute.xlu1 %7795 }
 0xa4a   : > { %v9714_v45 = vpop.permute.xlu0 %7810  ;;  %v9716_v28 = vpop.permute.xlu1 %7800 }
 0xa4b   : > { %v9968_v44 = vunpack.i.h.bf16 %v9714_v45  ;;  %v7812_v30 = vunpack.i.l.bf16 %v9714_v45 }
 0xa4d   : > { %v5121_v27 = vsel %vm10092_vm12, %v7812_v30, %v9968_v44  ;;  %v5120_v37 = vsel %vm10087_vm2, %v7728_v13, %v7812_v30  ;;  %vm10096_vm12 = vmmov %vm10087_vm2  ;;  %vm10097_vm2 = vcmask 7168  }
 0xa4e   : > { %v9727_v47 = vpop.permute.xlu0 %7820  ;;  %v7806_v63 = vpop.permute.xlu1 %7805  ;;  %v6463_v44 = vpack.c.bf16 %v5121_v27, %v5117_v59  ;;  %v7778_v59 = vunpack.i.h.bf16 %v9702_v25 }
 0xa4f   : > { %v7808_v49 = vunpack.i.h.bf16 %v7806_v63  ;;  %v7807_v7 = vunpack.i.l.bf16 %v7806_v63 }
 0xa51   : > { %v5056_v19 = vsel %vm10090_vm5, %v7723_v46, %v7807_v7  ;;  %v5057_v18 = vsel %vm10091_vm14, %v7807_v7, %v7808_v49  ;;  %v5055_v46 = vsel %vm10093_vm11, %v7772_v2, %v7773_v15  ;;  %v7823_v7 = vunpack.i.h.bf16 %v9727_v47 }
 0xa52   : > { %v7831_v48 = vpop.permute.xlu0 %7830  ;;  %v6461_v55 = vpack.c.bf16 %v5056_v19, %v5052_v57  ;;  %v9745_v1 = vpop.permute.xlu1 %7815  ;;  %v6459_v0 = vpack.c.bf16 %v5057_v18, %v5053_v36  ;;  %v7822_v19 = vunpack.i.l.bf16 %v9727_v47  ;;  %vm10095_vm14 = vcmask 252928  }
 0xa53   : > { %v7833_v14 = vunpack.i.h.bf16 %v7831_v48  ;;  %v7832_v29 = vunpack.i.l.bf16 %v7831_v48  ;;  %v7818_v63 = vunpack.i.h.bf16 %v9745_v1  ;;  %v7817_v4 = vunpack.i.l.bf16 %v9745_v1  ;;  %vm10098_vm11 = vmmov %vm10095_vm14 }
 0xa54   : > { %6460 = vmatprep.subr.bf16.mxu0 %v6459_v0  ;;  %v7733_v2 = vunpack.i.h.bf16 %v9690_v41  ;;  %v7732_v15 = vunpack.i.l.bf16 %v9690_v41 }
 0xa55   : > { %v5058_v53 = vsel %vm10094_vm13, %v7808_v49, %v7832_v29  ;;  %v5059_v57 = vsel %vm10090_vm5, %v7832_v29, %v7833_v14  ;;  %6462 = vmatpush1.bf16.msra.mxu0 %v6461_v55  ;;  %v5185_v30 = vsel %vm10095_vm14, %v7817_v4, %v7818_v63  ;;  %v5116_v49 = vsel %vm10096_vm12, %v7727_v9, %v7747_v56  ;;  %vm10099_vm13 = vmmov %vm10098_vm11 }
 0xa56   : > { %v6499_v48 = vpack.c.bf16 %v5058_v53, %v5054_v38  ;;  %v9755_v36 = vpop.permute.xlu0 %7835  ;;  %v6497_v13 = vpack.c.bf16 %v5059_v57, %v5055_v46  ;;  %v9764_v18 = vpop.permute.xlu1 %7825  ;;  %6464 = vmatprep.subr.bf16.mxu0 %v6463_v44  ;;  %v7738_v53 = vunpack.i.h.bf16 %v9688_v5  ;;  %v5244_v38 = vsel %vm10097_vm2, %v7737_v54, %v7757_v17  ;;  %vm10100_vm5 = vmmov %vm10098_vm11 }
 0xa57   : > { %v6465_v27 = vpack.c.bf16 %v5120_v37, %v5116_v49  ;;  %v5181_v55 = vsel %vm10098_vm11, %v7752_v61, %v7753_v32  ;;  %v5180_v14 = vsel %vm10099_vm13, %v7732_v15, %v7752_v61  ;;  %v5184_v41 = vsel %vm10100_vm5, %v7733_v2, %v7817_v4  ;;  %vm10101_vm14 = vmmov %vm10097_vm2 }
 0xa58   : > { %6498 = vmatprep.subr.bf16.mxu1 %v6497_v13  ;;  %v6467_v56 = vpack.c.bf16 %v5185_v30, %v5181_v55  ;;  %v5245_v25 = vsel %vm10101_vm14, %v7757_v17, %v7758_v60  ;;  %v5118_v5 = vsel %vm10096_vm12, %v7748_v24, %v7777_v22  ;;  %v5249_v54 = vsel %vm10097_vm2, %v7822_v19, %v7823_v7  ;;  %vm10105_vm5 = vmmov %vm10096_vm12 }
 0xa59   : > { %6500 = vmatpush1.bf16.msra.mxu1 %v6499_v48  ;;  %6466 = vmatpush1.bf16.msra.mxu0 %v6465_v27  ;;  %vm10102_vm11 = vcmask 1039360   ;;  %v10103_v17 = vunpack.i.l.bf16 %v9698_v35  ;;  %vm10104_vm13 = vcmask 793600   ;;  %v7783_v24 = vunpack.i.h.bf16 %v9704_v8  ;;  %vm10106_vm14 = vmmov %vm10097_vm2 }
 0xa5a   : > { %v7846_v9 = vpop.permute.xlu0 %7845  ;;  %v9787_v44 = vsel %vm10102_vm11, %v7762_v43, %v7763_v52  ;;  %v7841_v0 = vpop.permute.xlu1 %7840  ;;  %6468 = vmatprep.subr.bf16.mxu0 %v6467_v56  ;;  %v5119_v37 = vsel %vm10105_vm5, %v7777_v22, %v7778_v59  ;;  %v7782_v4 = vunpack.i.l.bf16 %v9704_v8  ;;  %v6469_v46 = vpack.c.bf16 %v5184_v41, %v5180_v14  ;;  %vm10108_vm12 = vmmov %vm10105_vm5 }
 0xa5b   : > { %v9794_v12 = vsel %vm10104_vm13, %v10103_v17, %v7768_v11  ;;  %v7848_v61 = vunpack.i.h.bf16 %v7846_v9  ;;  %v7847_v29 = vunpack.i.l.bf16 %v7846_v9  ;;  %v7843_v57 = vunpack.i.h.bf16 %v7841_v0  ;;  %vm10109_vm2 = vmmov %vm10105_vm5 }
 0xa5c   : > { %v7842_v48 = vunpack.i.l.bf16 %v7841_v0  ;;  %v7787_v13 = vunpack.i.l.bf16 %v9706_v42  ;;  %v5248_v30 = vsel %vm10106_vm14, %v7738_v53, %v7822_v19  ;;  %v7828_v2 = vunpack.i.h.bf16 %v9764_v18 }
 0xa5d   : > { %v6471_v15 = vpack.c.bf16 %v5249_v54, %v5245_v25  ;;  %v7827_v49 = vunpack.i.l.bf16 %v9764_v18  ;;  %v10107_v27 = vunpack.i.h.bf16 %v9714_v45  ;;  %6470 = vmatpush1.bf16.msra.mxu0 %v6469_v46  ;;  %vm10110_vm11 = vcmask 252928  }
 0xa5e   : > { %v7851_v22 = vpop.permute.xlu0 %7850  ;;  %v5123_v8 = vsel %vm10109_vm2, %v7842_v48, %v7843_v57  ;;  %v5187_v59 = vsel %vm10110_vm11, %v7847_v29, %v7848_v61  ;;  %v7788_v14 = vunpack.i.h.bf16 %v9706_v42  ;;  %v7802_v41 = vunpack.i.l.bf16 %v9716_v28  ;;  %v9810_v53 = vpop.permute.xlu1 %7855  ;;  %vm10111_vm13 = vmmov %vm10110_vm11 }
 0xa5f   : > { %v5122_v55 = vsel %vm10108_vm12, %v10107_v27, %v7842_v48  ;;  %6472 = vmatprep.subr.bf16.mxu0 %v6471_v15  ;;  %v6501_v56 = vpack.c.bf16 %v5123_v8, %v5119_v37  ;;  %v7803_v25 = vunpack.i.h.bf16 %v9716_v28  ;;  %v6473_v45 = vpack.c.bf16 %v5248_v30, %v5244_v38  ;;  %vm10112_vm5 = vmmov %vm10110_vm11 }
 0xa60   : > { %v6503_v19 = vpack.c.bf16 %v5122_v55, %v5118_v5  ;;  %v5186_v9 = vsel %vm10111_vm13, %v7818_v63, %v7847_v29  ;;  %v5183_v54 = vsel %vm10112_vm5, %v7782_v4, %v7783_v24  ;;  %vm10113_vm14 = vmmov %vm10112_vm5  ;;  %v7838_v17 = vunpack.i.h.bf16 %v9755_v36 }
 0xa61   : > { %v5182_v42 = vsel %vm10113_vm14, %v7753_v32, %v7782_v4  ;;  %v7837_v5 = vunpack.i.l.bf16 %v9755_v36  ;;  %6502 = vmatprep.subr.bf16.mxu1 %v6501_v56  ;;  %v6505_v61 = vpack.c.bf16 %v5187_v59, %v5183_v54  ;;  %vm10114_vm12 = vcmask 7168   ;;  %6474 = vmatpush1.bf16.msra.mxu0 %v6473_v45 }
 0xa62   : > { %v5246_v28 = vsel %vm10114_vm12, %v7758_v60, %v7787_v13  ;;  %vm10115_vm2 = vcmask 1039360   ;;  %6504 = vmatpush1.bf16.msra.mxu1 %v6503_v19  ;;  %v9826_v63 = vpop.permute.xlu0 %7860  ;;  %v7793_v32 = vunpack.i.h.bf16 %v9708_v31  ;;  %v6507_v24 = vpack.c.bf16 %v5186_v9, %v5182_v42  ;;  %v7866_v16 = vpop.permute.xlu1 %7865  ;;  %6477 = vmatprep.subr.msk.bf16.mxu0 %vm8387_vm9, %v9631_v26  ;;  %vm10118_vm5 = vmmov %vm10114_vm12 }
 0xa63   : > { %v5328_v1 = vsel %vm10115_vm2, %v7803_v25, %v7827_v49  ;;  %vm10116_vm11 = vmmov %vm10115_vm2  ;;  %6506 = vmatprep.subr.bf16.mxu1 %v6505_v61  ;;  %v5247_v60 = vsel %vm10118_vm5, %v7787_v13, %v7788_v14  ;;  %v7853_v29 = vunpack.i.h.bf16 %v7851_v22  ;;  %v7852_v0 = vunpack.i.l.bf16 %v7851_v22 }
 0xa64   : > { %v5329_v62 = vsel %vm10116_vm11, %v7827_v49, %v7828_v2  ;;  %vm10117_vm13 = vmmov %vm10115_vm2  ;;  %v7868_v37 = vunpack.i.h.bf16 %v7866_v16  ;;  %v7867_v4 = vunpack.i.l.bf16 %v7866_v16  ;;  %v7792_v46 = vunpack.i.l.bf16 %v9708_v31 }
 0xa65   : > { %v5324_v38 = vsel %vm10117_vm13, %v7802_v41, %v7762_v43  ;;  %v6481_v48 = vpack.c.bf16 %v5329_v62, %v9787_v44  ;;  %vm10119_vm14 = vcmask 793600   ;;  %v7858_v30 = vunpack.i.h.bf16 %v9810_v53  ;;  %vm10120_vm9 = vmmov %vm10118_vm5  ;;  %6480 = vmatpush1.bf16.msk.msra.mxu0 %vm8406_vm4, %v9626_v6 }
 0xa66   : > { %v6483_v57 = vpack.c.bf16 %v5328_v1, %v5324_v38  ;;  %v5393_v43 = vsel %vm10119_vm14, %v7837_v5, %v7838_v17  ;;  %v7857_v50 = vunpack.i.l.bf16 %v9810_v53  ;;  %v5250_v26 = vsel %vm10120_vm9, %v7823_v7, %v7867_v4  ;;  %6508 = vmatpush1.bf16.msra.mxu1 %v6507_v24  ;;  %v7881_v31 = vpop.permute.xlu0 %7880  ;;  %vm10121_vm12 = vmmov %vm10118_vm5  ;;  %v9853_v27 = vpop.permute.xlu1 %7870 }
 0xa67   : > { %v5251_v44 = vsel %vm10121_vm12, %v7867_v4, %v7868_v37  ;;  %v6511_v13 = vpack.c.bf16 %v5250_v26, %v5246_v28  ;;  %v7883_v15 = vunpack.i.h.bf16 %v7881_v31  ;;  %v7882_v49 = vunpack.i.l.bf16 %v7881_v31  ;;  %6482 = vmatprep.subr.bf16.mxu0 %v6481_v48  ;;  %vm10123_vm2 = vmmov %vm10119_vm14 }
 0xa68   : > { %v6509_v55 = vpack.c.bf16 %v5251_v44, %v5247_v60  ;;  %v10122_v22 = vunpack.i.l.bf16 %v9698_v35  ;;  %vm10124_vm11 = vmmov %vm10123_vm2  ;;  %v7873_v58 = vunpack.i.h.bf16 %v9853_v27  ;;  %v7872_v6 = vunpack.i.l.bf16 %v9853_v27 }
 0xa69   : > { %v5392_v7 = vsel %vm10124_vm11, %v7853_v29, %v7837_v5  ;;  %v6485_v8 = vpack.c.bf16 %v5393_v43, %v9794_v12  ;;  %6484 = vmatpush1.bf16.msra.mxu0 %v6483_v57  ;;  %vm10125_vm4 = vmmov %vm10117_vm13  ;;  %v7798_v19 = vunpack.i.h.bf16 %v9710_v20  ;;  %v5453_v42 = vsel %vm714_vm7, %v7857_v50, %v7858_v30 }
 0xa6a   : > { %v5388_v47 = vsel %vm10123_vm2, %v7852_v0, %v10122_v22  ;;  %6510 = vmatprep.subr.bf16.mxu1 %v6509_v55  ;;  %v9862_v59 = vpop.permute.xlu0 %7885  ;;  %v5457_v14 = vsel %vm714_vm7, %v7872_v6, %v7873_v58  ;;  %v5331_v41 = vsel %vm10125_vm4, %v7882_v49, %v7883_v15  ;;  %v7876_v25 = vpop.permute.xlu1 %7875  ;;  %vm10126_vm13 = vmmov %vm10125_vm4  ;;  %v7797_v61 = vunpack.i.l.bf16 %v9710_v20 }
 0xa6b   : > { %6512 = vmatpush1.bf16.msra.mxu1 %v6511_v13  ;;  %v6487_v56 = vpack.c.bf16 %v5392_v7, %v5388_v47  ;;  %6486 = vmatprep.subr.bf16.mxu0 %v6485_v8  ;;  %v5327_v45 = vsel %vm10126_vm13, %v7792_v46, %v7793_v32  ;;  %vm10127_vm5 = vmmov %vm10125_vm4  ;;  %v7878_v9 = vunpack.i.h.bf16 %v7876_v25  ;;  %v7877_v54 = vunpack.i.l.bf16 %v7876_v25  ;;  %v5929_v25 = vld [vmem:[%s9943_s1 + $0xc0] sm:$0xff] }
 0xa6c   : > { %6515 = vmatprep.subr.msk.bf16.mxu1 %vm8422_vm3, %v9640_v10  ;;  %v5330_v12 = vsel %vm10127_vm5, %v7828_v2, %v7882_v49  ;;  %vm10128_vm14 = vmmov %vm10125_vm4  ;;  %v6489_v3 = vpack.c.bf16 %v5457_v14, %v5453_v42  ;;  %v6519_v10 = vpack.c.bf16 %v5331_v41, %v5327_v45  ;;  %v7863_v28 = vunpack.i.h.bf16 %v9826_v63  ;;  %v5932_v45 = vld [vmem:[%s9943_s1 + $0xd8] sm:$0xff] }
 0xa6d   : > { %v5326_v5 = vsel %vm10128_vm14, %v7763_v52, %v7792_v46  ;;  %v7862_v18 = vunpack.i.l.bf16 %v9826_v63  ;;  %v5452_v2 = vsel %vm714_vm7, %v7877_v54, %v7857_v50  ;;  %v5456_v1 = vsel %vm714_vm7, %v7878_v9, %v7872_v6  ;;  %6488 = vmatpush1.bf16.msra.mxu0 %v6487_v56  ;;  %vm10129_vm3 = vmmov %vm10123_vm2 }
 0xa6e   : > { %v7901_v40 = vpop.permute.xlu0 %7900  ;;  %v6521_v62 = vpack.c.bf16 %v5330_v12, %v5326_v5  ;;  %v6491_v52 = vpack.c.bf16 %v5456_v1, %v5452_v2  ;;  %v7891_v38 = vpop.permute.xlu1 %7890  ;;  %6490 = vmatprep.subr.bf16.mxu0 %v6489_v3  ;;  %v7888_v24 = vunpack.i.h.bf16 %v9862_v59  ;;  %v7887_v63 = vunpack.i.l.bf16 %v9862_v59  ;;  %vm10130_vm9 = vmmov %vm10123_vm2  ;;  %v5931_v12 = vld [vmem:[%s9943_s1 + $0xd0] sm:$0xff]  ;;  %v5791_v1 = vld [vmem:[%s7985_s17 + $0x20] sm:$0x7] }
 0xa6f   : > { %6518 = vmatpush1.bf16.msk.msra.mxu1 %vm8441_vm1, %v9636_v21  ;;  %v7903_v32 = vunpack.i.h.bf16 %v7901_v40  ;;  %v7902_v20 = vunpack.i.l.bf16 %v7901_v40  ;;  %v7893_v16 = vunpack.i.h.bf16 %v7891_v38  ;;  %v7892_v60 = vunpack.i.l.bf16 %v7891_v38  ;;  %vm10131_vm1 = vmmov %vm10123_vm2  ;;  %v5789_v5 = vld [vmem:[%s7985_s17 + $0x10] sm:$0x7] }
 0xa70   : > { %6520 = vmatprep.subr.bf16.mxu1 %v6519_v10  ;;  %v5390_v29 = vsel %vm10129_vm3, %v7768_v11, %v7797_v61  ;;  %v5391_v23 = vsel %vm10130_vm9, %v7797_v61, %v7798_v19  ;;  %vm10132_vm12 = vmmov %vm10131_vm1  ;;  %v5455_v11 = vsel %vm714_vm7, %v7862_v18, %v7863_v28  ;;  %vm10133_vm2 = vcmask 777216   ;;  %v5790_v10 = vld [vmem:[%s7985_s17 + $0x18] sm:$0x7] }
 0xa71   : > { %v5394_v21 = vsel %vm10131_vm1, %v7838_v17, %v7892_v60  ;;  %6492 = vmatpush1.bf16.msra.mxu0 %v6491_v52  ;;  %v5395_v37 = vsel %vm10132_vm12, %v7892_v60, %v7893_v16  ;;  %v5459_v4 = vsel %vm714_vm7, %v7902_v20, %v7903_v32  ;;  %v5517_v50 = vsel %vm10133_vm2, %v7887_v63, %v7888_v24  ;;  %vm10134_vm11 = vmmov %vm10133_vm2 }
 0xa72   : > { %v7906_v0 = vpop.permute.xlu0 %7905  ;;  %v6525_v46 = vpack.c.bf16 %v5394_v21, %v5390_v29  ;;  %v7896_v43 = vpop.permute.xlu1 %7895  ;;  %v6523_v35 = vpack.c.bf16 %v5395_v37, %v5391_v23  ;;  %v5458_v36 = vsel %vm714_vm7, %v7873_v58, %v7902_v20  ;;  %v6527_v17 = vpack.c.bf16 %v5459_v4, %v5455_v11  ;;  %vm10135_vm4 = vmmov %vm10133_vm2  ;;  %v5792_v20 = vld [vmem:[%s7985_s17 + $0x28] sm:$0x7]  ;;  %s170_s17 = scalar_lea.vmem %s9945_s3, %s5942_s10 }
 0xa73   : > { %6522 = vmatpush1.bf16.msra.mxu1 %v6521_v62  ;;  %v7908_v57 = vunpack.i.h.bf16 %v7906_v0  ;;  %v7907_v48 = vunpack.i.l.bf16 %v7906_v0  ;;  %v7897_v26 = vunpack.i.l.bf16 %v7896_v43  ;;  %v7898_v44 = vunpack.i.h.bf16 %v7896_v43  ;;  %vm10136_vm13 = vmmov %vm10133_vm2 }
 0xa74   : > { %6524 = vmatprep.subr.bf16.mxu1 %v6523_v35  ;;  %v5454_v49 = vsel %vm714_vm7, %v7858_v30, %v7862_v18  ;;  %vm10137_vm5 = vmmov %vm10133_vm2 }
 0xa75   : > { %v5521_v31 = vsel %vm10134_vm11, %v7907_v48, %v7908_v57  ;;  %v6529_v47 = vpack.c.bf16 %v5458_v36, %v5454_v49  ;;  %v5518_v6 = vsel %vm10135_vm4, %v7888_v24, %v7897_v26  ;;  %vm10138_vm14 = vmmov %vm10133_vm2 }
 0xa76   : > { %v7916_v13 = vpop.permute.xlu0 %7915  ;;  %v6493_v15 = vpack.c.bf16 %v5521_v31, %v5517_v50  ;;  %v7911_v22 = vpop.permute.xlu1 %7910  ;;  %vm10139_vm3 = vmmov %vm10133_vm2 }
 0xa77   : > { %6526 = vmatpush1.bf16.msra.mxu1 %v6525_v46  ;;  %v7918_v27 = vunpack.i.h.bf16 %v7916_v13  ;;  %v7917_v55 = vunpack.i.l.bf16 %v7916_v13  ;;  %v7913_v7 = vunpack.i.h.bf16 %v7911_v22  ;;  %v7912_v58 = vunpack.i.l.bf16 %v7911_v22  ;;  %vm10140_vm7 = vmmov %vm10133_vm2 }
 0xa78   : > { %6528 = vmatprep.subr.bf16.mxu1 %v6527_v17  ;;  %6494 = vmatprep.subr.bf16.mxu0 %v6493_v15  ;;  %v5519_v53 = vsel %vm10139_vm3, %v7897_v26, %v7898_v44 }
 0xa79   : > { %v5516_v8 = vsel %vm10136_vm13, %v7917_v55, %v7887_v63  ;;  %v5520_v59 = vsel %vm10137_vm5, %v7918_v27, %v7907_v48  ;;  %v5522_v41 = vsel %vm10138_vm14, %v7908_v57, %v7912_v58  ;;  %v5523_v30 = vsel %vm10140_vm7, %v7912_v58, %v7913_v7 }
 0xa7a   : > { %v6495_v14 = vpack.c.bf16 %v5520_v59, %v5516_v8  ;;  %v6533_v19 = vpack.c.bf16 %v5522_v41, %v5518_v6  ;;  %v6531_v56 = vpack.c.bf16 %v5523_v30, %v5519_v53 }
 0xa7b   : > { %6530 = vmatpush1.bf16.msra.mxu1 %v6529_v47 }
 0xa7c   : > { %6496 = vmatpush1.bf16.msra.mxu0 %v6495_v14  ;;  %6532 = vmatprep.subr.bf16.mxu1 %v6531_v56 }
 0xa7f   : > { %6534 = vmatpush1.bf16.msra.mxu1 %v6533_v19  ;;  %5700 = vmatmul.mubr.f32.vlgmr.msra.gmra.mrb[24].mxu0 %v5929_v25 }
 0xa80   : > { %5936 = vmatprep.mubr.msk.f32.mxu0 %vm892_vm0, %v5932_v45 }
 0xa82   : > { %5775 = vmatmul.mubr.f32.vlgmr.msra.gmra.mrb[24].mxu1 %v5929_v25 }
 0xa83   : > { %5938 = vmatprep.mubr.msk.f32.mxu1 %vm892_vm0, %v5932_v45  ;;  %5706 = vmatmul.mubr.f32.gmra.mrb[26].mxu0 %v5931_v12 }
 0xa86   : > { %5781 = vmatmul.mubr.f32.gmra.mrb[26].mxu1 %v5931_v12 }
 0xa87   : > { %v5623_v9 = vpop.permute.xlu1 %5622 }
 0xb52   : > { %v5701_v54 = vpop.f32.mrb[24].mxu0 }
 0xb53   : > { %v5702_v42 = vadd.f32 %v5701_v54, %v5623_v9  ;;  %v5703_v61 = vpop.f32.mrb[25].mxu0 }
 0xb54   : > { %v5704_v3 = vadd.f32 %v5703_v61, %v5623_v9 }
 0xb55   : > { %v5776_v28 = vpop.f32.mrb[24].mxu1  ;;  %v5785_v18 = vsel %vm8177_vm15, %v5702_v42, 0.0 }
 0xb56   : > { %v5777_v2 = vadd.f32 %v5776_v28, %v5623_v9  ;;  %v5778_v40 = vpop.f32.mrb[25].mxu1  ;;  %v5793_v62 = vsub.f32 %v5789_v5, %v5785_v18  ;;  %v5786_v52 = vsel %vm8181_vm8, %v5704_v3, 0.0  ;;  %v5707_v38 = vpop.f32.mrb[26].mxu0 }
 0xb57   : > { %v5779_v32 = vadd.f32 %v5778_v40, %v5623_v9  ;;  %v5794_v24 = vsub.f32 %v5790_v10, %v5786_v52  ;;  %v5708_v16 = vpop.f32.mrb[27].mxu0 }
 0xb58   : > { %v5787_v63 = vsel %vm8185_vm6, %v5777_v2, 0.0  ;;  %v5797_v60 = vmul.f32 %v5793_v62, %v5789_v5 }
 0xb59   : > { %v5795_v29 = vsub.f32 %v5791_v1, %v5787_v63  ;;  %v5788_v33 = vsel %vm8207_vm10, %v5779_v32, 0.0  ;;  %v5782_v23 = vpop.f32.mrb[26].mxu1  ;;  %v5798_v21 = vmul.f32 %v5794_v24, %v5790_v10 }
 0xb5a   : > { %v5796_v0 = vsub.f32 %v5792_v20, %v5788_v33  ;;  %v5783_v37 = vpop.f32.mrb[27].mxu1 }
 0xb5b   : > { %v5799_v34 = vmul.f32 %v5795_v29, %v5791_v1  ;;  %v5805_v4 = vcombine.low %v5797_v60, %v5798_v21 }
 0xb5c   : > { %v5800_v46 = vmul.f32 %v5796_v0, %v5792_v20 }
 0xb5d   : > { %5809 = vst [vmem:[%s170_s17] sm:$0x77] %v5805_v4 }
 0xb5e   : > { %v5806_v39 = vcombine.low %v5799_v34, %v5800_v46 }
 0xb60   : > { %5810 = vst [vmem:[%s170_s17 + $0x8] sm:$0x77] %v5806_v39 }
 0xb61 PF: > { %s13_s12 = sadd.s32 1, %s7925_s12  }
 0xb62   : > { %p10_p4 = scmp.ge.s32.totalorder %s13_s12, 4  }
 0xb64   :  { %12 = sbr.rel (!%p10_p4) target bundleno = 1 (0x1), region = 74 }

</bundles_post_ra>
